<compile_context>
chip_gen: v7x
topology: tpu7x:2x2x1
jax: 0.10.0
libtpu: 0.0.40
codegen_flags: <defaults>
</compile_context>

<pallas_src>
import math
import numpy as np
import jax
import jax.numpy as jnp
from jax.experimental import pallas as pl
from jax.experimental.pallas import tpu as pltpu


# ---------------------------------------------------------------------------
# Host-side static helpers for the separable resampling steps.
# ---------------------------------------------------------------------------
def _interp_rows(n_in, n_out):
    """Per-output-row (src_index, weight) taps for 1-D bilinear, align_corners=True."""
    rows = []
    for o in range(n_out):
        if n_in == 1:
            rows.append([(0, 1.0)])
            continue
        src = o * (n_in - 1) / (n_out - 1)
        i0 = min(int(math.floor(src)), n_in - 2)
        f = src - i0
        rows.append([(i0, 1.0 - f), (i0 + 1, f)])
    return rows


def _interp_matrix_T(n_in, n_out):
    """(n_in, n_out) matrix M so that  out = x @ M  is a 1-D bilinear resize."""
    m = np.zeros((n_in, n_out), np.float32)
    for o, taps in enumerate(_interp_rows(n_in, n_out)):
        for i, w in taps:
            m[i, o] += w
    return m


def _select_matrix_T(n_in):
    """(n_in, n_in//2) matrix M so that  out = x @ M  keeps the even columns."""
    m = np.zeros((n_in, n_in // 2), np.float32)
    for o in range(n_in // 2):
        m[2 * o, o] = 1.0
    return m


def _decimate_rows(n_in):
    return [[(2 * o, 1.0)] for o in range(n_in // 2)]


# ---------------------------------------------------------------------------
# Fused kernel: whole pyramid per batch element.
# Layer order: [down0, down1, enh0, enh1, enh2, up0, up1]
# ---------------------------------------------------------------------------
def _make_fpa_kernel(C, H0, W0):

    def kernel(x_ref, w_ref, s1_ref, b1_ref, s2_ref, b2_ref,
               selw0_ref, selw1_ref, upw0_ref, upw1_ref,
               o_ref, xpf_ref, stage_ref, flat_ref):

        def conv3x3(feat, H, W, layer, extra_bn_relu):
            """3x3 'same' conv (stride 1, no bias) + fused BN + SiLU
            [+ second BN + ReLU] on a flat (C, H*W) map.  9 tap matmuls on the MXU,
            reading shifted slabs from a zero-padded flat VMEM staging buffer."""
            HW = H * W
            P = W + 1                                     # halo offset in flat buffer
            # in-kernel halo: zero the staging buffer, drop the feature in the middle
            xpf_ref[...] = jnp.zeros(xpf_ref.shape, xpf_ref.dtype)
            xpf_ref[:, pl.ds(P, HW)] = feat
            # column masks (hoisted out of the tap loop): kill row-wrap lanes
            col = jax.lax.broadcasted_iota(jnp.int32, (1, HW), 1) % W
            mask_l = col > 0                              # invalid lanes for dw == -1
            mask_r = col < (W - 1)                        # invalid lanes for dw == +1
            acc = jnp.zeros((C, HW), jnp.float32)
            for t in range(9):
                dh, dw = t // 3 - 1, t % 3 - 1
                slab = xpf_ref[:, pl.ds(P + dh * W + dw, HW)]     # (Cin, HW)
                if dw == -1:
                    slab = jnp.where(mask_l, slab, 0.0)
                elif dw == 1:
                    slab = jnp.where(mask_r, slab, 0.0)
                wt = w_ref[layer * 9 + t]                          # (Cout, Cin)
                acc = acc + jnp.dot(wt.astype(jnp.bfloat16),
                                    slab.astype(jnp.bfloat16),
                                    preferred_element_type=jnp.float32)
            y = acc * s1_ref[layer] + b1_ref[layer]       # folded BN (inference affine)
            y = y * jax.nn.sigmoid(y)                     # SiLU (ultralytics Conv act)
            if extra_bn_relu:
                y = jnp.maximum(y * s2_ref[layer] + b2_ref[layer], 0.0)
            return y

        def resample(vin, Hin, Win, m_ref, Wout, row_taps):
            """Separable spatial resample of a flat (C, Hin*Win) map:
            columns via one matmul with m_ref (Win, Wout); rows via static
            1/2-tap blends.  Returns flat (C, len(row_taps)*Wout)."""
            # stage flat rows into a (Hin*C, Win) slab (rows ordered hi*C + c)
            for hi in range(Hin):
                stage_ref[pl.ds(hi * C, C), pl.ds(0, Win)] = (
                    vin[:, hi * Win:(hi + 1) * Win])
            xb = stage_ref[pl.ds(0, Hin * C), pl.ds(0, Win)]       # (Hin*C, Win)
            tb = jnp.dot(xb, m_ref[...], preferred_element_type=jnp.float32)
            Hout = len(row_taps)
            for ho, taps in enumerate(row_taps):
                blk = None
                for src, wgt in taps:
                    if wgt == 0.0:
                        continue
                    piece = tb[src * C:(src + 1) * C, :]           # (C, Wout)
                    if wgt != 1.0:
                        piece = piece * wgt
                    blk = piece if blk is None else blk + piece
                flat_ref[:, pl.ds(ho * Wout, Wout)] = blk
            return flat_ref[:, pl.ds(0, Hout * Wout)]

        H1, W1 = H0 // 2, W0 // 2
        H2, W2 = H0 // 4, W0 // 4

        x0 = x_ref[0]                                              # (C, H0*W0)

        # ---- bottom-up: Conv(c,c,3,s=2)+BN+SiLU, as stride-1 MXU conv + decimation
        y0 = conv3x3(x0, H0, W0, layer=0, extra_bn_relu=False)
        f1 = resample(y0, H0, W0, selw0_ref, W1, _decimate_rows(H0))
        y1 = conv3x3(f1, H1, W1, layer=1, extra_bn_relu=False)
        f2 = resample(y1, H1, W1, selw1_ref, W2, _decimate_rows(H1))

        # ---- per-level enhance: Conv+BN+SiLU -> BN -> ReLU
        e0 = conv3x3(x0, H0, W0, layer=2, extra_bn_relu=True)
        e1 = conv3x3(f1, H1, W1, layer=3, extra_bn_relu=True)
        e2 = conv3x3(f2, H2, W2, layer=4, extra_bn_relu=True)

        # ---- top-down: bilinear x2 (align_corners=True) -> Conv+BN+SiLU -> BN -> ReLU
        #      with lateral residual adds
        u1 = resample(e2, H2, W2, upw0_ref, W1, _interp_rows(H2, H1))
        r1 = conv3x3(u1, H1, W1, layer=5, extra_bn_relu=True) + e1
        u0 = resample(r1, H1, W1, upw1_ref, W0, _interp_rows(H1, H0))
        r0 = conv3x3(u0, H0, W0, layer=6, extra_bn_relu=True) + e0

        o_ref[0] = r0.astype(o_ref.dtype)

    return kernel


# ---------------------------------------------------------------------------
# Parameter initialization (deterministic, synthetic; BN folded to affine).
# ---------------------------------------------------------------------------
def _fold_bn(key, C, eps=1e-5):
    kg, kb, km, kv = jax.random.split(key, 4)
    gamma = 1.0 + 0.1 * jax.random.normal(kg, (C,), jnp.float32)
    beta = 0.1 * jax.random.normal(kb, (C,), jnp.float32)
    mean = 0.1 * jax.random.normal(km, (C,), jnp.float32)
    var = jax.random.uniform(kv, (C,), jnp.float32, 0.5, 1.5)
    scale = gamma / jnp.sqrt(var + eps)
    bias = beta - mean * scale
    return scale, bias


def init_params(key, C):
    n_layers = 7                       # [down0, down1, enh0, enh1, enh2, up0, up1]
    kw, *kbn = jax.random.split(key, 1 + 2 * n_layers)
    # w[l, t, co, ci] with t = 3*dh + dw (cross-correlation taps)
    w = 0.2 * jax.random.normal(kw, (n_layers, 9, C, C), jnp.float32)
    s1, b1, s2, b2 = [], [], [], []
    for l in range(n_layers):
        s, b = _fold_bn(kbn[2 * l], C)
        s1.append(s); b1.append(b)
        if l >= 2:                     # enhance / upsample branches: second BN + ReLU
            s, b = _fold_bn(kbn[2 * l + 1], C)
        else:                          # down branches: identity (unused in kernel)
            s, b = jnp.ones((C,), jnp.float32), jnp.zeros((C,), jnp.float32)
        s2.append(s); b2.append(b)
    pack = lambda xs: jnp.stack(xs).reshape(n_layers, C, 1)
    return {"w": w.reshape(n_layers * 9, C, C),
            "s1": pack(s1), "b1": pack(b1), "s2": pack(s2), "b2": pack(b2)}


# ---------------------------------------------------------------------------
# Public forward: NCHW in / NCHW out; all compute inside one pallas_call.
# ---------------------------------------------------------------------------
def feature_pyramid_alignment(x_nchw, params):
    N, C, H, W = x_nchw.shape
    assert H % 4 == 0 and W % 4 == 0, "pyramid needs H, W divisible by 4"
    HW = H * W
    x_flat = x_nchw.reshape(N, C, HW).astype(jnp.float32)   # pure reshape (no transpose)

    sel0 = jnp.asarray(_select_matrix_T(W))                  # (W,   W/2)
    sel1 = jnp.asarray(_select_matrix_T(W // 2))             # (W/2, W/4)
    up0 = jnp.asarray(_interp_matrix_T(W // 4, W // 2))      # (W/4, W/2)
    up1 = jnp.asarray(_interp_matrix_T(W // 2, W))           # (W/2, W)

    def full(arr):
        shape = tuple(arr.shape)
        return pl.BlockSpec(shape, lambda n, _s=shape: (0,) * len(_s))

    out = pl.pallas_call(
        _make_fpa_kernel(C, H, W),
        out_shape=jax.ShapeDtypeStruct((N, C, HW), jnp.float32),
        grid=(N,),
        in_specs=[
            pl.BlockSpec((1, C, HW), lambda n: (n, 0, 0)),   # input (lane-dense)
            full(params["w"]), full(params["s1"]), full(params["b1"]),
            full(params["s2"]), full(params["b2"]),
            full(sel0), full(sel1), full(up0), full(up1),
        ],
        out_specs=pl.BlockSpec((1, C, HW), lambda n: (n, 0, 0)),
        scratch_shapes=[
            pltpu.VMEM((C, HW + 2 * W + 2), jnp.float32),    # padded-flat conv staging
            pltpu.VMEM((H * C, W), jnp.float32),             # 2-D resample staging
            pltpu.VMEM((C, HW), jnp.float32),                # flat resample output staging
        ],
        compiler_params=pltpu.CompilerParams(
            dimension_semantics=("parallel",)),              # batch across TCs (megacore)
    )(x_flat, params["w"], params["s1"], params["b1"], params["s2"], params["b2"],
      sel0, sel1, up0, up1)

    return out.reshape(N, C, H, W)


if __name__ == "__main__":
    B, C, H, W = 2, 4, 16, 16
    key = jax.random.PRNGKey(0)
    kx, kp = jax.random.split(key)
    x = jax.random.normal(kx, (B, C, H, W), jnp.float32)
    params = init_params(kp, C)

    out = jax.jit(feature_pyramid_alignment)(x, params)
    out = jax.block_until_ready(out)
    assert out.shape == (B, C, H, W), out.shape
    assert bool(jnp.all(jnp.isfinite(out)))
    print("KERNEL_OK")
</pallas_src>

<mosaic_0001>
module attributes {stable_mosaic.version = 11 : i64} {
  func.func @kernel(%arg0: i32, %arg1: memref<1x4x256xf32, #tpu.memory_space<vmem>>, %arg2: memref<63x4x4xf32, #tpu.memory_space<vmem>>, %arg3: memref<7x4x1xf32, #tpu.memory_space<vmem>>, %arg4: memref<7x4x1xf32, #tpu.memory_space<vmem>>, %arg5: memref<7x4x1xf32, #tpu.memory_space<vmem>>, %arg6: memref<7x4x1xf32, #tpu.memory_space<vmem>>, %arg7: memref<16x8xf32, #tpu.memory_space<vmem>>, %arg8: memref<8x4xf32, #tpu.memory_space<vmem>>, %arg9: memref<4x8xf32, #tpu.memory_space<vmem>>, %arg10: memref<8x16xf32, #tpu.memory_space<vmem>>, %arg11: memref<1x4x256xf32, #tpu.memory_space<vmem>>, %arg12: memref<4x290xf32, #tpu.memory_space<vmem>>, %arg13: memref<64x16xf32, #tpu.memory_space<vmem>>, %arg14: memref<4x256xf32, #tpu.memory_space<vmem>>) attributes {dimension_semantics = [#tpu.dimension_semantics<parallel>], iteration_bounds = array<i64: 2>, scalar_prefetch = 0 : i64, scratch_operands = 3 : i64, tpu.core_type = #tpu.core_type<tc>, window_params = [{transform_indices = @transform_0, window_bounds = array<i64: 1, 4, 256>}, {pipeline_mode = #tpu.pipeline_mode<synchronous>, transform_indices = @transform_1, window_bounds = array<i64: 63, 4, 4>}, {pipeline_mode = #tpu.pipeline_mode<synchronous>, transform_indices = @transform_2, window_bounds = array<i64: 7, 4, 1>}, {pipeline_mode = #tpu.pipeline_mode<synchronous>, transform_indices = @transform_3, window_bounds = array<i64: 7, 4, 1>}, {pipeline_mode = #tpu.pipeline_mode<synchronous>, transform_indices = @transform_4, window_bounds = array<i64: 7, 4, 1>}, {pipeline_mode = #tpu.pipeline_mode<synchronous>, transform_indices = @transform_5, window_bounds = array<i64: 7, 4, 1>}, {pipeline_mode = #tpu.pipeline_mode<synchronous>, transform_indices = @transform_6, window_bounds = array<i64: 16, 8>}, {pipeline_mode = #tpu.pipeline_mode<synchronous>, transform_indices = @transform_7, window_bounds = array<i64: 8, 4>}, {pipeline_mode = #tpu.pipeline_mode<synchronous>, transform_indices = @transform_8, window_bounds = array<i64: 4, 8>}, {pipeline_mode = #tpu.pipeline_mode<synchronous>, transform_indices = @transform_9, window_bounds = array<i64: 8, 16>}, {transform_indices = @transform_10, window_bounds = array<i64: 1, 4, 256>}]} {
    %c0 = arith.constant 0 : index
    %c0_0 = arith.constant 0 : index
    %c0_1 = arith.constant 0 : index
    %0 = vector.load %arg1[%c0, %c0_0, %c0_1] : memref<1x4x256xf32, #tpu.memory_space<vmem>>, vector<1x4x256xf32>
    %1 = vector.shape_cast %0 : vector<1x4x256xf32> to vector<4x256xf32>
    %cst = arith.constant 0.000000e+00 : f32
    %2 = vector.broadcast %cst : f32 to vector<4x290xf32>
    %c0_2 = arith.constant 0 : index
    %c0_3 = arith.constant 0 : index
    %3 = vector.load %arg12[%c0_2, %c0_3] : memref<4x290xf32, #tpu.memory_space<vmem>>, vector<4x290xf32>
    tpu.vector_store %arg12[%c0_2, %c0_3], %2 {strides = array<i32>} : memref<4x290xf32, #tpu.memory_space<vmem>>, vector<4x290xf32>,
    %c0_4 = arith.constant 0 : index
    %c17 = arith.constant 17 : index
    %4 = vector.load %arg12[%c0_4, %c17] : memref<4x290xf32, #tpu.memory_space<vmem>>, vector<4x256xf32>
    tpu.vector_store %arg12[%c0_4, %c17], %1 {strides = array<i32>} : memref<4x290xf32, #tpu.memory_space<vmem>>, vector<4x256xf32>,
    %5 = tpu.iota {dimensions = array<i32: 1>} : vector<1x256xi32>
    %c16_i32 = arith.constant 16 : i32
    %c0_i32 = arith.constant 0 : i32
    %6 = arith.cmpi eq, %c16_i32, %c0_i32 : i32
    %c1_i32 = arith.constant 1 : i32
    %7 = arith.select %6, %c1_i32, %c16_i32 : i32
    %8 = vector.broadcast %7 : i32 to vector<1x256xi32>
    %9 = arith.remsi %5, %8 : vector<1x256xi32>
    %c0_i32_5 = arith.constant 0 : i32
    %10 = vector.broadcast %c0_i32_5 : i32 to vector<1x256xi32>
    %11 = arith.cmpi ne, %9, %10 : vector<1x256xi32>
    %c0_i32_6 = arith.constant 0 : i32
    %12 = vector.broadcast %c0_i32_6 : i32 to vector<1x256xi32>
    %13 = arith.cmpi slt, %9, %12 : vector<1x256xi32>
    %c0_i32_7 = arith.constant 0 : i32
    %14 = arith.cmpi slt, %7, %c0_i32_7 : i32
    %15 = vector.broadcast %14 : i1 to vector<1x256xi1>
    %16 = vector.broadcast %15 : vector<1x256xi1> to vector<1x256xi1>
    %17 = arith.xori %13, %16 : vector<1x256xi1>
    %18 = arith.andi %17, %11 : vector<1x256xi1>
    %19 = vector.broadcast %7 : i32 to vector<1x256xi32>
    %20 = arith.addi %9, %19 : vector<1x256xi32>
    %21 = arith.select %18, %20, %9 : vector<1x256xi1>, vector<1x256xi32>
    %c0_i32_8 = arith.constant 0 : i32
    %22 = vector.broadcast %c0_i32_8 : i32 to vector<1x256xi32>
    %23 = arith.cmpi sgt, %21, %22 : vector<1x256xi32>
    %c15_i32 = arith.constant 15 : i32
    %24 = vector.broadcast %c15_i32 : i32 to vector<1x256xi32>
    %25 = arith.cmpi slt, %21, %24 : vector<1x256xi32>
    %cst_9 = arith.constant 0.000000e+00 : f32
    %26 = vector.broadcast %cst_9 : f32 to vector<4x256xf32>
    %c0_10 = arith.constant 0 : index
    %c0_11 = arith.constant 0 : index
    %27 = vector.load %arg12[%c0_10, %c0_11] : memref<4x290xf32, #tpu.memory_space<vmem>>, vector<4x256xf32>
    %cst_12 = arith.constant 0.000000e+00 : f32
    %28 = vector.shape_cast %23 : vector<1x256xi1> to vector<1x256xi1>
    %29 = vector.broadcast %28 : vector<1x256xi1> to vector<4x256xi1>
    %30 = vector.broadcast %cst_12 : f32 to vector<4x256xf32>
    %31 = arith.select %29, %27, %30 : vector<4x256xi1>, vector<4x256xf32>
    %c0_13 = arith.constant 0 : index
    %c0_14 = arith.constant 0 : index
    %c0_15 = arith.constant 0 : index
    %32 = vector.load %arg2[%c0_13, %c0_14, %c0_15] : memref<63x4x4xf32, #tpu.memory_space<vmem>>, vector<1x4x4xf32>
    %33 = vector.shape_cast %32 : vector<1x4x4xf32> to vector<4x4xf32>
    %34 = arith.truncf %33 : vector<4x4xf32> to vector<4x4xbf16>
    %35 = arith.truncf %31 : vector<4x256xf32> to vector<4x256xbf16>
    %cst_16 = arith.constant dense<0.000000e+00> : vector<4x256xf32>
    %36 = tpu.matmul %34, %35, %cst_16 {dimension_numbers = #tpu.dot_dimension_numbers<[1], [0], [0], [1], [0, 0, 1, 1], [], []>} : vector<4x4xbf16>, vector<4x256xbf16>, vector<4x256xf32> -> vector<4x256xf32>
    %37 = arith.addf %26, %36 : vector<4x256xf32>
    %c0_17 = arith.constant 0 : index
    %c1 = arith.constant 1 : index
    %38 = vector.load %arg12[%c0_17, %c1] : memref<4x290xf32, #tpu.memory_space<vmem>>, vector<4x256xf32>
    %c1_18 = arith.constant 1 : index
    %c0_19 = arith.constant 0 : index
    %c0_20 = arith.constant 0 : index
    %39 = vector.load %arg2[%c1_18, %c0_19, %c0_20] : memref<63x4x4xf32, #tpu.memory_space<vmem>>, vector<1x4x4xf32>
    %40 = vector.shape_cast %39 : vector<1x4x4xf32> to vector<4x4xf32>
    %41 = arith.truncf %40 : vector<4x4xf32> to vector<4x4xbf16>
    %42 = arith.truncf %38 : vector<4x256xf32> to vector<4x256xbf16>
    %cst_21 = arith.constant dense<0.000000e+00> : vector<4x256xf32>
    %43 = tpu.matmul %41, %42, %cst_21 {dimension_numbers = #tpu.dot_dimension_numbers<[1], [0], [0], [1], [0, 0, 1, 1], [], []>} : vector<4x4xbf16>, vector<4x256xbf16>, vector<4x256xf32> -> vector<4x256xf32>
    %44 = arith.addf %37, %43 : vector<4x256xf32>
    %c0_22 = arith.constant 0 : index
    %c2 = arith.constant 2 : index
    %45 = vector.load %arg12[%c0_22, %c2] : memref<4x290xf32, #tpu.memory_space<vmem>>, vector<4x256xf32>
    %cst_23 = arith.constant 0.000000e+00 : f32
    %46 = vector.shape_cast %25 : vector<1x256xi1> to vector<1x256xi1>
    %47 = vector.broadcast %46 : vector<1x256xi1> to vector<4x256xi1>
    %48 = vector.broadcast %cst_23 : f32 to vector<4x256xf32>
    %49 = arith.select %47, %45, %48 : vector<4x256xi1>, vector<4x256xf32>
    %c2_24 = arith.constant 2 : index
    %c0_25 = arith.constant 0 : index
    %c0_26 = arith.constant 0 : index
    %50 = vector.load %arg2[%c2_24, %c0_25, %c0_26] : memref<63x4x4xf32, #tpu.memory_space<vmem>>, vector<1x4x4xf32>
    %51 = vector.shape_cast %50 : vector<1x4x4xf32> to vector<4x4xf32>
    %52 = arith.truncf %51 : vector<4x4xf32> to vector<4x4xbf16>
    %53 = arith.truncf %49 : vector<4x256xf32> to vector<4x256xbf16>
    %cst_27 = arith.constant dense<0.000000e+00> : vector<4x256xf32>
    %54 = tpu.matmul %52, %53, %cst_27 {dimension_numbers = #tpu.dot_dimension_numbers<[1], [0], [0], [1], [0, 0, 1, 1], [], []>} : vector<4x4xbf16>, vector<4x256xbf16>, vector<4x256xf32> -> vector<4x256xf32>
    %55 = arith.addf %44, %54 : vector<4x256xf32>
    %c0_28 = arith.constant 0 : index
    %c16 = arith.constant 16 : index
    %56 = vector.load %arg12[%c0_28, %c16] : memref<4x290xf32, #tpu.memory_space<vmem>>, vector<4x256xf32>
    %cst_29 = arith.constant 0.000000e+00 : f32
    %57 = vector.shape_cast %23 : vector<1x256xi1> to vector<1x256xi1>
    %58 = vector.broadcast %57 : vector<1x256xi1> to vector<4x256xi1>
    %59 = vector.broadcast %cst_29 : f32 to vector<4x256xf32>
    %60 = arith.select %58, %56, %59 : vector<4x256xi1>, vector<4x256xf32>
    %c3 = arith.constant 3 : index
    %c0_30 = arith.constant 0 : index
    %c0_31 = arith.constant 0 : index
    %61 = vector.load %arg2[%c3, %c0_30, %c0_31] : memref<63x4x4xf32, #tpu.memory_space<vmem>>, vector<1x4x4xf32>
    %62 = vector.shape_cast %61 : vector<1x4x4xf32> to vector<4x4xf32>
    %63 = arith.truncf %62 : vector<4x4xf32> to vector<4x4xbf16>
    %64 = arith.truncf %60 : vector<4x256xf32> to vector<4x256xbf16>
    %cst_32 = arith.constant dense<0.000000e+00> : vector<4x256xf32>
    %65 = tpu.matmul %63, %64, %cst_32 {dimension_numbers = #tpu.dot_dimension_numbers<[1], [0], [0], [1], [0, 0, 1, 1], [], []>} : vector<4x4xbf16>, vector<4x256xbf16>, vector<4x256xf32> -> vector<4x256xf32>
    %66 = arith.addf %55, %65 : vector<4x256xf32>
    %c0_33 = arith.constant 0 : index
    %c17_34 = arith.constant 17 : index
    %67 = vector.load %arg12[%c0_33, %c17_34] : memref<4x290xf32, #tpu.memory_space<vmem>>, vector<4x256xf32>
    %c4 = arith.constant 4 : index
    %c0_35 = arith.constant 0 : index
    %c0_36 = arith.constant 0 : index
    %68 = vector.load %arg2[%c4, %c0_35, %c0_36] : memref<63x4x4xf32, #tpu.memory_space<vmem>>, vector<1x4x4xf32>
    %69 = vector.shape_cast %68 : vector<1x4x4xf32> to vector<4x4xf32>
    %70 = arith.truncf %69 : vector<4x4xf32> to vector<4x4xbf16>
    %71 = arith.truncf %67 : vector<4x256xf32> to vector<4x256xbf16>
    %cst_37 = arith.constant dense<0.000000e+00> : vector<4x256xf32>
    %72 = tpu.matmul %70, %71, %cst_37 {dimension_numbers = #tpu.dot_dimension_numbers<[1], [0], [0], [1], [0, 0, 1, 1], [], []>} : vector<4x4xbf16>, vector<4x256xbf16>, vector<4x256xf32> -> vector<4x256xf32>
    %73 = arith.addf %66, %72 : vector<4x256xf32>
    %c0_38 = arith.constant 0 : index
    %c18 = arith.constant 18 : index
    %74 = vector.load %arg12[%c0_38, %c18] : memref<4x290xf32, #tpu.memory_space<vmem>>, vector<4x256xf32>
    %cst_39 = arith.constant 0.000000e+00 : f32
    %75 = vector.shape_cast %25 : vector<1x256xi1> to vector<1x256xi1>
    %76 = vector.broadcast %75 : vector<1x256xi1> to vector<4x256xi1>
    %77 = vector.broadcast %cst_39 : f32 to vector<4x256xf32>
    %78 = arith.select %76, %74, %77 : vector<4x256xi1>, vector<4x256xf32>
    %c5 = arith.constant 5 : index
    %c0_40 = arith.constant 0 : index
    %c0_41 = arith.constant 0 : index
    %79 = vector.load %arg2[%c5, %c0_40, %c0_41] : memref<63x4x4xf32, #tpu.memory_space<vmem>>, vector<1x4x4xf32>
    %80 = vector.shape_cast %79 : vector<1x4x4xf32> to vector<4x4xf32>
    %81 = arith.truncf %80 : vector<4x4xf32> to vector<4x4xbf16>
    %82 = arith.truncf %78 : vector<4x256xf32> to vector<4x256xbf16>
    %cst_42 = arith.constant dense<0.000000e+00> : vector<4x256xf32>
    %83 = tpu.matmul %81, %82, %cst_42 {dimension_numbers = #tpu.dot_dimension_numbers<[1], [0], [0], [1], [0, 0, 1, 1], [], []>} : vector<4x4xbf16>, vector<4x256xbf16>, vector<4x256xf32> -> vector<4x256xf32>
    %84 = arith.addf %73, %83 : vector<4x256xf32>
    %c0_43 = arith.constant 0 : index
    %c32 = arith.constant 32 : index
    %85 = vector.load %arg12[%c0_43, %c32] : memref<4x290xf32, #tpu.memory_space<vmem>>, vector<4x256xf32>
    %cst_44 = arith.constant 0.000000e+00 : f32
    %86 = vector.shape_cast %23 : vector<1x256xi1> to vector<1x256xi1>
    %87 = vector.broadcast %86 : vector<1x256xi1> to vector<4x256xi1>
    %88 = vector.broadcast %cst_44 : f32 to vector<4x256xf32>
    %89 = arith.select %87, %85, %88 : vector<4x256xi1>, vector<4x256xf32>
    %c6 = arith.constant 6 : index
    %c0_45 = arith.constant 0 : index
    %c0_46 = arith.constant 0 : index
    %90 = vector.load %arg2[%c6, %c0_45, %c0_46] : memref<63x4x4xf32, #tpu.memory_space<vmem>>, vector<1x4x4xf32>
    %91 = vector.shape_cast %90 : vector<1x4x4xf32> to vector<4x4xf32>
    %92 = arith.truncf %91 : vector<4x4xf32> to vector<4x4xbf16>
    %93 = arith.truncf %89 : vector<4x256xf32> to vector<4x256xbf16>
    %cst_47 = arith.constant dense<0.000000e+00> : vector<4x256xf32>
    %94 = tpu.matmul %92, %93, %cst_47 {dimension_numbers = #tpu.dot_dimension_numbers<[1], [0], [0], [1], [0, 0, 1, 1], [], []>} : vector<4x4xbf16>, vector<4x256xbf16>, vector<4x256xf32> -> vector<4x256xf32>
    %95 = arith.addf %84, %94 : vector<4x256xf32>
    %c0_48 = arith.constant 0 : index
    %c33 = arith.constant 33 : index
    %96 = vector.load %arg12[%c0_48, %c33] : memref<4x290xf32, #tpu.memory_space<vmem>>, vector<4x256xf32>
    %c7 = arith.constant 7 : index
    %c0_49 = arith.constant 0 : index
    %c0_50 = arith.constant 0 : index
    %97 = vector.load %arg2[%c7, %c0_49, %c0_50] : memref<63x4x4xf32, #tpu.memory_space<vmem>>, vector<1x4x4xf32>
    %98 = vector.shape_cast %97 : vector<1x4x4xf32> to vector<4x4xf32>
    %99 = arith.truncf %98 : vector<4x4xf32> to vector<4x4xbf16>
    %100 = arith.truncf %96 : vector<4x256xf32> to vector<4x256xbf16>
    %cst_51 = arith.constant dense<0.000000e+00> : vector<4x256xf32>
    %101 = tpu.matmul %99, %100, %cst_51 {dimension_numbers = #tpu.dot_dimension_numbers<[1], [0], [0], [1], [0, 0, 1, 1], [], []>} : vector<4x4xbf16>, vector<4x256xbf16>, vector<4x256xf32> -> vector<4x256xf32>
    %102 = arith.addf %95, %101 : vector<4x256xf32>
    %c0_52 = arith.constant 0 : index
    %c34 = arith.constant 34 : index
    %103 = vector.load %arg12[%c0_52, %c34] : memref<4x290xf32, #tpu.memory_space<vmem>>, vector<4x256xf32>
    %cst_53 = arith.constant 0.000000e+00 : f32
    %104 = vector.shape_cast %25 : vector<1x256xi1> to vector<1x256xi1>
    %105 = vector.broadcast %104 : vector<1x256xi1> to vector<4x256xi1>
    %106 = vector.broadcast %cst_53 : f32 to vector<4x256xf32>
    %107 = arith.select %105, %103, %106 : vector<4x256xi1>, vector<4x256xf32>
    %c8 = arith.constant 8 : index
    %c0_54 = arith.constant 0 : index
    %c0_55 = arith.constant 0 : index
    %108 = vector.load %arg2[%c8, %c0_54, %c0_55] : memref<63x4x4xf32, #tpu.memory_space<vmem>>, vector<1x4x4xf32>
    %109 = vector.shape_cast %108 : vector<1x4x4xf32> to vector<4x4xf32>
    %110 = arith.truncf %109 : vector<4x4xf32> to vector<4x4xbf16>
    %111 = arith.truncf %107 : vector<4x256xf32> to vector<4x256xbf16>
    %cst_56 = arith.constant dense<0.000000e+00> : vector<4x256xf32>
    %112 = tpu.matmul %110, %111, %cst_56 {dimension_numbers = #tpu.dot_dimension_numbers<[1], [0], [0], [1], [0, 0, 1, 1], [], []>} : vector<4x4xbf16>, vector<4x256xbf16>, vector<4x256xf32> -> vector<4x256xf32>
    %113 = arith.addf %102, %112 : vector<4x256xf32>
    %c0_57 = arith.constant 0 : index
    %c0_58 = arith.constant 0 : index
    %c0_59 = arith.constant 0 : index
    %114 = vector.load %arg3[%c0_57, %c0_58, %c0_59] : memref<7x4x1xf32, #tpu.memory_space<vmem>>, vector<1x4x1xf32>
    %115 = vector.shape_cast %114 : vector<1x4x1xf32> to vector<4x1xf32>
    %116 = vector.broadcast %115 : vector<4x1xf32> to vector<4x256xf32>
    %117 = arith.mulf %113, %116 : vector<4x256xf32>
    %c0_60 = arith.constant 0 : index
    %c0_61 = arith.constant 0 : index
    %c0_62 = arith.constant 0 : index
    %118 = vector.load %arg4[%c0_60, %c0_61, %c0_62] : memref<7x4x1xf32, #tpu.memory_space<vmem>>, vector<1x4x1xf32>
    %119 = vector.shape_cast %118 : vector<1x4x1xf32> to vector<4x1xf32>
    %120 = vector.broadcast %119 : vector<4x1xf32> to vector<4x256xf32>
    %121 = arith.addf %117, %120 : vector<4x256xf32>
    %122 = arith.negf %121 : vector<4x256xf32>
    %123 = math.exp %122 : vector<4x256xf32>
    %cst_63 = arith.constant 1.000000e+00 : f32
    %124 = vector.broadcast %cst_63 : f32 to vector<4x256xf32>
    %125 = arith.addf %124, %123 : vector<4x256xf32>
    %126 = arith.divf %124, %125 : vector<4x256xf32>
    %127 = arith.mulf %121, %126 : vector<4x256xf32>
    %128 = vector.extract_strided_slice %127 {offsets = [0, 0], sizes = [4, 16], strides = [1, 1]} : vector<4x256xf32> to vector<4x16xf32>
    %c0_64 = arith.constant 0 : index
    %c0_65 = arith.constant 0 : index
    %129 = vector.load %arg13[%c0_64, %c0_65] : memref<64x16xf32, #tpu.memory_space<vmem>>, vector<4x16xf32>
    tpu.vector_store %arg13[%c0_64, %c0_65], %128 {strides = array<i32>} : memref<64x16xf32, #tpu.memory_space<vmem>>, vector<4x16xf32>,
    %130 = vector.extract_strided_slice %127 {offsets = [0, 16], sizes = [4, 16], strides = [1, 1]} : vector<4x256xf32> to vector<4x16xf32>
    %c4_66 = arith.constant 4 : index
    %c0_67 = arith.constant 0 : index
    %131 = vector.load %arg13[%c4_66, %c0_67] : memref<64x16xf32, #tpu.memory_space<vmem>>, vector<4x16xf32>
    tpu.vector_store %arg13[%c4_66, %c0_67], %130 {strides = array<i32>} : memref<64x16xf32, #tpu.memory_space<vmem>>, vector<4x16xf32>,
    %132 = vector.extract_strided_slice %127 {offsets = [0, 32], sizes = [4, 16], strides = [1, 1]} : vector<4x256xf32> to vector<4x16xf32>
    %c8_68 = arith.constant 8 : index
    %c0_69 = arith.constant 0 : index
    %133 = vector.load %arg13[%c8_68, %c0_69] : memref<64x16xf32, #tpu.memory_space<vmem>>, vector<4x16xf32>
    tpu.vector_store %arg13[%c8_68, %c0_69], %132 {strides = array<i32>} : memref<64x16xf32, #tpu.memory_space<vmem>>, vector<4x16xf32>,
    %134 = vector.extract_strided_slice %127 {offsets = [0, 48], sizes = [4, 16], strides = [1, 1]} : vector<4x256xf32> to vector<4x16xf32>
    %c12 = arith.constant 12 : index
    %c0_70 = arith.constant 0 : index
    %135 = vector.load %arg13[%c12, %c0_70] : memref<64x16xf32, #tpu.memory_space<vmem>>, vector<4x16xf32>
    tpu.vector_store %arg13[%c12, %c0_70], %134 {strides = array<i32>} : memref<64x16xf32, #tpu.memory_space<vmem>>, vector<4x16xf32>,
    %136 = vector.extract_strided_slice %127 {offsets = [0, 64], sizes = [4, 16], strides = [1, 1]} : vector<4x256xf32> to vector<4x16xf32>
    %c16_71 = arith.constant 16 : index
    %c0_72 = arith.constant 0 : index
    %137 = vector.load %arg13[%c16_71, %c0_72] : memref<64x16xf32, #tpu.memory_space<vmem>>, vector<4x16xf32>
    tpu.vector_store %arg13[%c16_71, %c0_72], %136 {strides = array<i32>} : memref<64x16xf32, #tpu.memory_space<vmem>>, vector<4x16xf32>,
    %138 = vector.extract_strided_slice %127 {offsets = [0, 80], sizes = [4, 16], strides = [1, 1]} : vector<4x256xf32> to vector<4x16xf32>
    %c20 = arith.constant 20 : index
    %c0_73 = arith.constant 0 : index
    %139 = vector.load %arg13[%c20, %c0_73] : memref<64x16xf32, #tpu.memory_space<vmem>>, vector<4x16xf32>
    tpu.vector_store %arg13[%c20, %c0_73], %138 {strides = array<i32>} : memref<64x16xf32, #tpu.memory_space<vmem>>, vector<4x16xf32>,
    %140 = vector.extract_strided_slice %127 {offsets = [0, 96], sizes = [4, 16], strides = [1, 1]} : vector<4x256xf32> to vector<4x16xf32>
    %c24 = arith.constant 24 : index
    %c0_74 = arith.constant 0 : index
    %141 = vector.load %arg13[%c24, %c0_74] : memref<64x16xf32, #tpu.memory_space<vmem>>, vector<4x16xf32>
    tpu.vector_store %arg13[%c24, %c0_74], %140 {strides = array<i32>} : memref<64x16xf32, #tpu.memory_space<vmem>>, vector<4x16xf32>,
    %142 = vector.extract_strided_slice %127 {offsets = [0, 112], sizes = [4, 16], strides = [1, 1]} : vector<4x256xf32> to vector<4x16xf32>
    %c28 = arith.constant 28 : index
    %c0_75 = arith.constant 0 : index
    %143 = vector.load %arg13[%c28, %c0_75] : memref<64x16xf32, #tpu.memory_space<vmem>>, vector<4x16xf32>
    tpu.vector_store %arg13[%c28, %c0_75], %142 {strides = array<i32>} : memref<64x16xf32, #tpu.memory_space<vmem>>, vector<4x16xf32>,
    %144 = vector.extract_strided_slice %127 {offsets = [0, 128], sizes = [4, 16], strides = [1, 1]} : vector<4x256xf32> to vector<4x16xf32>
    %c32_76 = arith.constant 32 : index
    %c0_77 = arith.constant 0 : index
    %145 = vector.load %arg13[%c32_76, %c0_77] : memref<64x16xf32, #tpu.memory_space<vmem>>, vector<4x16xf32>
    tpu.vector_store %arg13[%c32_76, %c0_77], %144 {strides = array<i32>} : memref<64x16xf32, #tpu.memory_space<vmem>>, vector<4x16xf32>,
    %146 = vector.extract_strided_slice %127 {offsets = [0, 144], sizes = [4, 16], strides = [1, 1]} : vector<4x256xf32> to vector<4x16xf32>
    %c36 = arith.constant 36 : index
    %c0_78 = arith.constant 0 : index
    %147 = vector.load %arg13[%c36, %c0_78] : memref<64x16xf32, #tpu.memory_space<vmem>>, vector<4x16xf32>
    tpu.vector_store %arg13[%c36, %c0_78], %146 {strides = array<i32>} : memref<64x16xf32, #tpu.memory_space<vmem>>, vector<4x16xf32>,
    %148 = vector.extract_strided_slice %127 {offsets = [0, 160], sizes = [4, 16], strides = [1, 1]} : vector<4x256xf32> to vector<4x16xf32>
    %c40 = arith.constant 40 : index
    %c0_79 = arith.constant 0 : index
    %149 = vector.load %arg13[%c40, %c0_79] : memref<64x16xf32, #tpu.memory_space<vmem>>, vector<4x16xf32>
    tpu.vector_store %arg13[%c40, %c0_79], %148 {strides = array<i32>} : memref<64x16xf32, #tpu.memory_space<vmem>>, vector<4x16xf32>,
    %150 = vector.extract_strided_slice %127 {offsets = [0, 176], sizes = [4, 16], strides = [1, 1]} : vector<4x256xf32> to vector<4x16xf32>
    %c44 = arith.constant 44 : index
    %c0_80 = arith.constant 0 : index
    %151 = vector.load %arg13[%c44, %c0_80] : memref<64x16xf32, #tpu.memory_space<vmem>>, vector<4x16xf32>
    tpu.vector_store %arg13[%c44, %c0_80], %150 {strides = array<i32>} : memref<64x16xf32, #tpu.memory_space<vmem>>, vector<4x16xf32>,
    %152 = vector.extract_strided_slice %127 {offsets = [0, 192], sizes = [4, 16], strides = [1, 1]} : vector<4x256xf32> to vector<4x16xf32>
    %c48 = arith.constant 48 : index
    %c0_81 = arith.constant 0 : index
    %153 = vector.load %arg13[%c48, %c0_81] : memref<64x16xf32, #tpu.memory_space<vmem>>, vector<4x16xf32>
    tpu.vector_store %arg13[%c48, %c0_81], %152 {strides = array<i32>} : memref<64x16xf32, #tpu.memory_space<vmem>>, vector<4x16xf32>,
    %154 = vector.extract_strided_slice %127 {offsets = [0, 208], sizes = [4, 16], strides = [1, 1]} : vector<4x256xf32> to vector<4x16xf32>
    %c52 = arith.constant 52 : index
    %c0_82 = arith.constant 0 : index
    %155 = vector.load %arg13[%c52, %c0_82] : memref<64x16xf32, #tpu.memory_space<vmem>>, vector<4x16xf32>
    tpu.vector_store %arg13[%c52, %c0_82], %154 {strides = array<i32>} : memref<64x16xf32, #tpu.memory_space<vmem>>, vector<4x16xf32>,
    %156 = vector.extract_strided_slice %127 {offsets = [0, 224], sizes = [4, 16], strides = [1, 1]} : vector<4x256xf32> to vector<4x16xf32>
    %c56 = arith.constant 56 : index
    %c0_83 = arith.constant 0 : index
    %157 = vector.load %arg13[%c56, %c0_83] : memref<64x16xf32, #tpu.memory_space<vmem>>, vector<4x16xf32>
    tpu.vector_store %arg13[%c56, %c0_83], %156 {strides = array<i32>} : memref<64x16xf32, #tpu.memory_space<vmem>>, vector<4x16xf32>,
    %158 = vector.extract_strided_slice %127 {offsets = [0, 240], sizes = [4, 16], strides = [1, 1]} : vector<4x256xf32> to vector<4x16xf32>
    %c60 = arith.constant 60 : index
    %c0_84 = arith.constant 0 : index
    %159 = vector.load %arg13[%c60, %c0_84] : memref<64x16xf32, #tpu.memory_space<vmem>>, vector<4x16xf32>
    tpu.vector_store %arg13[%c60, %c0_84], %158 {strides = array<i32>} : memref<64x16xf32, #tpu.memory_space<vmem>>, vector<4x16xf32>,
    %c0_85 = arith.constant 0 : index
    %c0_86 = arith.constant 0 : index
    %160 = vector.load %arg13[%c0_85, %c0_86] : memref<64x16xf32, #tpu.memory_space<vmem>>, vector<64x16xf32>
    %c0_87 = arith.constant 0 : index
    %c0_88 = arith.constant 0 : index
    %161 = vector.load %arg7[%c0_87, %c0_88] : memref<16x8xf32, #tpu.memory_space<vmem>>, vector<16x8xf32>
    %cst_89 = arith.constant dense<0.000000e+00> : vector<64x8xf32>
    %162 = tpu.matmul %160, %161, %cst_89 {dimension_numbers = #tpu.dot_dimension_numbers<[1], [0], [0], [1], [0, 0, 1, 1], [], []>} : vector<64x16xf32>, vector<16x8xf32>, vector<64x8xf32> -> vector<64x8xf32>
    %163 = vector.extract_strided_slice %162 {offsets = [0, 0], sizes = [4, 8], strides = [1, 1]} : vector<64x8xf32> to vector<4x8xf32>
    %c0_90 = arith.constant 0 : index
    %c0_91 = arith.constant 0 : index
    %164 = vector.load %arg14[%c0_90, %c0_91] : memref<4x256xf32, #tpu.memory_space<vmem>>, vector<4x8xf32>
    tpu.vector_store %arg14[%c0_90, %c0_91], %163 {strides = array<i32>} : memref<4x256xf32, #tpu.memory_space<vmem>>, vector<4x8xf32>,
    %165 = vector.extract_strided_slice %162 {offsets = [8, 0], sizes = [4, 8], strides = [1, 1]} : vector<64x8xf32> to vector<4x8xf32>
    %c0_92 = arith.constant 0 : index
    %c8_93 = arith.constant 8 : index
    %166 = vector.load %arg14[%c0_92, %c8_93] : memref<4x256xf32, #tpu.memory_space<vmem>>, vector<4x8xf32>
    tpu.vector_store %arg14[%c0_92, %c8_93], %165 {strides = array<i32>} : memref<4x256xf32, #tpu.memory_space<vmem>>, vector<4x8xf32>,
    %167 = vector.extract_strided_slice %162 {offsets = [16, 0], sizes = [4, 8], strides = [1, 1]} : vector<64x8xf32> to vector<4x8xf32>
    %c0_94 = arith.constant 0 : index
    %c16_95 = arith.constant 16 : index
    %168 = vector.load %arg14[%c0_94, %c16_95] : memref<4x256xf32, #tpu.memory_space<vmem>>, vector<4x8xf32>
    tpu.vector_store %arg14[%c0_94, %c16_95], %167 {strides = array<i32>} : memref<4x256xf32, #tpu.memory_space<vmem>>, vector<4x8xf32>,
    %169 = vector.extract_strided_slice %162 {offsets = [24, 0], sizes = [4, 8], strides = [1, 1]} : vector<64x8xf32> to vector<4x8xf32>
    %c0_96 = arith.constant 0 : index
    %c24_97 = arith.constant 24 : index
    %170 = vector.load %arg14[%c0_96, %c24_97] : memref<4x256xf32, #tpu.memory_space<vmem>>, vector<4x8xf32>
    tpu.vector_store %arg14[%c0_96, %c24_97], %169 {strides = array<i32>} : memref<4x256xf32, #tpu.memory_space<vmem>>, vector<4x8xf32>,
    %171 = vector.extract_strided_slice %162 {offsets = [32, 0], sizes = [4, 8], strides = [1, 1]} : vector<64x8xf32> to vector<4x8xf32>
    %c0_98 = arith.constant 0 : index
    %c32_99 = arith.constant 32 : index
    %172 = vector.load %arg14[%c0_98, %c32_99] : memref<4x256xf32, #tpu.memory_space<vmem>>, vector<4x8xf32>
    tpu.vector_store %arg14[%c0_98, %c32_99], %171 {strides = array<i32>} : memref<4x256xf32, #tpu.memory_space<vmem>>, vector<4x8xf32>,
    %173 = vector.extract_strided_slice %162 {offsets = [40, 0], sizes = [4, 8], strides = [1, 1]} : vector<64x8xf32> to vector<4x8xf32>
    %c0_100 = arith.constant 0 : index
    %c40_101 = arith.constant 40 : index
    %174 = vector.load %arg14[%c0_100, %c40_101] : memref<4x256xf32, #tpu.memory_space<vmem>>, vector<4x8xf32>
    tpu.vector_store %arg14[%c0_100, %c40_101], %173 {strides = array<i32>} : memref<4x256xf32, #tpu.memory_space<vmem>>, vector<4x8xf32>,
    %175 = vector.extract_strided_slice %162 {offsets = [48, 0], sizes = [4, 8], strides = [1, 1]} : vector<64x8xf32> to vector<4x8xf32>
    %c0_102 = arith.constant 0 : index
    %c48_103 = arith.constant 48 : index
    %176 = vector.load %arg14[%c0_102, %c48_103] : memref<4x256xf32, #tpu.memory_space<vmem>>, vector<4x8xf32>
    tpu.vector_store %arg14[%c0_102, %c48_103], %175 {strides = array<i32>} : memref<4x256xf32, #tpu.memory_space<vmem>>, vector<4x8xf32>,
    %177 = vector.extract_strided_slice %162 {offsets = [56, 0], sizes = [4, 8], strides = [1, 1]} : vector<64x8xf32> to vector<4x8xf32>
    %c0_104 = arith.constant 0 : index
    %c56_105 = arith.constant 56 : index
    %178 = vector.load %arg14[%c0_104, %c56_105] : memref<4x256xf32, #tpu.memory_space<vmem>>, vector<4x8xf32>
    tpu.vector_store %arg14[%c0_104, %c56_105], %177 {strides = array<i32>} : memref<4x256xf32, #tpu.memory_space<vmem>>, vector<4x8xf32>,
    %c0_106 = arith.constant 0 : index
    %c0_107 = arith.constant 0 : index
    %179 = vector.load %arg14[%c0_106, %c0_107] : memref<4x256xf32, #tpu.memory_space<vmem>>, vector<4x64xf32>
    %cst_108 = arith.constant 0.000000e+00 : f32
    %180 = vector.broadcast %cst_108 : f32 to vector<4x290xf32>
    %c0_109 = arith.constant 0 : index
    %c0_110 = arith.constant 0 : index
    %181 = vector.load %arg12[%c0_109, %c0_110] : memref<4x290xf32, #tpu.memory_space<vmem>>, vector<4x290xf32>
    tpu.vector_store %arg12[%c0_109, %c0_110], %180 {strides = array<i32>} : memref<4x290xf32, #tpu.memory_space<vmem>>, vector<4x290xf32>,
    %c0_111 = arith.constant 0 : index
    %c9 = arith.constant 9 : index
    %182 = vector.load %arg12[%c0_111, %c9] : memref<4x290xf32, #tpu.memory_space<vmem>>, vector<4x64xf32>
    tpu.vector_store %arg12[%c0_111, %c9], %179 {strides = array<i32>} : memref<4x290xf32, #tpu.memory_space<vmem>>, vector<4x64xf32>,
    %183 = tpu.iota {dimensions = array<i32: 1>} : vector<1x64xi32>
    %c8_i32 = arith.constant 8 : i32
    %c0_i32_112 = arith.constant 0 : i32
    %184 = arith.cmpi eq, %c8_i32, %c0_i32_112 : i32
    %c1_i32_113 = arith.constant 1 : i32
    %185 = arith.select %184, %c1_i32_113, %c8_i32 : i32
    %186 = vector.broadcast %185 : i32 to vector<1x64xi32>
    %187 = arith.remsi %183, %186 : vector<1x64xi32>
    %c0_i32_114 = arith.constant 0 : i32
    %188 = vector.broadcast %c0_i32_114 : i32 to vector<1x64xi32>
    %189 = arith.cmpi ne, %187, %188 : vector<1x64xi32>
    %c0_i32_115 = arith.constant 0 : i32
    %190 = vector.broadcast %c0_i32_115 : i32 to vector<1x64xi32>
    %191 = arith.cmpi slt, %187, %190 : vector<1x64xi32>
    %c0_i32_116 = arith.constant 0 : i32
    %192 = arith.cmpi slt, %185, %c0_i32_116 : i32
    %193 = vector.broadcast %192 : i1 to vector<1x64xi1>
    %194 = vector.broadcast %193 : vector<1x64xi1> to vector<1x64xi1>
    %195 = arith.xori %191, %194 : vector<1x64xi1>
    %196 = arith.andi %195, %189 : vector<1x64xi1>
    %197 = vector.broadcast %185 : i32 to vector<1x64xi32>
    %198 = arith.addi %187, %197 : vector<1x64xi32>
    %199 = arith.select %196, %198, %187 : vector<1x64xi1>, vector<1x64xi32>
    %c0_i32_117 = arith.constant 0 : i32
    %200 = vector.broadcast %c0_i32_117 : i32 to vector<1x64xi32>
    %201 = arith.cmpi sgt, %199, %200 : vector<1x64xi32>
    %c7_i32 = arith.constant 7 : i32
    %202 = vector.broadcast %c7_i32 : i32 to vector<1x64xi32>
    %203 = arith.cmpi slt, %199, %202 : vector<1x64xi32>
    %cst_118 = arith.constant 0.000000e+00 : f32
    %204 = vector.broadcast %cst_118 : f32 to vector<4x64xf32>
    %c0_119 = arith.constant 0 : index
    %c0_120 = arith.constant 0 : index
    %205 = vector.load %arg12[%c0_119, %c0_120] : memref<4x290xf32, #tpu.memory_space<vmem>>, vector<4x64xf32>
    %cst_121 = arith.constant 0.000000e+00 : f32
    %206 = vector.shape_cast %201 : vector<1x64xi1> to vector<1x64xi1>
    %207 = vector.broadcast %206 : vector<1x64xi1> to vector<4x64xi1>
    %208 = vector.broadcast %cst_121 : f32 to vector<4x64xf32>
    %209 = arith.select %207, %205, %208 : vector<4x64xi1>, vector<4x64xf32>
    %c9_122 = arith.constant 9 : index
    %c0_123 = arith.constant 0 : index
    %c0_124 = arith.constant 0 : index
    %210 = vector.load %arg2[%c9_122, %c0_123, %c0_124] : memref<63x4x4xf32, #tpu.memory_space<vmem>>, vector<1x4x4xf32>
    %211 = vector.shape_cast %210 : vector<1x4x4xf32> to vector<4x4xf32>
    %212 = arith.truncf %211 : vector<4x4xf32> to vector<4x4xbf16>
    %213 = arith.truncf %209 : vector<4x64xf32> to vector<4x64xbf16>
    %cst_125 = arith.constant dense<0.000000e+00> : vector<4x64xf32>
    %214 = tpu.matmul %212, %213, %cst_125 {dimension_numbers = #tpu.dot_dimension_numbers<[1], [0], [0], [1], [0, 0, 1, 1], [], []>} : vector<4x4xbf16>, vector<4x64xbf16>, vector<4x64xf32> -> vector<4x64xf32>
    %215 = arith.addf %204, %214 : vector<4x64xf32>
    %c0_126 = arith.constant 0 : index
    %c1_127 = arith.constant 1 : index
    %216 = vector.load %arg12[%c0_126, %c1_127] : memref<4x290xf32, #tpu.memory_space<vmem>>, vector<4x64xf32>
    %c10 = arith.constant 10 : index
    %c0_128 = arith.constant 0 : index
    %c0_129 = arith.constant 0 : index
    %217 = vector.load %arg2[%c10, %c0_128, %c0_129] : memref<63x4x4xf32, #tpu.memory_space<vmem>>, vector<1x4x4xf32>
    %218 = vector.shape_cast %217 : vector<1x4x4xf32> to vector<4x4xf32>
    %219 = arith.truncf %218 : vector<4x4xf32> to vector<4x4xbf16>
    %220 = arith.truncf %216 : vector<4x64xf32> to vector<4x64xbf16>
    %cst_130 = arith.constant dense<0.000000e+00> : vector<4x64xf32>
    %221 = tpu.matmul %219, %220, %cst_130 {dimension_numbers = #tpu.dot_dimension_numbers<[1], [0], [0], [1], [0, 0, 1, 1], [], []>} : vector<4x4xbf16>, vector<4x64xbf16>, vector<4x64xf32> -> vector<4x64xf32>
    %222 = arith.addf %215, %221 : vector<4x64xf32>
    %c0_131 = arith.constant 0 : index
    %c2_132 = arith.constant 2 : index
    %223 = vector.load %arg12[%c0_131, %c2_132] : memref<4x290xf32, #tpu.memory_space<vmem>>, vector<4x64xf32>
    %cst_133 = arith.constant 0.000000e+00 : f32
    %224 = vector.shape_cast %203 : vector<1x64xi1> to vector<1x64xi1>
    %225 = vector.broadcast %224 : vector<1x64xi1> to vector<4x64xi1>
    %226 = vector.broadcast %cst_133 : f32 to vector<4x64xf32>
    %227 = arith.select %225, %223, %226 : vector<4x64xi1>, vector<4x64xf32>
    %c11 = arith.constant 11 : index
    %c0_134 = arith.constant 0 : index
    %c0_135 = arith.constant 0 : index
    %228 = vector.load %arg2[%c11, %c0_134, %c0_135] : memref<63x4x4xf32, #tpu.memory_space<vmem>>, vector<1x4x4xf32>
    %229 = vector.shape_cast %228 : vector<1x4x4xf32> to vector<4x4xf32>
    %230 = arith.truncf %229 : vector<4x4xf32> to vector<4x4xbf16>
    %231 = arith.truncf %227 : vector<4x64xf32> to vector<4x64xbf16>
    %cst_136 = arith.constant dense<0.000000e+00> : vector<4x64xf32>
    %232 = tpu.matmul %230, %231, %cst_136 {dimension_numbers = #tpu.dot_dimension_numbers<[1], [0], [0], [1], [0, 0, 1, 1], [], []>} : vector<4x4xbf16>, vector<4x64xbf16>, vector<4x64xf32> -> vector<4x64xf32>
    %233 = arith.addf %222, %232 : vector<4x64xf32>
    %c0_137 = arith.constant 0 : index
    %c8_138 = arith.constant 8 : index
    %234 = vector.load %arg12[%c0_137, %c8_138] : memref<4x290xf32, #tpu.memory_space<vmem>>, vector<4x64xf32>
    %cst_139 = arith.constant 0.000000e+00 : f32
    %235 = vector.shape_cast %201 : vector<1x64xi1> to vector<1x64xi1>
    %236 = vector.broadcast %235 : vector<1x64xi1> to vector<4x64xi1>
    %237 = vector.broadcast %cst_139 : f32 to vector<4x64xf32>
    %238 = arith.select %236, %234, %237 : vector<4x64xi1>, vector<4x64xf32>
    %c12_140 = arith.constant 12 : index
    %c0_141 = arith.constant 0 : index
    %c0_142 = arith.constant 0 : index
    %239 = vector.load %arg2[%c12_140, %c0_141, %c0_142] : memref<63x4x4xf32, #tpu.memory_space<vmem>>, vector<1x4x4xf32>
    %240 = vector.shape_cast %239 : vector<1x4x4xf32> to vector<4x4xf32>
    %241 = arith.truncf %240 : vector<4x4xf32> to vector<4x4xbf16>
    %242 = arith.truncf %238 : vector<4x64xf32> to vector<4x64xbf16>
    %cst_143 = arith.constant dense<0.000000e+00> : vector<4x64xf32>
    %243 = tpu.matmul %241, %242, %cst_143 {dimension_numbers = #tpu.dot_dimension_numbers<[1], [0], [0], [1], [0, 0, 1, 1], [], []>} : vector<4x4xbf16>, vector<4x64xbf16>, vector<4x64xf32> -> vector<4x64xf32>
    %244 = arith.addf %233, %243 : vector<4x64xf32>
    %c0_144 = arith.constant 0 : index
    %c9_145 = arith.constant 9 : index
    %245 = vector.load %arg12[%c0_144, %c9_145] : memref<4x290xf32, #tpu.memory_space<vmem>>, vector<4x64xf32>
    %c13 = arith.constant 13 : index
    %c0_146 = arith.constant 0 : index
    %c0_147 = arith.constant 0 : index
    %246 = vector.load %arg2[%c13, %c0_146, %c0_147] : memref<63x4x4xf32, #tpu.memory_space<vmem>>, vector<1x4x4xf32>
    %247 = vector.shape_cast %246 : vector<1x4x4xf32> to vector<4x4xf32>
    %248 = arith.truncf %247 : vector<4x4xf32> to vector<4x4xbf16>
    %249 = arith.truncf %245 : vector<4x64xf32> to vector<4x64xbf16>
    %cst_148 = arith.constant dense<0.000000e+00> : vector<4x64xf32>
    %250 = tpu.matmul %248, %249, %cst_148 {dimension_numbers = #tpu.dot_dimension_numbers<[1], [0], [0], [1], [0, 0, 1, 1], [], []>} : vector<4x4xbf16>, vector<4x64xbf16>, vector<4x64xf32> -> vector<4x64xf32>
    %251 = arith.addf %244, %250 : vector<4x64xf32>
    %c0_149 = arith.constant 0 : index
    %c10_150 = arith.constant 10 : index
    %252 = vector.load %arg12[%c0_149, %c10_150] : memref<4x290xf32, #tpu.memory_space<vmem>>, vector<4x64xf32>
    %cst_151 = arith.constant 0.000000e+00 : f32
    %253 = vector.shape_cast %203 : vector<1x64xi1> to vector<1x64xi1>
    %254 = vector.broadcast %253 : vector<1x64xi1> to vector<4x64xi1>
    %255 = vector.broadcast %cst_151 : f32 to vector<4x64xf32>
    %256 = arith.select %254, %252, %255 : vector<4x64xi1>, vector<4x64xf32>
    %c14 = arith.constant 14 : index
    %c0_152 = arith.constant 0 : index
    %c0_153 = arith.constant 0 : index
    %257 = vector.load %arg2[%c14, %c0_152, %c0_153] : memref<63x4x4xf32, #tpu.memory_space<vmem>>, vector<1x4x4xf32>
    %258 = vector.shape_cast %257 : vector<1x4x4xf32> to vector<4x4xf32>
    %259 = arith.truncf %258 : vector<4x4xf32> to vector<4x4xbf16>
    %260 = arith.truncf %256 : vector<4x64xf32> to vector<4x64xbf16>
    %cst_154 = arith.constant dense<0.000000e+00> : vector<4x64xf32>
    %261 = tpu.matmul %259, %260, %cst_154 {dimension_numbers = #tpu.dot_dimension_numbers<[1], [0], [0], [1], [0, 0, 1, 1], [], []>} : vector<4x4xbf16>, vector<4x64xbf16>, vector<4x64xf32> -> vector<4x64xf32>
    %262 = arith.addf %251, %261 : vector<4x64xf32>
    %c0_155 = arith.constant 0 : index
    %c16_156 = arith.constant 16 : index
    %263 = vector.load %arg12[%c0_155, %c16_156] : memref<4x290xf32, #tpu.memory_space<vmem>>, vector<4x64xf32>
    %cst_157 = arith.constant 0.000000e+00 : f32
    %264 = vector.shape_cast %201 : vector<1x64xi1> to vector<1x64xi1>
    %265 = vector.broadcast %264 : vector<1x64xi1> to vector<4x64xi1>
    %266 = vector.broadcast %cst_157 : f32 to vector<4x64xf32>
    %267 = arith.select %265, %263, %266 : vector<4x64xi1>, vector<4x64xf32>
    %c15 = arith.constant 15 : index
    %c0_158 = arith.constant 0 : index
    %c0_159 = arith.constant 0 : index
    %268 = vector.load %arg2[%c15, %c0_158, %c0_159] : memref<63x4x4xf32, #tpu.memory_space<vmem>>, vector<1x4x4xf32>
    %269 = vector.shape_cast %268 : vector<1x4x4xf32> to vector<4x4xf32>
    %270 = arith.truncf %269 : vector<4x4xf32> to vector<4x4xbf16>
    %271 = arith.truncf %267 : vector<4x64xf32> to vector<4x64xbf16>
    %cst_160 = arith.constant dense<0.000000e+00> : vector<4x64xf32>
    %272 = tpu.matmul %270, %271, %cst_160 {dimension_numbers = #tpu.dot_dimension_numbers<[1], [0], [0], [1], [0, 0, 1, 1], [], []>} : vector<4x4xbf16>, vector<4x64xbf16>, vector<4x64xf32> -> vector<4x64xf32>
    %273 = arith.addf %262, %272 : vector<4x64xf32>
    %c0_161 = arith.constant 0 : index
    %c17_162 = arith.constant 17 : index
    %274 = vector.load %arg12[%c0_161, %c17_162] : memref<4x290xf32, #tpu.memory_space<vmem>>, vector<4x64xf32>
    %c16_163 = arith.constant 16 : index
    %c0_164 = arith.constant 0 : index
    %c0_165 = arith.constant 0 : index
    %275 = vector.load %arg2[%c16_163, %c0_164, %c0_165] : memref<63x4x4xf32, #tpu.memory_space<vmem>>, vector<1x4x4xf32>
    %276 = vector.shape_cast %275 : vector<1x4x4xf32> to vector<4x4xf32>
    %277 = arith.truncf %276 : vector<4x4xf32> to vector<4x4xbf16>
    %278 = arith.truncf %274 : vector<4x64xf32> to vector<4x64xbf16>
    %cst_166 = arith.constant dense<0.000000e+00> : vector<4x64xf32>
    %279 = tpu.matmul %277, %278, %cst_166 {dimension_numbers = #tpu.dot_dimension_numbers<[1], [0], [0], [1], [0, 0, 1, 1], [], []>} : vector<4x4xbf16>, vector<4x64xbf16>, vector<4x64xf32> -> vector<4x64xf32>
    %280 = arith.addf %273, %279 : vector<4x64xf32>
    %c0_167 = arith.constant 0 : index
    %c18_168 = arith.constant 18 : index
    %281 = vector.load %arg12[%c0_167, %c18_168] : memref<4x290xf32, #tpu.memory_space<vmem>>, vector<4x64xf32>
    %cst_169 = arith.constant 0.000000e+00 : f32
    %282 = vector.shape_cast %203 : vector<1x64xi1> to vector<1x64xi1>
    %283 = vector.broadcast %282 : vector<1x64xi1> to vector<4x64xi1>
    %284 = vector.broadcast %cst_169 : f32 to vector<4x64xf32>
    %285 = arith.select %283, %281, %284 : vector<4x64xi1>, vector<4x64xf32>
    %c17_170 = arith.constant 17 : index
    %c0_171 = arith.constant 0 : index
    %c0_172 = arith.constant 0 : index
    %286 = vector.load %arg2[%c17_170, %c0_171, %c0_172] : memref<63x4x4xf32, #tpu.memory_space<vmem>>, vector<1x4x4xf32>
    %287 = vector.shape_cast %286 : vector<1x4x4xf32> to vector<4x4xf32>
    %288 = arith.truncf %287 : vector<4x4xf32> to vector<4x4xbf16>
    %289 = arith.truncf %285 : vector<4x64xf32> to vector<4x64xbf16>
    %cst_173 = arith.constant dense<0.000000e+00> : vector<4x64xf32>
    %290 = tpu.matmul %288, %289, %cst_173 {dimension_numbers = #tpu.dot_dimension_numbers<[1], [0], [0], [1], [0, 0, 1, 1], [], []>} : vector<4x4xbf16>, vector<4x64xbf16>, vector<4x64xf32> -> vector<4x64xf32>
    %291 = arith.addf %280, %290 : vector<4x64xf32>
    %c1_174 = arith.constant 1 : index
    %c0_175 = arith.constant 0 : index
    %c0_176 = arith.constant 0 : index
    %292 = vector.load %arg3[%c1_174, %c0_175, %c0_176] : memref<7x4x1xf32, #tpu.memory_space<vmem>>, vector<1x4x1xf32>
    %293 = vector.shape_cast %292 : vector<1x4x1xf32> to vector<4x1xf32>
    %294 = vector.broadcast %293 : vector<4x1xf32> to vector<4x64xf32>
    %295 = arith.mulf %291, %294 : vector<4x64xf32>
    %c1_177 = arith.constant 1 : index
    %c0_178 = arith.constant 0 : index
    %c0_179 = arith.constant 0 : index
    %296 = vector.load %arg4[%c1_177, %c0_178, %c0_179] : memref<7x4x1xf32, #tpu.memory_space<vmem>>, vector<1x4x1xf32>
    %297 = vector.shape_cast %296 : vector<1x4x1xf32> to vector<4x1xf32>
    %298 = vector.broadcast %297 : vector<4x1xf32> to vector<4x64xf32>
    %299 = arith.addf %295, %298 : vector<4x64xf32>
    %300 = arith.negf %299 : vector<4x64xf32>
    %301 = math.exp %300 : vector<4x64xf32>
    %cst_180 = arith.constant 1.000000e+00 : f32
    %302 = vector.broadcast %cst_180 : f32 to vector<4x64xf32>
    %303 = arith.addf %302, %301 : vector<4x64xf32>
    %304 = arith.divf %302, %303 : vector<4x64xf32>
    %305 = arith.mulf %299, %304 : vector<4x64xf32>
    %306 = vector.extract_strided_slice %305 {offsets = [0, 0], sizes = [4, 8], strides = [1, 1]} : vector<4x64xf32> to vector<4x8xf32>
    %c0_181 = arith.constant 0 : index
    %c0_182 = arith.constant 0 : index
    %307 = vector.load %arg13[%c0_181, %c0_182] : memref<64x16xf32, #tpu.memory_space<vmem>>, vector<4x8xf32>
    tpu.vector_store %arg13[%c0_181, %c0_182], %306 {strides = array<i32>} : memref<64x16xf32, #tpu.memory_space<vmem>>, vector<4x8xf32>,
    %308 = vector.extract_strided_slice %305 {offsets = [0, 8], sizes = [4, 8], strides = [1, 1]} : vector<4x64xf32> to vector<4x8xf32>
    %c4_183 = arith.constant 4 : index
    %c0_184 = arith.constant 0 : index
    %309 = vector.load %arg13[%c4_183, %c0_184] : memref<64x16xf32, #tpu.memory_space<vmem>>, vector<4x8xf32>
    tpu.vector_store %arg13[%c4_183, %c0_184], %308 {strides = array<i32>} : memref<64x16xf32, #tpu.memory_space<vmem>>, vector<4x8xf32>,
    %310 = vector.extract_strided_slice %305 {offsets = [0, 16], sizes = [4, 8], strides = [1, 1]} : vector<4x64xf32> to vector<4x8xf32>
    %c8_185 = arith.constant 8 : index
    %c0_186 = arith.constant 0 : index
    %311 = vector.load %arg13[%c8_185, %c0_186] : memref<64x16xf32, #tpu.memory_space<vmem>>, vector<4x8xf32>
    tpu.vector_store %arg13[%c8_185, %c0_186], %310 {strides = array<i32>} : memref<64x16xf32, #tpu.memory_space<vmem>>, vector<4x8xf32>,
    %312 = vector.extract_strided_slice %305 {offsets = [0, 24], sizes = [4, 8], strides = [1, 1]} : vector<4x64xf32> to vector<4x8xf32>
    %c12_187 = arith.constant 12 : index
    %c0_188 = arith.constant 0 : index
    %313 = vector.load %arg13[%c12_187, %c0_188] : memref<64x16xf32, #tpu.memory_space<vmem>>, vector<4x8xf32>
    tpu.vector_store %arg13[%c12_187, %c0_188], %312 {strides = array<i32>} : memref<64x16xf32, #tpu.memory_space<vmem>>, vector<4x8xf32>,
    %314 = vector.extract_strided_slice %305 {offsets = [0, 32], sizes = [4, 8], strides = [1, 1]} : vector<4x64xf32> to vector<4x8xf32>
    %c16_189 = arith.constant 16 : index
    %c0_190 = arith.constant 0 : index
    %315 = vector.load %arg13[%c16_189, %c0_190] : memref<64x16xf32, #tpu.memory_space<vmem>>, vector<4x8xf32>
    tpu.vector_store %arg13[%c16_189, %c0_190], %314 {strides = array<i32>} : memref<64x16xf32, #tpu.memory_space<vmem>>, vector<4x8xf32>,
    %316 = vector.extract_strided_slice %305 {offsets = [0, 40], sizes = [4, 8], strides = [1, 1]} : vector<4x64xf32> to vector<4x8xf32>
    %c20_191 = arith.constant 20 : index
    %c0_192 = arith.constant 0 : index
    %317 = vector.load %arg13[%c20_191, %c0_192] : memref<64x16xf32, #tpu.memory_space<vmem>>, vector<4x8xf32>
    tpu.vector_store %arg13[%c20_191, %c0_192], %316 {strides = array<i32>} : memref<64x16xf32, #tpu.memory_space<vmem>>, vector<4x8xf32>,
    %318 = vector.extract_strided_slice %305 {offsets = [0, 48], sizes = [4, 8], strides = [1, 1]} : vector<4x64xf32> to vector<4x8xf32>
    %c24_193 = arith.constant 24 : index
    %c0_194 = arith.constant 0 : index
    %319 = vector.load %arg13[%c24_193, %c0_194] : memref<64x16xf32, #tpu.memory_space<vmem>>, vector<4x8xf32>
    tpu.vector_store %arg13[%c24_193, %c0_194], %318 {strides = array<i32>} : memref<64x16xf32, #tpu.memory_space<vmem>>, vector<4x8xf32>,
    %320 = vector.extract_strided_slice %305 {offsets = [0, 56], sizes = [4, 8], strides = [1, 1]} : vector<4x64xf32> to vector<4x8xf32>
    %c28_195 = arith.constant 28 : index
    %c0_196 = arith.constant 0 : index
    %321 = vector.load %arg13[%c28_195, %c0_196] : memref<64x16xf32, #tpu.memory_space<vmem>>, vector<4x8xf32>
    tpu.vector_store %arg13[%c28_195, %c0_196], %320 {strides = array<i32>} : memref<64x16xf32, #tpu.memory_space<vmem>>, vector<4x8xf32>,
    %c0_197 = arith.constant 0 : index
    %c0_198 = arith.constant 0 : index
    %322 = vector.load %arg13[%c0_197, %c0_198] : memref<64x16xf32, #tpu.memory_space<vmem>>, vector<32x8xf32>
    %c0_199 = arith.constant 0 : index
    %c0_200 = arith.constant 0 : index
    %323 = vector.load %arg8[%c0_199, %c0_200] : memref<8x4xf32, #tpu.memory_space<vmem>>, vector<8x4xf32>
    %cst_201 = arith.constant dense<0.000000e+00> : vector<32x4xf32>
    %324 = tpu.matmul %322, %323, %cst_201 {dimension_numbers = #tpu.dot_dimension_numbers<[1], [0], [0], [1], [0, 0, 1, 1], [], []>} : vector<32x8xf32>, vector<8x4xf32>, vector<32x4xf32> -> vector<32x4xf32>
    %325 = vector.extract_strided_slice %324 {offsets = [0, 0], sizes = [4, 4], strides = [1, 1]} : vector<32x4xf32> to vector<4x4xf32>
    %c0_202 = arith.constant 0 : index
    %c0_203 = arith.constant 0 : index
    %326 = vector.load %arg14[%c0_202, %c0_203] : memref<4x256xf32, #tpu.memory_space<vmem>>, vector<4x4xf32>
    tpu.vector_store %arg14[%c0_202, %c0_203], %325 {strides = array<i32>} : memref<4x256xf32, #tpu.memory_space<vmem>>, vector<4x4xf32>,
    %327 = vector.extract_strided_slice %324 {offsets = [8, 0], sizes = [4, 4], strides = [1, 1]} : vector<32x4xf32> to vector<4x4xf32>
    %c0_204 = arith.constant 0 : index
    %c4_205 = arith.constant 4 : index
    %328 = vector.load %arg14[%c0_204, %c4_205] : memref<4x256xf32, #tpu.memory_space<vmem>>, vector<4x4xf32>
    tpu.vector_store %arg14[%c0_204, %c4_205], %327 {strides = array<i32>} : memref<4x256xf32, #tpu.memory_space<vmem>>, vector<4x4xf32>,
    %329 = vector.extract_strided_slice %324 {offsets = [16, 0], sizes = [4, 4], strides = [1, 1]} : vector<32x4xf32> to vector<4x4xf32>
    %c0_206 = arith.constant 0 : index
    %c8_207 = arith.constant 8 : index
    %330 = vector.load %arg14[%c0_206, %c8_207] : memref<4x256xf32, #tpu.memory_space<vmem>>, vector<4x4xf32>
    tpu.vector_store %arg14[%c0_206, %c8_207], %329 {strides = array<i32>} : memref<4x256xf32, #tpu.memory_space<vmem>>, vector<4x4xf32>,
    %331 = vector.extract_strided_slice %324 {offsets = [24, 0], sizes = [4, 4], strides = [1, 1]} : vector<32x4xf32> to vector<4x4xf32>
    %c0_208 = arith.constant 0 : index
    %c12_209 = arith.constant 12 : index
    %332 = vector.load %arg14[%c0_208, %c12_209] : memref<4x256xf32, #tpu.memory_space<vmem>>, vector<4x4xf32>
    tpu.vector_store %arg14[%c0_208, %c12_209], %331 {strides = array<i32>} : memref<4x256xf32, #tpu.memory_space<vmem>>, vector<4x4xf32>,
    %c0_210 = arith.constant 0 : index
    %c0_211 = arith.constant 0 : index
    %333 = vector.load %arg14[%c0_210, %c0_211] : memref<4x256xf32, #tpu.memory_space<vmem>>, vector<4x16xf32>
    %cst_212 = arith.constant 0.000000e+00 : f32
    %334 = vector.broadcast %cst_212 : f32 to vector<4x290xf32>
    %c0_213 = arith.constant 0 : index
    %c0_214 = arith.constant 0 : index
    %335 = vector.load %arg12[%c0_213, %c0_214] : memref<4x290xf32, #tpu.memory_space<vmem>>, vector<4x290xf32>
    tpu.vector_store %arg12[%c0_213, %c0_214], %334 {strides = array<i32>} : memref<4x290xf32, #tpu.memory_space<vmem>>, vector<4x290xf32>,
    %c0_215 = arith.constant 0 : index
    %c17_216 = arith.constant 17 : index
    %336 = vector.load %arg12[%c0_215, %c17_216] : memref<4x290xf32, #tpu.memory_space<vmem>>, vector<4x256xf32>
    tpu.vector_store %arg12[%c0_215, %c17_216], %1 {strides = array<i32>} : memref<4x290xf32, #tpu.memory_space<vmem>>, vector<4x256xf32>,
    %337 = tpu.iota {dimensions = array<i32: 1>} : vector<1x256xi32>
    %c16_i32_217 = arith.constant 16 : i32
    %c0_i32_218 = arith.constant 0 : i32
    %338 = arith.cmpi eq, %c16_i32_217, %c0_i32_218 : i32
    %c1_i32_219 = arith.constant 1 : i32
    %339 = arith.select %338, %c1_i32_219, %c16_i32_217 : i32
    %340 = vector.broadcast %339 : i32 to vector<1x256xi32>
    %341 = arith.remsi %337, %340 : vector<1x256xi32>
    %c0_i32_220 = arith.constant 0 : i32
    %342 = vector.broadcast %c0_i32_220 : i32 to vector<1x256xi32>
    %343 = arith.cmpi ne, %341, %342 : vector<1x256xi32>
    %c0_i32_221 = arith.constant 0 : i32
    %344 = vector.broadcast %c0_i32_221 : i32 to vector<1x256xi32>
    %345 = arith.cmpi slt, %341, %344 : vector<1x256xi32>
    %c0_i32_222 = arith.constant 0 : i32
    %346 = arith.cmpi slt, %339, %c0_i32_222 : i32
    %347 = vector.broadcast %346 : i1 to vector<1x256xi1>
    %348 = vector.broadcast %347 : vector<1x256xi1> to vector<1x256xi1>
    %349 = arith.xori %345, %348 : vector<1x256xi1>
    %350 = arith.andi %349, %343 : vector<1x256xi1>
    %351 = vector.broadcast %339 : i32 to vector<1x256xi32>
    %352 = arith.addi %341, %351 : vector<1x256xi32>
    %353 = arith.select %350, %352, %341 : vector<1x256xi1>, vector<1x256xi32>
    %c0_i32_223 = arith.constant 0 : i32
    %354 = vector.broadcast %c0_i32_223 : i32 to vector<1x256xi32>
    %355 = arith.cmpi sgt, %353, %354 : vector<1x256xi32>
    %c15_i32_224 = arith.constant 15 : i32
    %356 = vector.broadcast %c15_i32_224 : i32 to vector<1x256xi32>
    %357 = arith.cmpi slt, %353, %356 : vector<1x256xi32>
    %cst_225 = arith.constant 0.000000e+00 : f32
    %358 = vector.broadcast %cst_225 : f32 to vector<4x256xf32>
    %c0_226 = arith.constant 0 : index
    %c0_227 = arith.constant 0 : index
    %359 = vector.load %arg12[%c0_226, %c0_227] : memref<4x290xf32, #tpu.memory_space<vmem>>, vector<4x256xf32>
    %cst_228 = arith.constant 0.000000e+00 : f32
    %360 = vector.shape_cast %355 : vector<1x256xi1> to vector<1x256xi1>
    %361 = vector.broadcast %360 : vector<1x256xi1> to vector<4x256xi1>
    %362 = vector.broadcast %cst_228 : f32 to vector<4x256xf32>
    %363 = arith.select %361, %359, %362 : vector<4x256xi1>, vector<4x256xf32>
    %c18_229 = arith.constant 18 : index
    %c0_230 = arith.constant 0 : index
    %c0_231 = arith.constant 0 : index
    %364 = vector.load %arg2[%c18_229, %c0_230, %c0_231] : memref<63x4x4xf32, #tpu.memory_space<vmem>>, vector<1x4x4xf32>
    %365 = vector.shape_cast %364 : vector<1x4x4xf32> to vector<4x4xf32>
    %366 = arith.truncf %365 : vector<4x4xf32> to vector<4x4xbf16>
    %367 = arith.truncf %363 : vector<4x256xf32> to vector<4x256xbf16>
    %cst_232 = arith.constant dense<0.000000e+00> : vector<4x256xf32>
    %368 = tpu.matmul %366, %367, %cst_232 {dimension_numbers = #tpu.dot_dimension_numbers<[1], [0], [0], [1], [0, 0, 1, 1], [], []>} : vector<4x4xbf16>, vector<4x256xbf16>, vector<4x256xf32> -> vector<4x256xf32>
    %369 = arith.addf %358, %368 : vector<4x256xf32>
    %c0_233 = arith.constant 0 : index
    %c1_234 = arith.constant 1 : index
    %370 = vector.load %arg12[%c0_233, %c1_234] : memref<4x290xf32, #tpu.memory_space<vmem>>, vector<4x256xf32>
    %c19 = arith.constant 19 : index
    %c0_235 = arith.constant 0 : index
    %c0_236 = arith.constant 0 : index
    %371 = vector.load %arg2[%c19, %c0_235, %c0_236] : memref<63x4x4xf32, #tpu.memory_space<vmem>>, vector<1x4x4xf32>
    %372 = vector.shape_cast %371 : vector<1x4x4xf32> to vector<4x4xf32>
    %373 = arith.truncf %372 : vector<4x4xf32> to vector<4x4xbf16>
    %374 = arith.truncf %370 : vector<4x256xf32> to vector<4x256xbf16>
    %cst_237 = arith.constant dense<0.000000e+00> : vector<4x256xf32>
    %375 = tpu.matmul %373, %374, %cst_237 {dimension_numbers = #tpu.dot_dimension_numbers<[1], [0], [0], [1], [0, 0, 1, 1], [], []>} : vector<4x4xbf16>, vector<4x256xbf16>, vector<4x256xf32> -> vector<4x256xf32>
    %376 = arith.addf %369, %375 : vector<4x256xf32>
    %c0_238 = arith.constant 0 : index
    %c2_239 = arith.constant 2 : index
    %377 = vector.load %arg12[%c0_238, %c2_239] : memref<4x290xf32, #tpu.memory_space<vmem>>, vector<4x256xf32>
    %cst_240 = arith.constant 0.000000e+00 : f32
    %378 = vector.shape_cast %357 : vector<1x256xi1> to vector<1x256xi1>
    %379 = vector.broadcast %378 : vector<1x256xi1> to vector<4x256xi1>
    %380 = vector.broadcast %cst_240 : f32 to vector<4x256xf32>
    %381 = arith.select %379, %377, %380 : vector<4x256xi1>, vector<4x256xf32>
    %c20_241 = arith.constant 20 : index
    %c0_242 = arith.constant 0 : index
    %c0_243 = arith.constant 0 : index
    %382 = vector.load %arg2[%c20_241, %c0_242, %c0_243] : memref<63x4x4xf32, #tpu.memory_space<vmem>>, vector<1x4x4xf32>
    %383 = vector.shape_cast %382 : vector<1x4x4xf32> to vector<4x4xf32>
    %384 = arith.truncf %383 : vector<4x4xf32> to vector<4x4xbf16>
    %385 = arith.truncf %381 : vector<4x256xf32> to vector<4x256xbf16>
    %cst_244 = arith.constant dense<0.000000e+00> : vector<4x256xf32>
    %386 = tpu.matmul %384, %385, %cst_244 {dimension_numbers = #tpu.dot_dimension_numbers<[1], [0], [0], [1], [0, 0, 1, 1], [], []>} : vector<4x4xbf16>, vector<4x256xbf16>, vector<4x256xf32> -> vector<4x256xf32>
    %387 = arith.addf %376, %386 : vector<4x256xf32>
    %c0_245 = arith.constant 0 : index
    %c16_246 = arith.constant 16 : index
    %388 = vector.load %arg12[%c0_245, %c16_246] : memref<4x290xf32, #tpu.memory_space<vmem>>, vector<4x256xf32>
    %cst_247 = arith.constant 0.000000e+00 : f32
    %389 = vector.shape_cast %355 : vector<1x256xi1> to vector<1x256xi1>
    %390 = vector.broadcast %389 : vector<1x256xi1> to vector<4x256xi1>
    %391 = vector.broadcast %cst_247 : f32 to vector<4x256xf32>
    %392 = arith.select %390, %388, %391 : vector<4x256xi1>, vector<4x256xf32>
    %c21 = arith.constant 21 : index
    %c0_248 = arith.constant 0 : index
    %c0_249 = arith.constant 0 : index
    %393 = vector.load %arg2[%c21, %c0_248, %c0_249] : memref<63x4x4xf32, #tpu.memory_space<vmem>>, vector<1x4x4xf32>
    %394 = vector.shape_cast %393 : vector<1x4x4xf32> to vector<4x4xf32>
    %395 = arith.truncf %394 : vector<4x4xf32> to vector<4x4xbf16>
    %396 = arith.truncf %392 : vector<4x256xf32> to vector<4x256xbf16>
    %cst_250 = arith.constant dense<0.000000e+00> : vector<4x256xf32>
    %397 = tpu.matmul %395, %396, %cst_250 {dimension_numbers = #tpu.dot_dimension_numbers<[1], [0], [0], [1], [0, 0, 1, 1], [], []>} : vector<4x4xbf16>, vector<4x256xbf16>, vector<4x256xf32> -> vector<4x256xf32>
    %398 = arith.addf %387, %397 : vector<4x256xf32>
    %c0_251 = arith.constant 0 : index
    %c17_252 = arith.constant 17 : index
    %399 = vector.load %arg12[%c0_251, %c17_252] : memref<4x290xf32, #tpu.memory_space<vmem>>, vector<4x256xf32>
    %c22 = arith.constant 22 : index
    %c0_253 = arith.constant 0 : index
    %c0_254 = arith.constant 0 : index
    %400 = vector.load %arg2[%c22, %c0_253, %c0_254] : memref<63x4x4xf32, #tpu.memory_space<vmem>>, vector<1x4x4xf32>
    %401 = vector.shape_cast %400 : vector<1x4x4xf32> to vector<4x4xf32>
    %402 = arith.truncf %401 : vector<4x4xf32> to vector<4x4xbf16>
    %403 = arith.truncf %399 : vector<4x256xf32> to vector<4x256xbf16>
    %cst_255 = arith.constant dense<0.000000e+00> : vector<4x256xf32>
    %404 = tpu.matmul %402, %403, %cst_255 {dimension_numbers = #tpu.dot_dimension_numbers<[1], [0], [0], [1], [0, 0, 1, 1], [], []>} : vector<4x4xbf16>, vector<4x256xbf16>, vector<4x256xf32> -> vector<4x256xf32>
    %405 = arith.addf %398, %404 : vector<4x256xf32>
    %c0_256 = arith.constant 0 : index
    %c18_257 = arith.constant 18 : index
    %406 = vector.load %arg12[%c0_256, %c18_257] : memref<4x290xf32, #tpu.memory_space<vmem>>, vector<4x256xf32>
    %cst_258 = arith.constant 0.000000e+00 : f32
    %407 = vector.shape_cast %357 : vector<1x256xi1> to vector<1x256xi1>
    %408 = vector.broadcast %407 : vector<1x256xi1> to vector<4x256xi1>
    %409 = vector.broadcast %cst_258 : f32 to vector<4x256xf32>
    %410 = arith.select %408, %406, %409 : vector<4x256xi1>, vector<4x256xf32>
    %c23 = arith.constant 23 : index
    %c0_259 = arith.constant 0 : index
    %c0_260 = arith.constant 0 : index
    %411 = vector.load %arg2[%c23, %c0_259, %c0_260] : memref<63x4x4xf32, #tpu.memory_space<vmem>>, vector<1x4x4xf32>
    %412 = vector.shape_cast %411 : vector<1x4x4xf32> to vector<4x4xf32>
    %413 = arith.truncf %412 : vector<4x4xf32> to vector<4x4xbf16>
    %414 = arith.truncf %410 : vector<4x256xf32> to vector<4x256xbf16>
    %cst_261 = arith.constant dense<0.000000e+00> : vector<4x256xf32>
    %415 = tpu.matmul %413, %414, %cst_261 {dimension_numbers = #tpu.dot_dimension_numbers<[1], [0], [0], [1], [0, 0, 1, 1], [], []>} : vector<4x4xbf16>, vector<4x256xbf16>, vector<4x256xf32> -> vector<4x256xf32>
    %416 = arith.addf %405, %415 : vector<4x256xf32>
    %c0_262 = arith.constant 0 : index
    %c32_263 = arith.constant 32 : index
    %417 = vector.load %arg12[%c0_262, %c32_263] : memref<4x290xf32, #tpu.memory_space<vmem>>, vector<4x256xf32>
    %cst_264 = arith.constant 0.000000e+00 : f32
    %418 = vector.shape_cast %355 : vector<1x256xi1> to vector<1x256xi1>
    %419 = vector.broadcast %418 : vector<1x256xi1> to vector<4x256xi1>
    %420 = vector.broadcast %cst_264 : f32 to vector<4x256xf32>
    %421 = arith.select %419, %417, %420 : vector<4x256xi1>, vector<4x256xf32>
    %c24_265 = arith.constant 24 : index
    %c0_266 = arith.constant 0 : index
    %c0_267 = arith.constant 0 : index
    %422 = vector.load %arg2[%c24_265, %c0_266, %c0_267] : memref<63x4x4xf32, #tpu.memory_space<vmem>>, vector<1x4x4xf32>
    %423 = vector.shape_cast %422 : vector<1x4x4xf32> to vector<4x4xf32>
    %424 = arith.truncf %423 : vector<4x4xf32> to vector<4x4xbf16>
    %425 = arith.truncf %421 : vector<4x256xf32> to vector<4x256xbf16>
    %cst_268 = arith.constant dense<0.000000e+00> : vector<4x256xf32>
    %426 = tpu.matmul %424, %425, %cst_268 {dimension_numbers = #tpu.dot_dimension_numbers<[1], [0], [0], [1], [0, 0, 1, 1], [], []>} : vector<4x4xbf16>, vector<4x256xbf16>, vector<4x256xf32> -> vector<4x256xf32>
    %427 = arith.addf %416, %426 : vector<4x256xf32>
    %c0_269 = arith.constant 0 : index
    %c33_270 = arith.constant 33 : index
    %428 = vector.load %arg12[%c0_269, %c33_270] : memref<4x290xf32, #tpu.memory_space<vmem>>, vector<4x256xf32>
    %c25 = arith.constant 25 : index
    %c0_271 = arith.constant 0 : index
    %c0_272 = arith.constant 0 : index
    %429 = vector.load %arg2[%c25, %c0_271, %c0_272] : memref<63x4x4xf32, #tpu.memory_space<vmem>>, vector<1x4x4xf32>
    %430 = vector.shape_cast %429 : vector<1x4x4xf32> to vector<4x4xf32>
    %431 = arith.truncf %430 : vector<4x4xf32> to vector<4x4xbf16>
    %432 = arith.truncf %428 : vector<4x256xf32> to vector<4x256xbf16>
    %cst_273 = arith.constant dense<0.000000e+00> : vector<4x256xf32>
    %433 = tpu.matmul %431, %432, %cst_273 {dimension_numbers = #tpu.dot_dimension_numbers<[1], [0], [0], [1], [0, 0, 1, 1], [], []>} : vector<4x4xbf16>, vector<4x256xbf16>, vector<4x256xf32> -> vector<4x256xf32>
    %434 = arith.addf %427, %433 : vector<4x256xf32>
    %c0_274 = arith.constant 0 : index
    %c34_275 = arith.constant 34 : index
    %435 = vector.load %arg12[%c0_274, %c34_275] : memref<4x290xf32, #tpu.memory_space<vmem>>, vector<4x256xf32>
    %cst_276 = arith.constant 0.000000e+00 : f32
    %436 = vector.shape_cast %357 : vector<1x256xi1> to vector<1x256xi1>
    %437 = vector.broadcast %436 : vector<1x256xi1> to vector<4x256xi1>
    %438 = vector.broadcast %cst_276 : f32 to vector<4x256xf32>
    %439 = arith.select %437, %435, %438 : vector<4x256xi1>, vector<4x256xf32>
    %c26 = arith.constant 26 : index
    %c0_277 = arith.constant 0 : index
    %c0_278 = arith.constant 0 : index
    %440 = vector.load %arg2[%c26, %c0_277, %c0_278] : memref<63x4x4xf32, #tpu.memory_space<vmem>>, vector<1x4x4xf32>
    %441 = vector.shape_cast %440 : vector<1x4x4xf32> to vector<4x4xf32>
    %442 = arith.truncf %441 : vector<4x4xf32> to vector<4x4xbf16>
    %443 = arith.truncf %439 : vector<4x256xf32> to vector<4x256xbf16>
    %cst_279 = arith.constant dense<0.000000e+00> : vector<4x256xf32>
    %444 = tpu.matmul %442, %443, %cst_279 {dimension_numbers = #tpu.dot_dimension_numbers<[1], [0], [0], [1], [0, 0, 1, 1], [], []>} : vector<4x4xbf16>, vector<4x256xbf16>, vector<4x256xf32> -> vector<4x256xf32>
    %445 = arith.addf %434, %444 : vector<4x256xf32>
    %c2_280 = arith.constant 2 : index
    %c0_281 = arith.constant 0 : index
    %c0_282 = arith.constant 0 : index
    %446 = vector.load %arg3[%c2_280, %c0_281, %c0_282] : memref<7x4x1xf32, #tpu.memory_space<vmem>>, vector<1x4x1xf32>
    %447 = vector.shape_cast %446 : vector<1x4x1xf32> to vector<4x1xf32>
    %448 = vector.broadcast %447 : vector<4x1xf32> to vector<4x256xf32>
    %449 = arith.mulf %445, %448 : vector<4x256xf32>
    %c2_283 = arith.constant 2 : index
    %c0_284 = arith.constant 0 : index
    %c0_285 = arith.constant 0 : index
    %450 = vector.load %arg4[%c2_283, %c0_284, %c0_285] : memref<7x4x1xf32, #tpu.memory_space<vmem>>, vector<1x4x1xf32>
    %451 = vector.shape_cast %450 : vector<1x4x1xf32> to vector<4x1xf32>
    %452 = vector.broadcast %451 : vector<4x1xf32> to vector<4x256xf32>
    %453 = arith.addf %449, %452 : vector<4x256xf32>
    %454 = arith.negf %453 : vector<4x256xf32>
    %455 = math.exp %454 : vector<4x256xf32>
    %cst_286 = arith.constant 1.000000e+00 : f32
    %456 = vector.broadcast %cst_286 : f32 to vector<4x256xf32>
    %457 = arith.addf %456, %455 : vector<4x256xf32>
    %458 = arith.divf %456, %457 : vector<4x256xf32>
    %459 = arith.mulf %453, %458 : vector<4x256xf32>
    %c2_287 = arith.constant 2 : index
    %c0_288 = arith.constant 0 : index
    %c0_289 = arith.constant 0 : index
    %460 = vector.load %arg5[%c2_287, %c0_288, %c0_289] : memref<7x4x1xf32, #tpu.memory_space<vmem>>, vector<1x4x1xf32>
    %461 = vector.shape_cast %460 : vector<1x4x1xf32> to vector<4x1xf32>
    %462 = vector.broadcast %461 : vector<4x1xf32> to vector<4x256xf32>
    %463 = arith.mulf %459, %462 : vector<4x256xf32>
    %c2_290 = arith.constant 2 : index
    %c0_291 = arith.constant 0 : index
    %c0_292 = arith.constant 0 : index
    %464 = vector.load %arg6[%c2_290, %c0_291, %c0_292] : memref<7x4x1xf32, #tpu.memory_space<vmem>>, vector<1x4x1xf32>
    %465 = vector.shape_cast %464 : vector<1x4x1xf32> to vector<4x1xf32>
    %466 = vector.broadcast %465 : vector<4x1xf32> to vector<4x256xf32>
    %467 = arith.addf %463, %466 : vector<4x256xf32>
    %cst_293 = arith.constant 0.000000e+00 : f32
    %468 = vector.broadcast %cst_293 : f32 to vector<4x256xf32>
    %469 = arith.maximumf %467, %468 : vector<4x256xf32>
    %cst_294 = arith.constant 0.000000e+00 : f32
    %470 = vector.broadcast %cst_294 : f32 to vector<4x290xf32>
    %c0_295 = arith.constant 0 : index
    %c0_296 = arith.constant 0 : index
    %471 = vector.load %arg12[%c0_295, %c0_296] : memref<4x290xf32, #tpu.memory_space<vmem>>, vector<4x290xf32>
    tpu.vector_store %arg12[%c0_295, %c0_296], %470 {strides = array<i32>} : memref<4x290xf32, #tpu.memory_space<vmem>>, vector<4x290xf32>,
    %c0_297 = arith.constant 0 : index
    %c9_298 = arith.constant 9 : index
    %472 = vector.load %arg12[%c0_297, %c9_298] : memref<4x290xf32, #tpu.memory_space<vmem>>, vector<4x64xf32>
    tpu.vector_store %arg12[%c0_297, %c9_298], %179 {strides = array<i32>} : memref<4x290xf32, #tpu.memory_space<vmem>>, vector<4x64xf32>,
    %473 = tpu.iota {dimensions = array<i32: 1>} : vector<1x64xi32>
    %c8_i32_299 = arith.constant 8 : i32
    %c0_i32_300 = arith.constant 0 : i32
    %474 = arith.cmpi eq, %c8_i32_299, %c0_i32_300 : i32
    %c1_i32_301 = arith.constant 1 : i32
    %475 = arith.select %474, %c1_i32_301, %c8_i32_299 : i32
    %476 = vector.broadcast %475 : i32 to vector<1x64xi32>
    %477 = arith.remsi %473, %476 : vector<1x64xi32>
    %c0_i32_302 = arith.constant 0 : i32
    %478 = vector.broadcast %c0_i32_302 : i32 to vector<1x64xi32>
    %479 = arith.cmpi ne, %477, %478 : vector<1x64xi32>
    %c0_i32_303 = arith.constant 0 : i32
    %480 = vector.broadcast %c0_i32_303 : i32 to vector<1x64xi32>
    %481 = arith.cmpi slt, %477, %480 : vector<1x64xi32>
    %c0_i32_304 = arith.constant 0 : i32
    %482 = arith.cmpi slt, %475, %c0_i32_304 : i32
    %483 = vector.broadcast %482 : i1 to vector<1x64xi1>
    %484 = vector.broadcast %483 : vector<1x64xi1> to vector<1x64xi1>
    %485 = arith.xori %481, %484 : vector<1x64xi1>
    %486 = arith.andi %485, %479 : vector<1x64xi1>
    %487 = vector.broadcast %475 : i32 to vector<1x64xi32>
    %488 = arith.addi %477, %487 : vector<1x64xi32>
    %489 = arith.select %486, %488, %477 : vector<1x64xi1>, vector<1x64xi32>
    %c0_i32_305 = arith.constant 0 : i32
    %490 = vector.broadcast %c0_i32_305 : i32 to vector<1x64xi32>
    %491 = arith.cmpi sgt, %489, %490 : vector<1x64xi32>
    %c7_i32_306 = arith.constant 7 : i32
    %492 = vector.broadcast %c7_i32_306 : i32 to vector<1x64xi32>
    %493 = arith.cmpi slt, %489, %492 : vector<1x64xi32>
    %cst_307 = arith.constant 0.000000e+00 : f32
    %494 = vector.broadcast %cst_307 : f32 to vector<4x64xf32>
    %c0_308 = arith.constant 0 : index
    %c0_309 = arith.constant 0 : index
    %495 = vector.load %arg12[%c0_308, %c0_309] : memref<4x290xf32, #tpu.memory_space<vmem>>, vector<4x64xf32>
    %cst_310 = arith.constant 0.000000e+00 : f32
    %496 = vector.shape_cast %491 : vector<1x64xi1> to vector<1x64xi1>
    %497 = vector.broadcast %496 : vector<1x64xi1> to vector<4x64xi1>
    %498 = vector.broadcast %cst_310 : f32 to vector<4x64xf32>
    %499 = arith.select %497, %495, %498 : vector<4x64xi1>, vector<4x64xf32>
    %c27 = arith.constant 27 : index
    %c0_311 = arith.constant 0 : index
    %c0_312 = arith.constant 0 : index
    %500 = vector.load %arg2[%c27, %c0_311, %c0_312] : memref<63x4x4xf32, #tpu.memory_space<vmem>>, vector<1x4x4xf32>
    %501 = vector.shape_cast %500 : vector<1x4x4xf32> to vector<4x4xf32>
    %502 = arith.truncf %501 : vector<4x4xf32> to vector<4x4xbf16>
    %503 = arith.truncf %499 : vector<4x64xf32> to vector<4x64xbf16>
    %cst_313 = arith.constant dense<0.000000e+00> : vector<4x64xf32>
    %504 = tpu.matmul %502, %503, %cst_313 {dimension_numbers = #tpu.dot_dimension_numbers<[1], [0], [0], [1], [0, 0, 1, 1], [], []>} : vector<4x4xbf16>, vector<4x64xbf16>, vector<4x64xf32> -> vector<4x64xf32>
    %505 = arith.addf %494, %504 : vector<4x64xf32>
    %c0_314 = arith.constant 0 : index
    %c1_315 = arith.constant 1 : index
    %506 = vector.load %arg12[%c0_314, %c1_315] : memref<4x290xf32, #tpu.memory_space<vmem>>, vector<4x64xf32>
    %c28_316 = arith.constant 28 : index
    %c0_317 = arith.constant 0 : index
    %c0_318 = arith.constant 0 : index
    %507 = vector.load %arg2[%c28_316, %c0_317, %c0_318] : memref<63x4x4xf32, #tpu.memory_space<vmem>>, vector<1x4x4xf32>
    %508 = vector.shape_cast %507 : vector<1x4x4xf32> to vector<4x4xf32>
    %509 = arith.truncf %508 : vector<4x4xf32> to vector<4x4xbf16>
    %510 = arith.truncf %506 : vector<4x64xf32> to vector<4x64xbf16>
    %cst_319 = arith.constant dense<0.000000e+00> : vector<4x64xf32>
    %511 = tpu.matmul %509, %510, %cst_319 {dimension_numbers = #tpu.dot_dimension_numbers<[1], [0], [0], [1], [0, 0, 1, 1], [], []>} : vector<4x4xbf16>, vector<4x64xbf16>, vector<4x64xf32> -> vector<4x64xf32>
    %512 = arith.addf %505, %511 : vector<4x64xf32>
    %c0_320 = arith.constant 0 : index
    %c2_321 = arith.constant 2 : index
    %513 = vector.load %arg12[%c0_320, %c2_321] : memref<4x290xf32, #tpu.memory_space<vmem>>, vector<4x64xf32>
    %cst_322 = arith.constant 0.000000e+00 : f32
    %514 = vector.shape_cast %493 : vector<1x64xi1> to vector<1x64xi1>
    %515 = vector.broadcast %514 : vector<1x64xi1> to vector<4x64xi1>
    %516 = vector.broadcast %cst_322 : f32 to vector<4x64xf32>
    %517 = arith.select %515, %513, %516 : vector<4x64xi1>, vector<4x64xf32>
    %c29 = arith.constant 29 : index
    %c0_323 = arith.constant 0 : index
    %c0_324 = arith.constant 0 : index
    %518 = vector.load %arg2[%c29, %c0_323, %c0_324] : memref<63x4x4xf32, #tpu.memory_space<vmem>>, vector<1x4x4xf32>
    %519 = vector.shape_cast %518 : vector<1x4x4xf32> to vector<4x4xf32>
    %520 = arith.truncf %519 : vector<4x4xf32> to vector<4x4xbf16>
    %521 = arith.truncf %517 : vector<4x64xf32> to vector<4x64xbf16>
    %cst_325 = arith.constant dense<0.000000e+00> : vector<4x64xf32>
    %522 = tpu.matmul %520, %521, %cst_325 {dimension_numbers = #tpu.dot_dimension_numbers<[1], [0], [0], [1], [0, 0, 1, 1], [], []>} : vector<4x4xbf16>, vector<4x64xbf16>, vector<4x64xf32> -> vector<4x64xf32>
    %523 = arith.addf %512, %522 : vector<4x64xf32>
    %c0_326 = arith.constant 0 : index
    %c8_327 = arith.constant 8 : index
    %524 = vector.load %arg12[%c0_326, %c8_327] : memref<4x290xf32, #tpu.memory_space<vmem>>, vector<4x64xf32>
    %cst_328 = arith.constant 0.000000e+00 : f32
    %525 = vector.shape_cast %491 : vector<1x64xi1> to vector<1x64xi1>
    %526 = vector.broadcast %525 : vector<1x64xi1> to vector<4x64xi1>
    %527 = vector.broadcast %cst_328 : f32 to vector<4x64xf32>
    %528 = arith.select %526, %524, %527 : vector<4x64xi1>, vector<4x64xf32>
    %c30 = arith.constant 30 : index
    %c0_329 = arith.constant 0 : index
    %c0_330 = arith.constant 0 : index
    %529 = vector.load %arg2[%c30, %c0_329, %c0_330] : memref<63x4x4xf32, #tpu.memory_space<vmem>>, vector<1x4x4xf32>
    %530 = vector.shape_cast %529 : vector<1x4x4xf32> to vector<4x4xf32>
    %531 = arith.truncf %530 : vector<4x4xf32> to vector<4x4xbf16>
    %532 = arith.truncf %528 : vector<4x64xf32> to vector<4x64xbf16>
    %cst_331 = arith.constant dense<0.000000e+00> : vector<4x64xf32>
    %533 = tpu.matmul %531, %532, %cst_331 {dimension_numbers = #tpu.dot_dimension_numbers<[1], [0], [0], [1], [0, 0, 1, 1], [], []>} : vector<4x4xbf16>, vector<4x64xbf16>, vector<4x64xf32> -> vector<4x64xf32>
    %534 = arith.addf %523, %533 : vector<4x64xf32>
    %c0_332 = arith.constant 0 : index
    %c9_333 = arith.constant 9 : index
    %535 = vector.load %arg12[%c0_332, %c9_333] : memref<4x290xf32, #tpu.memory_space<vmem>>, vector<4x64xf32>
    %c31 = arith.constant 31 : index
    %c0_334 = arith.constant 0 : index
    %c0_335 = arith.constant 0 : index
    %536 = vector.load %arg2[%c31, %c0_334, %c0_335] : memref<63x4x4xf32, #tpu.memory_space<vmem>>, vector<1x4x4xf32>
    %537 = vector.shape_cast %536 : vector<1x4x4xf32> to vector<4x4xf32>
    %538 = arith.truncf %537 : vector<4x4xf32> to vector<4x4xbf16>
    %539 = arith.truncf %535 : vector<4x64xf32> to vector<4x64xbf16>
    %cst_336 = arith.constant dense<0.000000e+00> : vector<4x64xf32>
    %540 = tpu.matmul %538, %539, %cst_336 {dimension_numbers = #tpu.dot_dimension_numbers<[1], [0], [0], [1], [0, 0, 1, 1], [], []>} : vector<4x4xbf16>, vector<4x64xbf16>, vector<4x64xf32> -> vector<4x64xf32>
    %541 = arith.addf %534, %540 : vector<4x64xf32>
    %c0_337 = arith.constant 0 : index
    %c10_338 = arith.constant 10 : index
    %542 = vector.load %arg12[%c0_337, %c10_338] : memref<4x290xf32, #tpu.memory_space<vmem>>, vector<4x64xf32>
    %cst_339 = arith.constant 0.000000e+00 : f32
    %543 = vector.shape_cast %493 : vector<1x64xi1> to vector<1x64xi1>
    %544 = vector.broadcast %543 : vector<1x64xi1> to vector<4x64xi1>
    %545 = vector.broadcast %cst_339 : f32 to vector<4x64xf32>
    %546 = arith.select %544, %542, %545 : vector<4x64xi1>, vector<4x64xf32>
    %c32_340 = arith.constant 32 : index
    %c0_341 = arith.constant 0 : index
    %c0_342 = arith.constant 0 : index
    %547 = vector.load %arg2[%c32_340, %c0_341, %c0_342] : memref<63x4x4xf32, #tpu.memory_space<vmem>>, vector<1x4x4xf32>
    %548 = vector.shape_cast %547 : vector<1x4x4xf32> to vector<4x4xf32>
    %549 = arith.truncf %548 : vector<4x4xf32> to vector<4x4xbf16>
    %550 = arith.truncf %546 : vector<4x64xf32> to vector<4x64xbf16>
    %cst_343 = arith.constant dense<0.000000e+00> : vector<4x64xf32>
    %551 = tpu.matmul %549, %550, %cst_343 {dimension_numbers = #tpu.dot_dimension_numbers<[1], [0], [0], [1], [0, 0, 1, 1], [], []>} : vector<4x4xbf16>, vector<4x64xbf16>, vector<4x64xf32> -> vector<4x64xf32>
    %552 = arith.addf %541, %551 : vector<4x64xf32>
    %c0_344 = arith.constant 0 : index
    %c16_345 = arith.constant 16 : index
    %553 = vector.load %arg12[%c0_344, %c16_345] : memref<4x290xf32, #tpu.memory_space<vmem>>, vector<4x64xf32>
    %cst_346 = arith.constant 0.000000e+00 : f32
    %554 = vector.shape_cast %491 : vector<1x64xi1> to vector<1x64xi1>
    %555 = vector.broadcast %554 : vector<1x64xi1> to vector<4x64xi1>
    %556 = vector.broadcast %cst_346 : f32 to vector<4x64xf32>
    %557 = arith.select %555, %553, %556 : vector<4x64xi1>, vector<4x64xf32>
    %c33_347 = arith.constant 33 : index
    %c0_348 = arith.constant 0 : index
    %c0_349 = arith.constant 0 : index
    %558 = vector.load %arg2[%c33_347, %c0_348, %c0_349] : memref<63x4x4xf32, #tpu.memory_space<vmem>>, vector<1x4x4xf32>
    %559 = vector.shape_cast %558 : vector<1x4x4xf32> to vector<4x4xf32>
    %560 = arith.truncf %559 : vector<4x4xf32> to vector<4x4xbf16>
    %561 = arith.truncf %557 : vector<4x64xf32> to vector<4x64xbf16>
    %cst_350 = arith.constant dense<0.000000e+00> : vector<4x64xf32>
    %562 = tpu.matmul %560, %561, %cst_350 {dimension_numbers = #tpu.dot_dimension_numbers<[1], [0], [0], [1], [0, 0, 1, 1], [], []>} : vector<4x4xbf16>, vector<4x64xbf16>, vector<4x64xf32> -> vector<4x64xf32>
    %563 = arith.addf %552, %562 : vector<4x64xf32>
    %c0_351 = arith.constant 0 : index
    %c17_352 = arith.constant 17 : index
    %564 = vector.load %arg12[%c0_351, %c17_352] : memref<4x290xf32, #tpu.memory_space<vmem>>, vector<4x64xf32>
    %c34_353 = arith.constant 34 : index
    %c0_354 = arith.constant 0 : index
    %c0_355 = arith.constant 0 : index
    %565 = vector.load %arg2[%c34_353, %c0_354, %c0_355] : memref<63x4x4xf32, #tpu.memory_space<vmem>>, vector<1x4x4xf32>
    %566 = vector.shape_cast %565 : vector<1x4x4xf32> to vector<4x4xf32>
    %567 = arith.truncf %566 : vector<4x4xf32> to vector<4x4xbf16>
    %568 = arith.truncf %564 : vector<4x64xf32> to vector<4x64xbf16>
    %cst_356 = arith.constant dense<0.000000e+00> : vector<4x64xf32>
    %569 = tpu.matmul %567, %568, %cst_356 {dimension_numbers = #tpu.dot_dimension_numbers<[1], [0], [0], [1], [0, 0, 1, 1], [], []>} : vector<4x4xbf16>, vector<4x64xbf16>, vector<4x64xf32> -> vector<4x64xf32>
    %570 = arith.addf %563, %569 : vector<4x64xf32>
    %c0_357 = arith.constant 0 : index
    %c18_358 = arith.constant 18 : index
    %571 = vector.load %arg12[%c0_357, %c18_358] : memref<4x290xf32, #tpu.memory_space<vmem>>, vector<4x64xf32>
    %cst_359 = arith.constant 0.000000e+00 : f32
    %572 = vector.shape_cast %493 : vector<1x64xi1> to vector<1x64xi1>
    %573 = vector.broadcast %572 : vector<1x64xi1> to vector<4x64xi1>
    %574 = vector.broadcast %cst_359 : f32 to vector<4x64xf32>
    %575 = arith.select %573, %571, %574 : vector<4x64xi1>, vector<4x64xf32>
    %c35 = arith.constant 35 : index
    %c0_360 = arith.constant 0 : index
    %c0_361 = arith.constant 0 : index
    %576 = vector.load %arg2[%c35, %c0_360, %c0_361] : memref<63x4x4xf32, #tpu.memory_space<vmem>>, vector<1x4x4xf32>
    %577 = vector.shape_cast %576 : vector<1x4x4xf32> to vector<4x4xf32>
    %578 = arith.truncf %577 : vector<4x4xf32> to vector<4x4xbf16>
    %579 = arith.truncf %575 : vector<4x64xf32> to vector<4x64xbf16>
    %cst_362 = arith.constant dense<0.000000e+00> : vector<4x64xf32>
    %580 = tpu.matmul %578, %579, %cst_362 {dimension_numbers = #tpu.dot_dimension_numbers<[1], [0], [0], [1], [0, 0, 1, 1], [], []>} : vector<4x4xbf16>, vector<4x64xbf16>, vector<4x64xf32> -> vector<4x64xf32>
    %581 = arith.addf %570, %580 : vector<4x64xf32>
    %c3_363 = arith.constant 3 : index
    %c0_364 = arith.constant 0 : index
    %c0_365 = arith.constant 0 : index
    %582 = vector.load %arg3[%c3_363, %c0_364, %c0_365] : memref<7x4x1xf32, #tpu.memory_space<vmem>>, vector<1x4x1xf32>
    %583 = vector.shape_cast %582 : vector<1x4x1xf32> to vector<4x1xf32>
    %584 = vector.broadcast %583 : vector<4x1xf32> to vector<4x64xf32>
    %585 = arith.mulf %581, %584 : vector<4x64xf32>
    %c3_366 = arith.constant 3 : index
    %c0_367 = arith.constant 0 : index
    %c0_368 = arith.constant 0 : index
    %586 = vector.load %arg4[%c3_366, %c0_367, %c0_368] : memref<7x4x1xf32, #tpu.memory_space<vmem>>, vector<1x4x1xf32>
    %587 = vector.shape_cast %586 : vector<1x4x1xf32> to vector<4x1xf32>
    %588 = vector.broadcast %587 : vector<4x1xf32> to vector<4x64xf32>
    %589 = arith.addf %585, %588 : vector<4x64xf32>
    %590 = arith.negf %589 : vector<4x64xf32>
    %591 = math.exp %590 : vector<4x64xf32>
    %cst_369 = arith.constant 1.000000e+00 : f32
    %592 = vector.broadcast %cst_369 : f32 to vector<4x64xf32>
    %593 = arith.addf %592, %591 : vector<4x64xf32>
    %594 = arith.divf %592, %593 : vector<4x64xf32>
    %595 = arith.mulf %589, %594 : vector<4x64xf32>
    %c3_370 = arith.constant 3 : index
    %c0_371 = arith.constant 0 : index
    %c0_372 = arith.constant 0 : index
    %596 = vector.load %arg5[%c3_370, %c0_371, %c0_372] : memref<7x4x1xf32, #tpu.memory_space<vmem>>, vector<1x4x1xf32>
    %597 = vector.shape_cast %596 : vector<1x4x1xf32> to vector<4x1xf32>
    %598 = vector.broadcast %597 : vector<4x1xf32> to vector<4x64xf32>
    %599 = arith.mulf %595, %598 : vector<4x64xf32>
    %c3_373 = arith.constant 3 : index
    %c0_374 = arith.constant 0 : index
    %c0_375 = arith.constant 0 : index
    %600 = vector.load %arg6[%c3_373, %c0_374, %c0_375] : memref<7x4x1xf32, #tpu.memory_space<vmem>>, vector<1x4x1xf32>
    %601 = vector.shape_cast %600 : vector<1x4x1xf32> to vector<4x1xf32>
    %602 = vector.broadcast %601 : vector<4x1xf32> to vector<4x64xf32>
    %603 = arith.addf %599, %602 : vector<4x64xf32>
    %cst_376 = arith.constant 0.000000e+00 : f32
    %604 = vector.broadcast %cst_376 : f32 to vector<4x64xf32>
    %605 = arith.maximumf %603, %604 : vector<4x64xf32>
    %cst_377 = arith.constant 0.000000e+00 : f32
    %606 = vector.broadcast %cst_377 : f32 to vector<4x290xf32>
    %c0_378 = arith.constant 0 : index
    %c0_379 = arith.constant 0 : index
    %607 = vector.load %arg12[%c0_378, %c0_379] : memref<4x290xf32, #tpu.memory_space<vmem>>, vector<4x290xf32>
    tpu.vector_store %arg12[%c0_378, %c0_379], %606 {strides = array<i32>} : memref<4x290xf32, #tpu.memory_space<vmem>>, vector<4x290xf32>,
    %c0_380 = arith.constant 0 : index
    %c5_381 = arith.constant 5 : index
    %608 = vector.load %arg12[%c0_380, %c5_381] : memref<4x290xf32, #tpu.memory_space<vmem>>, vector<4x16xf32>
    tpu.vector_store %arg12[%c0_380, %c5_381], %333 {strides = array<i32>} : memref<4x290xf32, #tpu.memory_space<vmem>>, vector<4x16xf32>,
    %609 = tpu.iota {dimensions = array<i32: 1>} : vector<1x16xi32>
    %c4_i32 = arith.constant 4 : i32
    %c0_i32_382 = arith.constant 0 : i32
    %610 = arith.cmpi eq, %c4_i32, %c0_i32_382 : i32
    %c1_i32_383 = arith.constant 1 : i32
    %611 = arith.select %610, %c1_i32_383, %c4_i32 : i32
    %612 = vector.broadcast %611 : i32 to vector<1x16xi32>
    %613 = arith.remsi %609, %612 : vector<1x16xi32>
    %c0_i32_384 = arith.constant 0 : i32
    %614 = vector.broadcast %c0_i32_384 : i32 to vector<1x16xi32>
    %615 = arith.cmpi ne, %613, %614 : vector<1x16xi32>
    %c0_i32_385 = arith.constant 0 : i32
    %616 = vector.broadcast %c0_i32_385 : i32 to vector<1x16xi32>
    %617 = arith.cmpi slt, %613, %616 : vector<1x16xi32>
    %c0_i32_386 = arith.constant 0 : i32
    %618 = arith.cmpi slt, %611, %c0_i32_386 : i32
    %619 = vector.broadcast %618 : i1 to vector<1x16xi1>
    %620 = vector.broadcast %619 : vector<1x16xi1> to vector<1x16xi1>
    %621 = arith.xori %617, %620 : vector<1x16xi1>
    %622 = arith.andi %621, %615 : vector<1x16xi1>
    %623 = vector.broadcast %611 : i32 to vector<1x16xi32>
    %624 = arith.addi %613, %623 : vector<1x16xi32>
    %625 = arith.select %622, %624, %613 : vector<1x16xi1>, vector<1x16xi32>
    %c0_i32_387 = arith.constant 0 : i32
    %626 = vector.broadcast %c0_i32_387 : i32 to vector<1x16xi32>
    %627 = arith.cmpi sgt, %625, %626 : vector<1x16xi32>
    %c3_i32 = arith.constant 3 : i32
    %628 = vector.broadcast %c3_i32 : i32 to vector<1x16xi32>
    %629 = arith.cmpi slt, %625, %628 : vector<1x16xi32>
    %cst_388 = arith.constant 0.000000e+00 : f32
    %630 = vector.broadcast %cst_388 : f32 to vector<4x16xf32>
    %c0_389 = arith.constant 0 : index
    %c0_390 = arith.constant 0 : index
    %631 = vector.load %arg12[%c0_389, %c0_390] : memref<4x290xf32, #tpu.memory_space<vmem>>, vector<4x16xf32>
    %cst_391 = arith.constant 0.000000e+00 : f32
    %632 = vector.shape_cast %627 : vector<1x16xi1> to vector<1x16xi1>
    %633 = vector.broadcast %632 : vector<1x16xi1> to vector<4x16xi1>
    %634 = vector.broadcast %cst_391 : f32 to vector<4x16xf32>
    %635 = arith.select %633, %631, %634 : vector<4x16xi1>, vector<4x16xf32>
    %c36_392 = arith.constant 36 : index
    %c0_393 = arith.constant 0 : index
    %c0_394 = arith.constant 0 : index
    %636 = vector.load %arg2[%c36_392, %c0_393, %c0_394] : memref<63x4x4xf32, #tpu.memory_space<vmem>>, vector<1x4x4xf32>
    %637 = vector.shape_cast %636 : vector<1x4x4xf32> to vector<4x4xf32>
    %638 = arith.truncf %637 : vector<4x4xf32> to vector<4x4xbf16>
    %639 = arith.truncf %635 : vector<4x16xf32> to vector<4x16xbf16>
    %cst_395 = arith.constant dense<0.000000e+00> : vector<4x16xf32>
    %640 = tpu.matmul %638, %639, %cst_395 {dimension_numbers = #tpu.dot_dimension_numbers<[1], [0], [0], [1], [0, 0, 1, 1], [], []>} : vector<4x4xbf16>, vector<4x16xbf16>, vector<4x16xf32> -> vector<4x16xf32>
    %641 = arith.addf %630, %640 : vector<4x16xf32>
    %c0_396 = arith.constant 0 : index
    %c1_397 = arith.constant 1 : index
    %642 = vector.load %arg12[%c0_396, %c1_397] : memref<4x290xf32, #tpu.memory_space<vmem>>, vector<4x16xf32>
    %c37 = arith.constant 37 : index
    %c0_398 = arith.constant 0 : index
    %c0_399 = arith.constant 0 : index
    %643 = vector.load %arg2[%c37, %c0_398, %c0_399] : memref<63x4x4xf32, #tpu.memory_space<vmem>>, vector<1x4x4xf32>
    %644 = vector.shape_cast %643 : vector<1x4x4xf32> to vector<4x4xf32>
    %645 = arith.truncf %644 : vector<4x4xf32> to vector<4x4xbf16>
    %646 = arith.truncf %642 : vector<4x16xf32> to vector<4x16xbf16>
    %cst_400 = arith.constant dense<0.000000e+00> : vector<4x16xf32>
    %647 = tpu.matmul %645, %646, %cst_400 {dimension_numbers = #tpu.dot_dimension_numbers<[1], [0], [0], [1], [0, 0, 1, 1], [], []>} : vector<4x4xbf16>, vector<4x16xbf16>, vector<4x16xf32> -> vector<4x16xf32>
    %648 = arith.addf %641, %647 : vector<4x16xf32>
    %c0_401 = arith.constant 0 : index
    %c2_402 = arith.constant 2 : index
    %649 = vector.load %arg12[%c0_401, %c2_402] : memref<4x290xf32, #tpu.memory_space<vmem>>, vector<4x16xf32>
    %cst_403 = arith.constant 0.000000e+00 : f32
    %650 = vector.shape_cast %629 : vector<1x16xi1> to vector<1x16xi1>
    %651 = vector.broadcast %650 : vector<1x16xi1> to vector<4x16xi1>
    %652 = vector.broadcast %cst_403 : f32 to vector<4x16xf32>
    %653 = arith.select %651, %649, %652 : vector<4x16xi1>, vector<4x16xf32>
    %c38 = arith.constant 38 : index
    %c0_404 = arith.constant 0 : index
    %c0_405 = arith.constant 0 : index
    %654 = vector.load %arg2[%c38, %c0_404, %c0_405] : memref<63x4x4xf32, #tpu.memory_space<vmem>>, vector<1x4x4xf32>
    %655 = vector.shape_cast %654 : vector<1x4x4xf32> to vector<4x4xf32>
    %656 = arith.truncf %655 : vector<4x4xf32> to vector<4x4xbf16>
    %657 = arith.truncf %653 : vector<4x16xf32> to vector<4x16xbf16>
    %cst_406 = arith.constant dense<0.000000e+00> : vector<4x16xf32>
    %658 = tpu.matmul %656, %657, %cst_406 {dimension_numbers = #tpu.dot_dimension_numbers<[1], [0], [0], [1], [0, 0, 1, 1], [], []>} : vector<4x4xbf16>, vector<4x16xbf16>, vector<4x16xf32> -> vector<4x16xf32>
    %659 = arith.addf %648, %658 : vector<4x16xf32>
    %c0_407 = arith.constant 0 : index
    %c4_408 = arith.constant 4 : index
    %660 = vector.load %arg12[%c0_407, %c4_408] : memref<4x290xf32, #tpu.memory_space<vmem>>, vector<4x16xf32>
    %cst_409 = arith.constant 0.000000e+00 : f32
    %661 = vector.shape_cast %627 : vector<1x16xi1> to vector<1x16xi1>
    %662 = vector.broadcast %661 : vector<1x16xi1> to vector<4x16xi1>
    %663 = vector.broadcast %cst_409 : f32 to vector<4x16xf32>
    %664 = arith.select %662, %660, %663 : vector<4x16xi1>, vector<4x16xf32>
    %c39 = arith.constant 39 : index
    %c0_410 = arith.constant 0 : index
    %c0_411 = arith.constant 0 : index
    %665 = vector.load %arg2[%c39, %c0_410, %c0_411] : memref<63x4x4xf32, #tpu.memory_space<vmem>>, vector<1x4x4xf32>
    %666 = vector.shape_cast %665 : vector<1x4x4xf32> to vector<4x4xf32>
    %667 = arith.truncf %666 : vector<4x4xf32> to vector<4x4xbf16>
    %668 = arith.truncf %664 : vector<4x16xf32> to vector<4x16xbf16>
    %cst_412 = arith.constant dense<0.000000e+00> : vector<4x16xf32>
    %669 = tpu.matmul %667, %668, %cst_412 {dimension_numbers = #tpu.dot_dimension_numbers<[1], [0], [0], [1], [0, 0, 1, 1], [], []>} : vector<4x4xbf16>, vector<4x16xbf16>, vector<4x16xf32> -> vector<4x16xf32>
    %670 = arith.addf %659, %669 : vector<4x16xf32>
    %c0_413 = arith.constant 0 : index
    %c5_414 = arith.constant 5 : index
    %671 = vector.load %arg12[%c0_413, %c5_414] : memref<4x290xf32, #tpu.memory_space<vmem>>, vector<4x16xf32>
    %c40_415 = arith.constant 40 : index
    %c0_416 = arith.constant 0 : index
    %c0_417 = arith.constant 0 : index
    %672 = vector.load %arg2[%c40_415, %c0_416, %c0_417] : memref<63x4x4xf32, #tpu.memory_space<vmem>>, vector<1x4x4xf32>
    %673 = vector.shape_cast %672 : vector<1x4x4xf32> to vector<4x4xf32>
    %674 = arith.truncf %673 : vector<4x4xf32> to vector<4x4xbf16>
    %675 = arith.truncf %671 : vector<4x16xf32> to vector<4x16xbf16>
    %cst_418 = arith.constant dense<0.000000e+00> : vector<4x16xf32>
    %676 = tpu.matmul %674, %675, %cst_418 {dimension_numbers = #tpu.dot_dimension_numbers<[1], [0], [0], [1], [0, 0, 1, 1], [], []>} : vector<4x4xbf16>, vector<4x16xbf16>, vector<4x16xf32> -> vector<4x16xf32>
    %677 = arith.addf %670, %676 : vector<4x16xf32>
    %c0_419 = arith.constant 0 : index
    %c6_420 = arith.constant 6 : index
    %678 = vector.load %arg12[%c0_419, %c6_420] : memref<4x290xf32, #tpu.memory_space<vmem>>, vector<4x16xf32>
    %cst_421 = arith.constant 0.000000e+00 : f32
    %679 = vector.shape_cast %629 : vector<1x16xi1> to vector<1x16xi1>
    %680 = vector.broadcast %679 : vector<1x16xi1> to vector<4x16xi1>
    %681 = vector.broadcast %cst_421 : f32 to vector<4x16xf32>
    %682 = arith.select %680, %678, %681 : vector<4x16xi1>, vector<4x16xf32>
    %c41 = arith.constant 41 : index
    %c0_422 = arith.constant 0 : index
    %c0_423 = arith.constant 0 : index
    %683 = vector.load %arg2[%c41, %c0_422, %c0_423] : memref<63x4x4xf32, #tpu.memory_space<vmem>>, vector<1x4x4xf32>
    %684 = vector.shape_cast %683 : vector<1x4x4xf32> to vector<4x4xf32>
    %685 = arith.truncf %684 : vector<4x4xf32> to vector<4x4xbf16>
    %686 = arith.truncf %682 : vector<4x16xf32> to vector<4x16xbf16>
    %cst_424 = arith.constant dense<0.000000e+00> : vector<4x16xf32>
    %687 = tpu.matmul %685, %686, %cst_424 {dimension_numbers = #tpu.dot_dimension_numbers<[1], [0], [0], [1], [0, 0, 1, 1], [], []>} : vector<4x4xbf16>, vector<4x16xbf16>, vector<4x16xf32> -> vector<4x16xf32>
    %688 = arith.addf %677, %687 : vector<4x16xf32>
    %c0_425 = arith.constant 0 : index
    %c8_426 = arith.constant 8 : index
    %689 = vector.load %arg12[%c0_425, %c8_426] : memref<4x290xf32, #tpu.memory_space<vmem>>, vector<4x16xf32>
    %cst_427 = arith.constant 0.000000e+00 : f32
    %690 = vector.shape_cast %627 : vector<1x16xi1> to vector<1x16xi1>
    %691 = vector.broadcast %690 : vector<1x16xi1> to vector<4x16xi1>
    %692 = vector.broadcast %cst_427 : f32 to vector<4x16xf32>
    %693 = arith.select %691, %689, %692 : vector<4x16xi1>, vector<4x16xf32>
    %c42 = arith.constant 42 : index
    %c0_428 = arith.constant 0 : index
    %c0_429 = arith.constant 0 : index
    %694 = vector.load %arg2[%c42, %c0_428, %c0_429] : memref<63x4x4xf32, #tpu.memory_space<vmem>>, vector<1x4x4xf32>
    %695 = vector.shape_cast %694 : vector<1x4x4xf32> to vector<4x4xf32>
    %696 = arith.truncf %695 : vector<4x4xf32> to vector<4x4xbf16>
    %697 = arith.truncf %693 : vector<4x16xf32> to vector<4x16xbf16>
    %cst_430 = arith.constant dense<0.000000e+00> : vector<4x16xf32>
    %698 = tpu.matmul %696, %697, %cst_430 {dimension_numbers = #tpu.dot_dimension_numbers<[1], [0], [0], [1], [0, 0, 1, 1], [], []>} : vector<4x4xbf16>, vector<4x16xbf16>, vector<4x16xf32> -> vector<4x16xf32>
    %699 = arith.addf %688, %698 : vector<4x16xf32>
    %c0_431 = arith.constant 0 : index
    %c9_432 = arith.constant 9 : index
    %700 = vector.load %arg12[%c0_431, %c9_432] : memref<4x290xf32, #tpu.memory_space<vmem>>, vector<4x16xf32>
    %c43 = arith.constant 43 : index
    %c0_433 = arith.constant 0 : index
    %c0_434 = arith.constant 0 : index
    %701 = vector.load %arg2[%c43, %c0_433, %c0_434] : memref<63x4x4xf32, #tpu.memory_space<vmem>>, vector<1x4x4xf32>
    %702 = vector.shape_cast %701 : vector<1x4x4xf32> to vector<4x4xf32>
    %703 = arith.truncf %702 : vector<4x4xf32> to vector<4x4xbf16>
    %704 = arith.truncf %700 : vector<4x16xf32> to vector<4x16xbf16>
    %cst_435 = arith.constant dense<0.000000e+00> : vector<4x16xf32>
    %705 = tpu.matmul %703, %704, %cst_435 {dimension_numbers = #tpu.dot_dimension_numbers<[1], [0], [0], [1], [0, 0, 1, 1], [], []>} : vector<4x4xbf16>, vector<4x16xbf16>, vector<4x16xf32> -> vector<4x16xf32>
    %706 = arith.addf %699, %705 : vector<4x16xf32>
    %c0_436 = arith.constant 0 : index
    %c10_437 = arith.constant 10 : index
    %707 = vector.load %arg12[%c0_436, %c10_437] : memref<4x290xf32, #tpu.memory_space<vmem>>, vector<4x16xf32>
    %cst_438 = arith.constant 0.000000e+00 : f32
    %708 = vector.shape_cast %629 : vector<1x16xi1> to vector<1x16xi1>
    %709 = vector.broadcast %708 : vector<1x16xi1> to vector<4x16xi1>
    %710 = vector.broadcast %cst_438 : f32 to vector<4x16xf32>
    %711 = arith.select %709, %707, %710 : vector<4x16xi1>, vector<4x16xf32>
    %c44_439 = arith.constant 44 : index
    %c0_440 = arith.constant 0 : index
    %c0_441 = arith.constant 0 : index
    %712 = vector.load %arg2[%c44_439, %c0_440, %c0_441] : memref<63x4x4xf32, #tpu.memory_space<vmem>>, vector<1x4x4xf32>
    %713 = vector.shape_cast %712 : vector<1x4x4xf32> to vector<4x4xf32>
    %714 = arith.truncf %713 : vector<4x4xf32> to vector<4x4xbf16>
    %715 = arith.truncf %711 : vector<4x16xf32> to vector<4x16xbf16>
    %cst_442 = arith.constant dense<0.000000e+00> : vector<4x16xf32>
    %716 = tpu.matmul %714, %715, %cst_442 {dimension_numbers = #tpu.dot_dimension_numbers<[1], [0], [0], [1], [0, 0, 1, 1], [], []>} : vector<4x4xbf16>, vector<4x16xbf16>, vector<4x16xf32> -> vector<4x16xf32>
    %717 = arith.addf %706, %716 : vector<4x16xf32>
    %c4_443 = arith.constant 4 : index
    %c0_444 = arith.constant 0 : index
    %c0_445 = arith.constant 0 : index
    %718 = vector.load %arg3[%c4_443, %c0_444, %c0_445] : memref<7x4x1xf32, #tpu.memory_space<vmem>>, vector<1x4x1xf32>
    %719 = vector.shape_cast %718 : vector<1x4x1xf32> to vector<4x1xf32>
    %720 = vector.broadcast %719 : vector<4x1xf32> to vector<4x16xf32>
    %721 = arith.mulf %717, %720 : vector<4x16xf32>
    %c4_446 = arith.constant 4 : index
    %c0_447 = arith.constant 0 : index
    %c0_448 = arith.constant 0 : index
    %722 = vector.load %arg4[%c4_446, %c0_447, %c0_448] : memref<7x4x1xf32, #tpu.memory_space<vmem>>, vector<1x4x1xf32>
    %723 = vector.shape_cast %722 : vector<1x4x1xf32> to vector<4x1xf32>
    %724 = vector.broadcast %723 : vector<4x1xf32> to vector<4x16xf32>
    %725 = arith.addf %721, %724 : vector<4x16xf32>
    %726 = arith.negf %725 : vector<4x16xf32>
    %727 = math.exp %726 : vector<4x16xf32>
    %cst_449 = arith.constant 1.000000e+00 : f32
    %728 = vector.broadcast %cst_449 : f32 to vector<4x16xf32>
    %729 = arith.addf %728, %727 : vector<4x16xf32>
    %730 = arith.divf %728, %729 : vector<4x16xf32>
    %731 = arith.mulf %725, %730 : vector<4x16xf32>
    %c4_450 = arith.constant 4 : index
    %c0_451 = arith.constant 0 : index
    %c0_452 = arith.constant 0 : index
    %732 = vector.load %arg5[%c4_450, %c0_451, %c0_452] : memref<7x4x1xf32, #tpu.memory_space<vmem>>, vector<1x4x1xf32>
    %733 = vector.shape_cast %732 : vector<1x4x1xf32> to vector<4x1xf32>
    %734 = vector.broadcast %733 : vector<4x1xf32> to vector<4x16xf32>
    %735 = arith.mulf %731, %734 : vector<4x16xf32>
    %c4_453 = arith.constant 4 : index
    %c0_454 = arith.constant 0 : index
    %c0_455 = arith.constant 0 : index
    %736 = vector.load %arg6[%c4_453, %c0_454, %c0_455] : memref<7x4x1xf32, #tpu.memory_space<vmem>>, vector<1x4x1xf32>
    %737 = vector.shape_cast %736 : vector<1x4x1xf32> to vector<4x1xf32>
    %738 = vector.broadcast %737 : vector<4x1xf32> to vector<4x16xf32>
    %739 = arith.addf %735, %738 : vector<4x16xf32>
    %cst_456 = arith.constant 0.000000e+00 : f32
    %740 = vector.broadcast %cst_456 : f32 to vector<4x16xf32>
    %741 = arith.maximumf %739, %740 : vector<4x16xf32>
    %742 = vector.extract_strided_slice %741 {offsets = [0, 0], sizes = [4, 4], strides = [1, 1]} : vector<4x16xf32> to vector<4x4xf32>
    %c0_457 = arith.constant 0 : index
    %c0_458 = arith.constant 0 : index
    %743 = vector.load %arg13[%c0_457, %c0_458] : memref<64x16xf32, #tpu.memory_space<vmem>>, vector<4x4xf32>
    tpu.vector_store %arg13[%c0_457, %c0_458], %742 {strides = array<i32>} : memref<64x16xf32, #tpu.memory_space<vmem>>, vector<4x4xf32>,
    %744 = vector.extract_strided_slice %741 {offsets = [0, 4], sizes = [4, 4], strides = [1, 1]} : vector<4x16xf32> to vector<4x4xf32>
    %c4_459 = arith.constant 4 : index
    %c0_460 = arith.constant 0 : index
    %745 = vector.load %arg13[%c4_459, %c0_460] : memref<64x16xf32, #tpu.memory_space<vmem>>, vector<4x4xf32>
    tpu.vector_store %arg13[%c4_459, %c0_460], %744 {strides = array<i32>} : memref<64x16xf32, #tpu.memory_space<vmem>>, vector<4x4xf32>,
    %746 = vector.extract_strided_slice %741 {offsets = [0, 8], sizes = [4, 4], strides = [1, 1]} : vector<4x16xf32> to vector<4x4xf32>
    %c8_461 = arith.constant 8 : index
    %c0_462 = arith.constant 0 : index
    %747 = vector.load %arg13[%c8_461, %c0_462] : memref<64x16xf32, #tpu.memory_space<vmem>>, vector<4x4xf32>
    tpu.vector_store %arg13[%c8_461, %c0_462], %746 {strides = array<i32>} : memref<64x16xf32, #tpu.memory_space<vmem>>, vector<4x4xf32>,
    %748 = vector.extract_strided_slice %741 {offsets = [0, 12], sizes = [4, 4], strides = [1, 1]} : vector<4x16xf32> to vector<4x4xf32>
    %c12_463 = arith.constant 12 : index
    %c0_464 = arith.constant 0 : index
    %749 = vector.load %arg13[%c12_463, %c0_464] : memref<64x16xf32, #tpu.memory_space<vmem>>, vector<4x4xf32>
    tpu.vector_store %arg13[%c12_463, %c0_464], %748 {strides = array<i32>} : memref<64x16xf32, #tpu.memory_space<vmem>>, vector<4x4xf32>,
    %c0_465 = arith.constant 0 : index
    %c0_466 = arith.constant 0 : index
    %750 = vector.load %arg13[%c0_465, %c0_466] : memref<64x16xf32, #tpu.memory_space<vmem>>, vector<16x4xf32>
    %c0_467 = arith.constant 0 : index
    %c0_468 = arith.constant 0 : index
    %751 = vector.load %arg9[%c0_467, %c0_468] : memref<4x8xf32, #tpu.memory_space<vmem>>, vector<4x8xf32>
    %cst_469 = arith.constant dense<0.000000e+00> : vector<16x8xf32>
    %752 = tpu.matmul %750, %751, %cst_469 {dimension_numbers = #tpu.dot_dimension_numbers<[1], [0], [0], [1], [0, 0, 1, 1], [], []>} : vector<16x4xf32>, vector<4x8xf32>, vector<16x8xf32> -> vector<16x8xf32>
    %753 = vector.extract_strided_slice %752 {offsets = [0, 0], sizes = [4, 8], strides = [1, 1]} : vector<16x8xf32> to vector<4x8xf32>
    %c0_470 = arith.constant 0 : index
    %c0_471 = arith.constant 0 : index
    %754 = vector.load %arg14[%c0_470, %c0_471] : memref<4x256xf32, #tpu.memory_space<vmem>>, vector<4x8xf32>
    tpu.vector_store %arg14[%c0_470, %c0_471], %753 {strides = array<i32>} : memref<4x256xf32, #tpu.memory_space<vmem>>, vector<4x8xf32>,
    %755 = vector.extract_strided_slice %752 {offsets = [0, 0], sizes = [4, 8], strides = [1, 1]} : vector<16x8xf32> to vector<4x8xf32>
    %cst_472 = arith.constant 0.571428597 : f32
    %756 = vector.broadcast %cst_472 : f32 to vector<4x8xf32>
    %757 = arith.mulf %755, %756 : vector<4x8xf32>
    %758 = vector.extract_strided_slice %752 {offsets = [4, 0], sizes = [4, 8], strides = [1, 1]} : vector<16x8xf32> to vector<4x8xf32>
    %cst_473 = arith.constant 0.428571433 : f32
    %759 = vector.broadcast %cst_473 : f32 to vector<4x8xf32>
    %760 = arith.mulf %758, %759 : vector<4x8xf32>
    %761 = arith.addf %757, %760 : vector<4x8xf32>
    %c0_474 = arith.constant 0 : index
    %c8_475 = arith.constant 8 : index
    %762 = vector.load %arg14[%c0_474, %c8_475] : memref<4x256xf32, #tpu.memory_space<vmem>>, vector<4x8xf32>
    tpu.vector_store %arg14[%c0_474, %c8_475], %761 {strides = array<i32>} : memref<4x256xf32, #tpu.memory_space<vmem>>, vector<4x8xf32>,
    %763 = vector.extract_strided_slice %752 {offsets = [0, 0], sizes = [4, 8], strides = [1, 1]} : vector<16x8xf32> to vector<4x8xf32>
    %cst_476 = arith.constant 0.142857149 : f32
    %764 = vector.broadcast %cst_476 : f32 to vector<4x8xf32>
    %765 = arith.mulf %763, %764 : vector<4x8xf32>
    %766 = vector.extract_strided_slice %752 {offsets = [4, 0], sizes = [4, 8], strides = [1, 1]} : vector<16x8xf32> to vector<4x8xf32>
    %cst_477 = arith.constant 0.857142865 : f32
    %767 = vector.broadcast %cst_477 : f32 to vector<4x8xf32>
    %768 = arith.mulf %766, %767 : vector<4x8xf32>
    %769 = arith.addf %765, %768 : vector<4x8xf32>
    %c0_478 = arith.constant 0 : index
    %c16_479 = arith.constant 16 : index
    %770 = vector.load %arg14[%c0_478, %c16_479] : memref<4x256xf32, #tpu.memory_space<vmem>>, vector<4x8xf32>
    tpu.vector_store %arg14[%c0_478, %c16_479], %769 {strides = array<i32>} : memref<4x256xf32, #tpu.memory_space<vmem>>, vector<4x8xf32>,
    %771 = vector.extract_strided_slice %752 {offsets = [4, 0], sizes = [4, 8], strides = [1, 1]} : vector<16x8xf32> to vector<4x8xf32>
    %cst_480 = arith.constant 0.714285731 : f32
    %772 = vector.broadcast %cst_480 : f32 to vector<4x8xf32>
    %773 = arith.mulf %771, %772 : vector<4x8xf32>
    %774 = vector.extract_strided_slice %752 {offsets = [8, 0], sizes = [4, 8], strides = [1, 1]} : vector<16x8xf32> to vector<4x8xf32>
    %cst_481 = arith.constant 0.285714298 : f32
    %775 = vector.broadcast %cst_481 : f32 to vector<4x8xf32>
    %776 = arith.mulf %774, %775 : vector<4x8xf32>
    %777 = arith.addf %773, %776 : vector<4x8xf32>
    %c0_482 = arith.constant 0 : index
    %c24_483 = arith.constant 24 : index
    %778 = vector.load %arg14[%c0_482, %c24_483] : memref<4x256xf32, #tpu.memory_space<vmem>>, vector<4x8xf32>
    tpu.vector_store %arg14[%c0_482, %c24_483], %777 {strides = array<i32>} : memref<4x256xf32, #tpu.memory_space<vmem>>, vector<4x8xf32>,
    %779 = vector.extract_strided_slice %752 {offsets = [4, 0], sizes = [4, 8], strides = [1, 1]} : vector<16x8xf32> to vector<4x8xf32>
    %cst_484 = arith.constant 0.285714298 : f32
    %780 = vector.broadcast %cst_484 : f32 to vector<4x8xf32>
    %781 = arith.mulf %779, %780 : vector<4x8xf32>
    %782 = vector.extract_strided_slice %752 {offsets = [8, 0], sizes = [4, 8], strides = [1, 1]} : vector<16x8xf32> to vector<4x8xf32>
    %cst_485 = arith.constant 0.714285731 : f32
    %783 = vector.broadcast %cst_485 : f32 to vector<4x8xf32>
    %784 = arith.mulf %782, %783 : vector<4x8xf32>
    %785 = arith.addf %781, %784 : vector<4x8xf32>
    %c0_486 = arith.constant 0 : index
    %c32_487 = arith.constant 32 : index
    %786 = vector.load %arg14[%c0_486, %c32_487] : memref<4x256xf32, #tpu.memory_space<vmem>>, vector<4x8xf32>
    tpu.vector_store %arg14[%c0_486, %c32_487], %785 {strides = array<i32>} : memref<4x256xf32, #tpu.memory_space<vmem>>, vector<4x8xf32>,
    %787 = vector.extract_strided_slice %752 {offsets = [8, 0], sizes = [4, 8], strides = [1, 1]} : vector<16x8xf32> to vector<4x8xf32>
    %cst_488 = arith.constant 0.857142865 : f32
    %788 = vector.broadcast %cst_488 : f32 to vector<4x8xf32>
    %789 = arith.mulf %787, %788 : vector<4x8xf32>
    %790 = vector.extract_strided_slice %752 {offsets = [12, 0], sizes = [4, 8], strides = [1, 1]} : vector<16x8xf32> to vector<4x8xf32>
    %cst_489 = arith.constant 0.142857149 : f32
    %791 = vector.broadcast %cst_489 : f32 to vector<4x8xf32>
    %792 = arith.mulf %790, %791 : vector<4x8xf32>
    %793 = arith.addf %789, %792 : vector<4x8xf32>
    %c0_490 = arith.constant 0 : index
    %c40_491 = arith.constant 40 : index
    %794 = vector.load %arg14[%c0_490, %c40_491] : memref<4x256xf32, #tpu.memory_space<vmem>>, vector<4x8xf32>
    tpu.vector_store %arg14[%c0_490, %c40_491], %793 {strides = array<i32>} : memref<4x256xf32, #tpu.memory_space<vmem>>, vector<4x8xf32>,
    %795 = vector.extract_strided_slice %752 {offsets = [8, 0], sizes = [4, 8], strides = [1, 1]} : vector<16x8xf32> to vector<4x8xf32>
    %cst_492 = arith.constant 0.428571433 : f32
    %796 = vector.broadcast %cst_492 : f32 to vector<4x8xf32>
    %797 = arith.mulf %795, %796 : vector<4x8xf32>
    %798 = vector.extract_strided_slice %752 {offsets = [12, 0], sizes = [4, 8], strides = [1, 1]} : vector<16x8xf32> to vector<4x8xf32>
    %cst_493 = arith.constant 0.571428597 : f32
    %799 = vector.broadcast %cst_493 : f32 to vector<4x8xf32>
    %800 = arith.mulf %798, %799 : vector<4x8xf32>
    %801 = arith.addf %797, %800 : vector<4x8xf32>
    %c0_494 = arith.constant 0 : index
    %c48_495 = arith.constant 48 : index
    %802 = vector.load %arg14[%c0_494, %c48_495] : memref<4x256xf32, #tpu.memory_space<vmem>>, vector<4x8xf32>
    tpu.vector_store %arg14[%c0_494, %c48_495], %801 {strides = array<i32>} : memref<4x256xf32, #tpu.memory_space<vmem>>, vector<4x8xf32>,
    %803 = vector.extract_strided_slice %752 {offsets = [12, 0], sizes = [4, 8], strides = [1, 1]} : vector<16x8xf32> to vector<4x8xf32>
    %c0_496 = arith.constant 0 : index
    %c56_497 = arith.constant 56 : index
    %804 = vector.load %arg14[%c0_496, %c56_497] : memref<4x256xf32, #tpu.memory_space<vmem>>, vector<4x8xf32>
    tpu.vector_store %arg14[%c0_496, %c56_497], %803 {strides = array<i32>} : memref<4x256xf32, #tpu.memory_space<vmem>>, vector<4x8xf32>,
    %c0_498 = arith.constant 0 : index
    %c0_499 = arith.constant 0 : index
    %805 = vector.load %arg14[%c0_498, %c0_499] : memref<4x256xf32, #tpu.memory_space<vmem>>, vector<4x64xf32>
    %cst_500 = arith.constant 0.000000e+00 : f32
    %806 = vector.broadcast %cst_500 : f32 to vector<4x290xf32>
    %c0_501 = arith.constant 0 : index
    %c0_502 = arith.constant 0 : index
    %807 = vector.load %arg12[%c0_501, %c0_502] : memref<4x290xf32, #tpu.memory_space<vmem>>, vector<4x290xf32>
    tpu.vector_store %arg12[%c0_501, %c0_502], %806 {strides = array<i32>} : memref<4x290xf32, #tpu.memory_space<vmem>>, vector<4x290xf32>,
    %c0_503 = arith.constant 0 : index
    %c9_504 = arith.constant 9 : index
    %808 = vector.load %arg12[%c0_503, %c9_504] : memref<4x290xf32, #tpu.memory_space<vmem>>, vector<4x64xf32>
    tpu.vector_store %arg12[%c0_503, %c9_504], %805 {strides = array<i32>} : memref<4x290xf32, #tpu.memory_space<vmem>>, vector<4x64xf32>,
    %809 = tpu.iota {dimensions = array<i32: 1>} : vector<1x64xi32>
    %c8_i32_505 = arith.constant 8 : i32
    %c0_i32_506 = arith.constant 0 : i32
    %810 = arith.cmpi eq, %c8_i32_505, %c0_i32_506 : i32
    %c1_i32_507 = arith.constant 1 : i32
    %811 = arith.select %810, %c1_i32_507, %c8_i32_505 : i32
    %812 = vector.broadcast %811 : i32 to vector<1x64xi32>
    %813 = arith.remsi %809, %812 : vector<1x64xi32>
    %c0_i32_508 = arith.constant 0 : i32
    %814 = vector.broadcast %c0_i32_508 : i32 to vector<1x64xi32>
    %815 = arith.cmpi ne, %813, %814 : vector<1x64xi32>
    %c0_i32_509 = arith.constant 0 : i32
    %816 = vector.broadcast %c0_i32_509 : i32 to vector<1x64xi32>
    %817 = arith.cmpi slt, %813, %816 : vector<1x64xi32>
    %c0_i32_510 = arith.constant 0 : i32
    %818 = arith.cmpi slt, %811, %c0_i32_510 : i32
    %819 = vector.broadcast %818 : i1 to vector<1x64xi1>
    %820 = vector.broadcast %819 : vector<1x64xi1> to vector<1x64xi1>
    %821 = arith.xori %817, %820 : vector<1x64xi1>
    %822 = arith.andi %821, %815 : vector<1x64xi1>
    %823 = vector.broadcast %811 : i32 to vector<1x64xi32>
    %824 = arith.addi %813, %823 : vector<1x64xi32>
    %825 = arith.select %822, %824, %813 : vector<1x64xi1>, vector<1x64xi32>
    %c0_i32_511 = arith.constant 0 : i32
    %826 = vector.broadcast %c0_i32_511 : i32 to vector<1x64xi32>
    %827 = arith.cmpi sgt, %825, %826 : vector<1x64xi32>
    %c7_i32_512 = arith.constant 7 : i32
    %828 = vector.broadcast %c7_i32_512 : i32 to vector<1x64xi32>
    %829 = arith.cmpi slt, %825, %828 : vector<1x64xi32>
    %cst_513 = arith.constant 0.000000e+00 : f32
    %830 = vector.broadcast %cst_513 : f32 to vector<4x64xf32>
    %c0_514 = arith.constant 0 : index
    %c0_515 = arith.constant 0 : index
    %831 = vector.load %arg12[%c0_514, %c0_515] : memref<4x290xf32, #tpu.memory_space<vmem>>, vector<4x64xf32>
    %cst_516 = arith.constant 0.000000e+00 : f32
    %832 = vector.shape_cast %827 : vector<1x64xi1> to vector<1x64xi1>
    %833 = vector.broadcast %832 : vector<1x64xi1> to vector<4x64xi1>
    %834 = vector.broadcast %cst_516 : f32 to vector<4x64xf32>
    %835 = arith.select %833, %831, %834 : vector<4x64xi1>, vector<4x64xf32>
    %c45 = arith.constant 45 : index
    %c0_517 = arith.constant 0 : index
    %c0_518 = arith.constant 0 : index
    %836 = vector.load %arg2[%c45, %c0_517, %c0_518] : memref<63x4x4xf32, #tpu.memory_space<vmem>>, vector<1x4x4xf32>
    %837 = vector.shape_cast %836 : vector<1x4x4xf32> to vector<4x4xf32>
    %838 = arith.truncf %837 : vector<4x4xf32> to vector<4x4xbf16>
    %839 = arith.truncf %835 : vector<4x64xf32> to vector<4x64xbf16>
    %cst_519 = arith.constant dense<0.000000e+00> : vector<4x64xf32>
    %840 = tpu.matmul %838, %839, %cst_519 {dimension_numbers = #tpu.dot_dimension_numbers<[1], [0], [0], [1], [0, 0, 1, 1], [], []>} : vector<4x4xbf16>, vector<4x64xbf16>, vector<4x64xf32> -> vector<4x64xf32>
    %841 = arith.addf %830, %840 : vector<4x64xf32>
    %c0_520 = arith.constant 0 : index
    %c1_521 = arith.constant 1 : index
    %842 = vector.load %arg12[%c0_520, %c1_521] : memref<4x290xf32, #tpu.memory_space<vmem>>, vector<4x64xf32>
    %c46 = arith.constant 46 : index
    %c0_522 = arith.constant 0 : index
    %c0_523 = arith.constant 0 : index
    %843 = vector.load %arg2[%c46, %c0_522, %c0_523] : memref<63x4x4xf32, #tpu.memory_space<vmem>>, vector<1x4x4xf32>
    %844 = vector.shape_cast %843 : vector<1x4x4xf32> to vector<4x4xf32>
    %845 = arith.truncf %844 : vector<4x4xf32> to vector<4x4xbf16>
    %846 = arith.truncf %842 : vector<4x64xf32> to vector<4x64xbf16>
    %cst_524 = arith.constant dense<0.000000e+00> : vector<4x64xf32>
    %847 = tpu.matmul %845, %846, %cst_524 {dimension_numbers = #tpu.dot_dimension_numbers<[1], [0], [0], [1], [0, 0, 1, 1], [], []>} : vector<4x4xbf16>, vector<4x64xbf16>, vector<4x64xf32> -> vector<4x64xf32>
    %848 = arith.addf %841, %847 : vector<4x64xf32>
    %c0_525 = arith.constant 0 : index
    %c2_526 = arith.constant 2 : index
    %849 = vector.load %arg12[%c0_525, %c2_526] : memref<4x290xf32, #tpu.memory_space<vmem>>, vector<4x64xf32>
    %cst_527 = arith.constant 0.000000e+00 : f32
    %850 = vector.shape_cast %829 : vector<1x64xi1> to vector<1x64xi1>
    %851 = vector.broadcast %850 : vector<1x64xi1> to vector<4x64xi1>
    %852 = vector.broadcast %cst_527 : f32 to vector<4x64xf32>
    %853 = arith.select %851, %849, %852 : vector<4x64xi1>, vector<4x64xf32>
    %c47 = arith.constant 47 : index
    %c0_528 = arith.constant 0 : index
    %c0_529 = arith.constant 0 : index
    %854 = vector.load %arg2[%c47, %c0_528, %c0_529] : memref<63x4x4xf32, #tpu.memory_space<vmem>>, vector<1x4x4xf32>
    %855 = vector.shape_cast %854 : vector<1x4x4xf32> to vector<4x4xf32>
    %856 = arith.truncf %855 : vector<4x4xf32> to vector<4x4xbf16>
    %857 = arith.truncf %853 : vector<4x64xf32> to vector<4x64xbf16>
    %cst_530 = arith.constant dense<0.000000e+00> : vector<4x64xf32>
    %858 = tpu.matmul %856, %857, %cst_530 {dimension_numbers = #tpu.dot_dimension_numbers<[1], [0], [0], [1], [0, 0, 1, 1], [], []>} : vector<4x4xbf16>, vector<4x64xbf16>, vector<4x64xf32> -> vector<4x64xf32>
    %859 = arith.addf %848, %858 : vector<4x64xf32>
    %c0_531 = arith.constant 0 : index
    %c8_532 = arith.constant 8 : index
    %860 = vector.load %arg12[%c0_531, %c8_532] : memref<4x290xf32, #tpu.memory_space<vmem>>, vector<4x64xf32>
    %cst_533 = arith.constant 0.000000e+00 : f32
    %861 = vector.shape_cast %827 : vector<1x64xi1> to vector<1x64xi1>
    %862 = vector.broadcast %861 : vector<1x64xi1> to vector<4x64xi1>
    %863 = vector.broadcast %cst_533 : f32 to vector<4x64xf32>
    %864 = arith.select %862, %860, %863 : vector<4x64xi1>, vector<4x64xf32>
    %c48_534 = arith.constant 48 : index
    %c0_535 = arith.constant 0 : index
    %c0_536 = arith.constant 0 : index
    %865 = vector.load %arg2[%c48_534, %c0_535, %c0_536] : memref<63x4x4xf32, #tpu.memory_space<vmem>>, vector<1x4x4xf32>
    %866 = vector.shape_cast %865 : vector<1x4x4xf32> to vector<4x4xf32>
    %867 = arith.truncf %866 : vector<4x4xf32> to vector<4x4xbf16>
    %868 = arith.truncf %864 : vector<4x64xf32> to vector<4x64xbf16>
    %cst_537 = arith.constant dense<0.000000e+00> : vector<4x64xf32>
    %869 = tpu.matmul %867, %868, %cst_537 {dimension_numbers = #tpu.dot_dimension_numbers<[1], [0], [0], [1], [0, 0, 1, 1], [], []>} : vector<4x4xbf16>, vector<4x64xbf16>, vector<4x64xf32> -> vector<4x64xf32>
    %870 = arith.addf %859, %869 : vector<4x64xf32>
    %c0_538 = arith.constant 0 : index
    %c9_539 = arith.constant 9 : index
    %871 = vector.load %arg12[%c0_538, %c9_539] : memref<4x290xf32, #tpu.memory_space<vmem>>, vector<4x64xf32>
    %c49 = arith.constant 49 : index
    %c0_540 = arith.constant 0 : index
    %c0_541 = arith.constant 0 : index
    %872 = vector.load %arg2[%c49, %c0_540, %c0_541] : memref<63x4x4xf32, #tpu.memory_space<vmem>>, vector<1x4x4xf32>
    %873 = vector.shape_cast %872 : vector<1x4x4xf32> to vector<4x4xf32>
    %874 = arith.truncf %873 : vector<4x4xf32> to vector<4x4xbf16>
    %875 = arith.truncf %871 : vector<4x64xf32> to vector<4x64xbf16>
    %cst_542 = arith.constant dense<0.000000e+00> : vector<4x64xf32>
    %876 = tpu.matmul %874, %875, %cst_542 {dimension_numbers = #tpu.dot_dimension_numbers<[1], [0], [0], [1], [0, 0, 1, 1], [], []>} : vector<4x4xbf16>, vector<4x64xbf16>, vector<4x64xf32> -> vector<4x64xf32>
    %877 = arith.addf %870, %876 : vector<4x64xf32>
    %c0_543 = arith.constant 0 : index
    %c10_544 = arith.constant 10 : index
    %878 = vector.load %arg12[%c0_543, %c10_544] : memref<4x290xf32, #tpu.memory_space<vmem>>, vector<4x64xf32>
    %cst_545 = arith.constant 0.000000e+00 : f32
    %879 = vector.shape_cast %829 : vector<1x64xi1> to vector<1x64xi1>
    %880 = vector.broadcast %879 : vector<1x64xi1> to vector<4x64xi1>
    %881 = vector.broadcast %cst_545 : f32 to vector<4x64xf32>
    %882 = arith.select %880, %878, %881 : vector<4x64xi1>, vector<4x64xf32>
    %c50 = arith.constant 50 : index
    %c0_546 = arith.constant 0 : index
    %c0_547 = arith.constant 0 : index
    %883 = vector.load %arg2[%c50, %c0_546, %c0_547] : memref<63x4x4xf32, #tpu.memory_space<vmem>>, vector<1x4x4xf32>
    %884 = vector.shape_cast %883 : vector<1x4x4xf32> to vector<4x4xf32>
    %885 = arith.truncf %884 : vector<4x4xf32> to vector<4x4xbf16>
    %886 = arith.truncf %882 : vector<4x64xf32> to vector<4x64xbf16>
    %cst_548 = arith.constant dense<0.000000e+00> : vector<4x64xf32>
    %887 = tpu.matmul %885, %886, %cst_548 {dimension_numbers = #tpu.dot_dimension_numbers<[1], [0], [0], [1], [0, 0, 1, 1], [], []>} : vector<4x4xbf16>, vector<4x64xbf16>, vector<4x64xf32> -> vector<4x64xf32>
    %888 = arith.addf %877, %887 : vector<4x64xf32>
    %c0_549 = arith.constant 0 : index
    %c16_550 = arith.constant 16 : index
    %889 = vector.load %arg12[%c0_549, %c16_550] : memref<4x290xf32, #tpu.memory_space<vmem>>, vector<4x64xf32>
    %cst_551 = arith.constant 0.000000e+00 : f32
    %890 = vector.shape_cast %827 : vector<1x64xi1> to vector<1x64xi1>
    %891 = vector.broadcast %890 : vector<1x64xi1> to vector<4x64xi1>
    %892 = vector.broadcast %cst_551 : f32 to vector<4x64xf32>
    %893 = arith.select %891, %889, %892 : vector<4x64xi1>, vector<4x64xf32>
    %c51 = arith.constant 51 : index
    %c0_552 = arith.constant 0 : index
    %c0_553 = arith.constant 0 : index
    %894 = vector.load %arg2[%c51, %c0_552, %c0_553] : memref<63x4x4xf32, #tpu.memory_space<vmem>>, vector<1x4x4xf32>
    %895 = vector.shape_cast %894 : vector<1x4x4xf32> to vector<4x4xf32>
    %896 = arith.truncf %895 : vector<4x4xf32> to vector<4x4xbf16>
    %897 = arith.truncf %893 : vector<4x64xf32> to vector<4x64xbf16>
    %cst_554 = arith.constant dense<0.000000e+00> : vector<4x64xf32>
    %898 = tpu.matmul %896, %897, %cst_554 {dimension_numbers = #tpu.dot_dimension_numbers<[1], [0], [0], [1], [0, 0, 1, 1], [], []>} : vector<4x4xbf16>, vector<4x64xbf16>, vector<4x64xf32> -> vector<4x64xf32>
    %899 = arith.addf %888, %898 : vector<4x64xf32>
    %c0_555 = arith.constant 0 : index
    %c17_556 = arith.constant 17 : index
    %900 = vector.load %arg12[%c0_555, %c17_556] : memref<4x290xf32, #tpu.memory_space<vmem>>, vector<4x64xf32>
    %c52_557 = arith.constant 52 : index
    %c0_558 = arith.constant 0 : index
    %c0_559 = arith.constant 0 : index
    %901 = vector.load %arg2[%c52_557, %c0_558, %c0_559] : memref<63x4x4xf32, #tpu.memory_space<vmem>>, vector<1x4x4xf32>
    %902 = vector.shape_cast %901 : vector<1x4x4xf32> to vector<4x4xf32>
    %903 = arith.truncf %902 : vector<4x4xf32> to vector<4x4xbf16>
    %904 = arith.truncf %900 : vector<4x64xf32> to vector<4x64xbf16>
    %cst_560 = arith.constant dense<0.000000e+00> : vector<4x64xf32>
    %905 = tpu.matmul %903, %904, %cst_560 {dimension_numbers = #tpu.dot_dimension_numbers<[1], [0], [0], [1], [0, 0, 1, 1], [], []>} : vector<4x4xbf16>, vector<4x64xbf16>, vector<4x64xf32> -> vector<4x64xf32>
    %906 = arith.addf %899, %905 : vector<4x64xf32>
    %c0_561 = arith.constant 0 : index
    %c18_562 = arith.constant 18 : index
    %907 = vector.load %arg12[%c0_561, %c18_562] : memref<4x290xf32, #tpu.memory_space<vmem>>, vector<4x64xf32>
    %cst_563 = arith.constant 0.000000e+00 : f32
    %908 = vector.shape_cast %829 : vector<1x64xi1> to vector<1x64xi1>
    %909 = vector.broadcast %908 : vector<1x64xi1> to vector<4x64xi1>
    %910 = vector.broadcast %cst_563 : f32 to vector<4x64xf32>
    %911 = arith.select %909, %907, %910 : vector<4x64xi1>, vector<4x64xf32>
    %c53 = arith.constant 53 : index
    %c0_564 = arith.constant 0 : index
    %c0_565 = arith.constant 0 : index
    %912 = vector.load %arg2[%c53, %c0_564, %c0_565] : memref<63x4x4xf32, #tpu.memory_space<vmem>>, vector<1x4x4xf32>
    %913 = vector.shape_cast %912 : vector<1x4x4xf32> to vector<4x4xf32>
    %914 = arith.truncf %913 : vector<4x4xf32> to vector<4x4xbf16>
    %915 = arith.truncf %911 : vector<4x64xf32> to vector<4x64xbf16>
    %cst_566 = arith.constant dense<0.000000e+00> : vector<4x64xf32>
    %916 = tpu.matmul %914, %915, %cst_566 {dimension_numbers = #tpu.dot_dimension_numbers<[1], [0], [0], [1], [0, 0, 1, 1], [], []>} : vector<4x4xbf16>, vector<4x64xbf16>, vector<4x64xf32> -> vector<4x64xf32>
    %917 = arith.addf %906, %916 : vector<4x64xf32>
    %c5_567 = arith.constant 5 : index
    %c0_568 = arith.constant 0 : index
    %c0_569 = arith.constant 0 : index
    %918 = vector.load %arg3[%c5_567, %c0_568, %c0_569] : memref<7x4x1xf32, #tpu.memory_space<vmem>>, vector<1x4x1xf32>
    %919 = vector.shape_cast %918 : vector<1x4x1xf32> to vector<4x1xf32>
    %920 = vector.broadcast %919 : vector<4x1xf32> to vector<4x64xf32>
    %921 = arith.mulf %917, %920 : vector<4x64xf32>
    %c5_570 = arith.constant 5 : index
    %c0_571 = arith.constant 0 : index
    %c0_572 = arith.constant 0 : index
    %922 = vector.load %arg4[%c5_570, %c0_571, %c0_572] : memref<7x4x1xf32, #tpu.memory_space<vmem>>, vector<1x4x1xf32>
    %923 = vector.shape_cast %922 : vector<1x4x1xf32> to vector<4x1xf32>
    %924 = vector.broadcast %923 : vector<4x1xf32> to vector<4x64xf32>
    %925 = arith.addf %921, %924 : vector<4x64xf32>
    %926 = arith.negf %925 : vector<4x64xf32>
    %927 = math.exp %926 : vector<4x64xf32>
    %cst_573 = arith.constant 1.000000e+00 : f32
    %928 = vector.broadcast %cst_573 : f32 to vector<4x64xf32>
    %929 = arith.addf %928, %927 : vector<4x64xf32>
    %930 = arith.divf %928, %929 : vector<4x64xf32>
    %931 = arith.mulf %925, %930 : vector<4x64xf32>
    %c5_574 = arith.constant 5 : index
    %c0_575 = arith.constant 0 : index
    %c0_576 = arith.constant 0 : index
    %932 = vector.load %arg5[%c5_574, %c0_575, %c0_576] : memref<7x4x1xf32, #tpu.memory_space<vmem>>, vector<1x4x1xf32>
    %933 = vector.shape_cast %932 : vector<1x4x1xf32> to vector<4x1xf32>
    %934 = vector.broadcast %933 : vector<4x1xf32> to vector<4x64xf32>
    %935 = arith.mulf %931, %934 : vector<4x64xf32>
    %c5_577 = arith.constant 5 : index
    %c0_578 = arith.constant 0 : index
    %c0_579 = arith.constant 0 : index
    %936 = vector.load %arg6[%c5_577, %c0_578, %c0_579] : memref<7x4x1xf32, #tpu.memory_space<vmem>>, vector<1x4x1xf32>
    %937 = vector.shape_cast %936 : vector<1x4x1xf32> to vector<4x1xf32>
    %938 = vector.broadcast %937 : vector<4x1xf32> to vector<4x64xf32>
    %939 = arith.addf %935, %938 : vector<4x64xf32>
    %cst_580 = arith.constant 0.000000e+00 : f32
    %940 = vector.broadcast %cst_580 : f32 to vector<4x64xf32>
    %941 = arith.maximumf %939, %940 : vector<4x64xf32>
    %942 = arith.addf %941, %605 : vector<4x64xf32>
    %943 = vector.extract_strided_slice %942 {offsets = [0, 0], sizes = [4, 8], strides = [1, 1]} : vector<4x64xf32> to vector<4x8xf32>
    %c0_581 = arith.constant 0 : index
    %c0_582 = arith.constant 0 : index
    %944 = vector.load %arg13[%c0_581, %c0_582] : memref<64x16xf32, #tpu.memory_space<vmem>>, vector<4x8xf32>
    tpu.vector_store %arg13[%c0_581, %c0_582], %943 {strides = array<i32>} : memref<64x16xf32, #tpu.memory_space<vmem>>, vector<4x8xf32>,
    %945 = vector.extract_strided_slice %942 {offsets = [0, 8], sizes = [4, 8], strides = [1, 1]} : vector<4x64xf32> to vector<4x8xf32>
    %c4_583 = arith.constant 4 : index
    %c0_584 = arith.constant 0 : index
    %946 = vector.load %arg13[%c4_583, %c0_584] : memref<64x16xf32, #tpu.memory_space<vmem>>, vector<4x8xf32>
    tpu.vector_store %arg13[%c4_583, %c0_584], %945 {strides = array<i32>} : memref<64x16xf32, #tpu.memory_space<vmem>>, vector<4x8xf32>,
    %947 = vector.extract_strided_slice %942 {offsets = [0, 16], sizes = [4, 8], strides = [1, 1]} : vector<4x64xf32> to vector<4x8xf32>
    %c8_585 = arith.constant 8 : index
    %c0_586 = arith.constant 0 : index
    %948 = vector.load %arg13[%c8_585, %c0_586] : memref<64x16xf32, #tpu.memory_space<vmem>>, vector<4x8xf32>
    tpu.vector_store %arg13[%c8_585, %c0_586], %947 {strides = array<i32>} : memref<64x16xf32, #tpu.memory_space<vmem>>, vector<4x8xf32>,
    %949 = vector.extract_strided_slice %942 {offsets = [0, 24], sizes = [4, 8], strides = [1, 1]} : vector<4x64xf32> to vector<4x8xf32>
    %c12_587 = arith.constant 12 : index
    %c0_588 = arith.constant 0 : index
    %950 = vector.load %arg13[%c12_587, %c0_588] : memref<64x16xf32, #tpu.memory_space<vmem>>, vector<4x8xf32>
    tpu.vector_store %arg13[%c12_587, %c0_588], %949 {strides = array<i32>} : memref<64x16xf32, #tpu.memory_space<vmem>>, vector<4x8xf32>,
    %951 = vector.extract_strided_slice %942 {offsets = [0, 32], sizes = [4, 8], strides = [1, 1]} : vector<4x64xf32> to vector<4x8xf32>
    %c16_589 = arith.constant 16 : index
    %c0_590 = arith.constant 0 : index
    %952 = vector.load %arg13[%c16_589, %c0_590] : memref<64x16xf32, #tpu.memory_space<vmem>>, vector<4x8xf32>
    tpu.vector_store %arg13[%c16_589, %c0_590], %951 {strides = array<i32>} : memref<64x16xf32, #tpu.memory_space<vmem>>, vector<4x8xf32>,
    %953 = vector.extract_strided_slice %942 {offsets = [0, 40], sizes = [4, 8], strides = [1, 1]} : vector<4x64xf32> to vector<4x8xf32>
    %c20_591 = arith.constant 20 : index
    %c0_592 = arith.constant 0 : index
    %954 = vector.load %arg13[%c20_591, %c0_592] : memref<64x16xf32, #tpu.memory_space<vmem>>, vector<4x8xf32>
    tpu.vector_store %arg13[%c20_591, %c0_592], %953 {strides = array<i32>} : memref<64x16xf32, #tpu.memory_space<vmem>>, vector<4x8xf32>,
    %955 = vector.extract_strided_slice %942 {offsets = [0, 48], sizes = [4, 8], strides = [1, 1]} : vector<4x64xf32> to vector<4x8xf32>
    %c24_593 = arith.constant 24 : index
    %c0_594 = arith.constant 0 : index
    %956 = vector.load %arg13[%c24_593, %c0_594] : memref<64x16xf32, #tpu.memory_space<vmem>>, vector<4x8xf32>
    tpu.vector_store %arg13[%c24_593, %c0_594], %955 {strides = array<i32>} : memref<64x16xf32, #tpu.memory_space<vmem>>, vector<4x8xf32>,
    %957 = vector.extract_strided_slice %942 {offsets = [0, 56], sizes = [4, 8], strides = [1, 1]} : vector<4x64xf32> to vector<4x8xf32>
    %c28_595 = arith.constant 28 : index
    %c0_596 = arith.constant 0 : index
    %958 = vector.load %arg13[%c28_595, %c0_596] : memref<64x16xf32, #tpu.memory_space<vmem>>, vector<4x8xf32>
    tpu.vector_store %arg13[%c28_595, %c0_596], %957 {strides = array<i32>} : memref<64x16xf32, #tpu.memory_space<vmem>>, vector<4x8xf32>,
    %c0_597 = arith.constant 0 : index
    %c0_598 = arith.constant 0 : index
    %959 = vector.load %arg13[%c0_597, %c0_598] : memref<64x16xf32, #tpu.memory_space<vmem>>, vector<32x8xf32>
    %c0_599 = arith.constant 0 : index
    %c0_600 = arith.constant 0 : index
    %960 = vector.load %arg10[%c0_599, %c0_600] : memref<8x16xf32, #tpu.memory_space<vmem>>, vector<8x16xf32>
    %cst_601 = arith.constant dense<0.000000e+00> : vector<32x16xf32>
    %961 = tpu.matmul %959, %960, %cst_601 {dimension_numbers = #tpu.dot_dimension_numbers<[1], [0], [0], [1], [0, 0, 1, 1], [], []>} : vector<32x8xf32>, vector<8x16xf32>, vector<32x16xf32> -> vector<32x16xf32>
    %962 = vector.extract_strided_slice %961 {offsets = [0, 0], sizes = [4, 16], strides = [1, 1]} : vector<32x16xf32> to vector<4x16xf32>
    %c0_602 = arith.constant 0 : index
    %c0_603 = arith.constant 0 : index
    %963 = vector.load %arg14[%c0_602, %c0_603] : memref<4x256xf32, #tpu.memory_space<vmem>>, vector<4x16xf32>
    tpu.vector_store %arg14[%c0_602, %c0_603], %962 {strides = array<i32>} : memref<4x256xf32, #tpu.memory_space<vmem>>, vector<4x16xf32>,
    %964 = vector.extract_strided_slice %961 {offsets = [0, 0], sizes = [4, 16], strides = [1, 1]} : vector<32x16xf32> to vector<4x16xf32>
    %cst_604 = arith.constant 0.533333361 : f32
    %965 = vector.broadcast %cst_604 : f32 to vector<4x16xf32>
    %966 = arith.mulf %964, %965 : vector<4x16xf32>
    %967 = vector.extract_strided_slice %961 {offsets = [4, 0], sizes = [4, 16], strides = [1, 1]} : vector<32x16xf32> to vector<4x16xf32>
    %cst_605 = arith.constant 0.466666669 : f32
    %968 = vector.broadcast %cst_605 : f32 to vector<4x16xf32>
    %969 = arith.mulf %967, %968 : vector<4x16xf32>
    %970 = arith.addf %966, %969 : vector<4x16xf32>
    %c0_606 = arith.constant 0 : index
    %c16_607 = arith.constant 16 : index
    %971 = vector.load %arg14[%c0_606, %c16_607] : memref<4x256xf32, #tpu.memory_space<vmem>>, vector<4x16xf32>
    tpu.vector_store %arg14[%c0_606, %c16_607], %970 {strides = array<i32>} : memref<4x256xf32, #tpu.memory_space<vmem>>, vector<4x16xf32>,
    %972 = vector.extract_strided_slice %961 {offsets = [0, 0], sizes = [4, 16], strides = [1, 1]} : vector<32x16xf32> to vector<4x16xf32>
    %cst_608 = arith.constant 0.0666666701 : f32
    %973 = vector.broadcast %cst_608 : f32 to vector<4x16xf32>
    %974 = arith.mulf %972, %973 : vector<4x16xf32>
    %975 = vector.extract_strided_slice %961 {offsets = [4, 0], sizes = [4, 16], strides = [1, 1]} : vector<32x16xf32> to vector<4x16xf32>
    %cst_609 = arith.constant 0.933333337 : f32
    %976 = vector.broadcast %cst_609 : f32 to vector<4x16xf32>
    %977 = arith.mulf %975, %976 : vector<4x16xf32>
    %978 = arith.addf %974, %977 : vector<4x16xf32>
    %c0_610 = arith.constant 0 : index
    %c32_611 = arith.constant 32 : index
    %979 = vector.load %arg14[%c0_610, %c32_611] : memref<4x256xf32, #tpu.memory_space<vmem>>, vector<4x16xf32>
    tpu.vector_store %arg14[%c0_610, %c32_611], %978 {strides = array<i32>} : memref<4x256xf32, #tpu.memory_space<vmem>>, vector<4x16xf32>,
    %980 = vector.extract_strided_slice %961 {offsets = [4, 0], sizes = [4, 16], strides = [1, 1]} : vector<32x16xf32> to vector<4x16xf32>
    %cst_612 = arith.constant 6.000000e-01 : f32
    %981 = vector.broadcast %cst_612 : f32 to vector<4x16xf32>
    %982 = arith.mulf %980, %981 : vector<4x16xf32>
    %983 = vector.extract_strided_slice %961 {offsets = [8, 0], sizes = [4, 16], strides = [1, 1]} : vector<32x16xf32> to vector<4x16xf32>
    %cst_613 = arith.constant 4.000000e-01 : f32
    %984 = vector.broadcast %cst_613 : f32 to vector<4x16xf32>
    %985 = arith.mulf %983, %984 : vector<4x16xf32>
    %986 = arith.addf %982, %985 : vector<4x16xf32>
    %c0_614 = arith.constant 0 : index
    %c48_615 = arith.constant 48 : index
    %987 = vector.load %arg14[%c0_614, %c48_615] : memref<4x256xf32, #tpu.memory_space<vmem>>, vector<4x16xf32>
    tpu.vector_store %arg14[%c0_614, %c48_615], %986 {strides = array<i32>} : memref<4x256xf32, #tpu.memory_space<vmem>>, vector<4x16xf32>,
    %988 = vector.extract_strided_slice %961 {offsets = [4, 0], sizes = [4, 16], strides = [1, 1]} : vector<32x16xf32> to vector<4x16xf32>
    %cst_616 = arith.constant 0.13333334 : f32
    %989 = vector.broadcast %cst_616 : f32 to vector<4x16xf32>
    %990 = arith.mulf %988, %989 : vector<4x16xf32>
    %991 = vector.extract_strided_slice %961 {offsets = [8, 0], sizes = [4, 16], strides = [1, 1]} : vector<32x16xf32> to vector<4x16xf32>
    %cst_617 = arith.constant 0.866666674 : f32
    %992 = vector.broadcast %cst_617 : f32 to vector<4x16xf32>
    %993 = arith.mulf %991, %992 : vector<4x16xf32>
    %994 = arith.addf %990, %993 : vector<4x16xf32>
    %c0_618 = arith.constant 0 : index
    %c64 = arith.constant 64 : index
    %995 = vector.load %arg14[%c0_618, %c64] : memref<4x256xf32, #tpu.memory_space<vmem>>, vector<4x16xf32>
    tpu.vector_store %arg14[%c0_618, %c64], %994 {strides = array<i32>} : memref<4x256xf32, #tpu.memory_space<vmem>>, vector<4x16xf32>,
    %996 = vector.extract_strided_slice %961 {offsets = [8, 0], sizes = [4, 16], strides = [1, 1]} : vector<32x16xf32> to vector<4x16xf32>
    %cst_619 = arith.constant 0.666666686 : f32
    %997 = vector.broadcast %cst_619 : f32 to vector<4x16xf32>
    %998 = arith.mulf %996, %997 : vector<4x16xf32>
    %999 = vector.extract_strided_slice %961 {offsets = [12, 0], sizes = [4, 16], strides = [1, 1]} : vector<32x16xf32> to vector<4x16xf32>
    %cst_620 = arith.constant 0.333333343 : f32
    %1000 = vector.broadcast %cst_620 : f32 to vector<4x16xf32>
    %1001 = arith.mulf %999, %1000 : vector<4x16xf32>
    %1002 = arith.addf %998, %1001 : vector<4x16xf32>
    %c0_621 = arith.constant 0 : index
    %c80 = arith.constant 80 : index
    %1003 = vector.load %arg14[%c0_621, %c80] : memref<4x256xf32, #tpu.memory_space<vmem>>, vector<4x16xf32>
    tpu.vector_store %arg14[%c0_621, %c80], %1002 {strides = array<i32>} : memref<4x256xf32, #tpu.memory_space<vmem>>, vector<4x16xf32>,
    %1004 = vector.extract_strided_slice %961 {offsets = [8, 0], sizes = [4, 16], strides = [1, 1]} : vector<32x16xf32> to vector<4x16xf32>
    %cst_622 = arith.constant 2.000000e-01 : f32
    %1005 = vector.broadcast %cst_622 : f32 to vector<4x16xf32>
    %1006 = arith.mulf %1004, %1005 : vector<4x16xf32>
    %1007 = vector.extract_strided_slice %961 {offsets = [12, 0], sizes = [4, 16], strides = [1, 1]} : vector<32x16xf32> to vector<4x16xf32>
    %cst_623 = arith.constant 8.000000e-01 : f32
    %1008 = vector.broadcast %cst_623 : f32 to vector<4x16xf32>
    %1009 = arith.mulf %1007, %1008 : vector<4x16xf32>
    %1010 = arith.addf %1006, %1009 : vector<4x16xf32>
    %c0_624 = arith.constant 0 : index
    %c96 = arith.constant 96 : index
    %1011 = vector.load %arg14[%c0_624, %c96] : memref<4x256xf32, #tpu.memory_space<vmem>>, vector<4x16xf32>
    tpu.vector_store %arg14[%c0_624, %c96], %1010 {strides = array<i32>} : memref<4x256xf32, #tpu.memory_space<vmem>>, vector<4x16xf32>,
    %1012 = vector.extract_strided_slice %961 {offsets = [12, 0], sizes = [4, 16], strides = [1, 1]} : vector<32x16xf32> to vector<4x16xf32>
    %cst_625 = arith.constant 0.733333349 : f32
    %1013 = vector.broadcast %cst_625 : f32 to vector<4x16xf32>
    %1014 = arith.mulf %1012, %1013 : vector<4x16xf32>
    %1015 = vector.extract_strided_slice %961 {offsets = [16, 0], sizes = [4, 16], strides = [1, 1]} : vector<32x16xf32> to vector<4x16xf32>
    %cst_626 = arith.constant 0.266666681 : f32
    %1016 = vector.broadcast %cst_626 : f32 to vector<4x16xf32>
    %1017 = arith.mulf %1015, %1016 : vector<4x16xf32>
    %1018 = arith.addf %1014, %1017 : vector<4x16xf32>
    %c0_627 = arith.constant 0 : index
    %c112 = arith.constant 112 : index
    %1019 = vector.load %arg14[%c0_627, %c112] : memref<4x256xf32, #tpu.memory_space<vmem>>, vector<4x16xf32>
    tpu.vector_store %arg14[%c0_627, %c112], %1018 {strides = array<i32>} : memref<4x256xf32, #tpu.memory_space<vmem>>, vector<4x16xf32>,
    %1020 = vector.extract_strided_slice %961 {offsets = [12, 0], sizes = [4, 16], strides = [1, 1]} : vector<32x16xf32> to vector<4x16xf32>
    %cst_628 = arith.constant 0.266666681 : f32
    %1021 = vector.broadcast %cst_628 : f32 to vector<4x16xf32>
    %1022 = arith.mulf %1020, %1021 : vector<4x16xf32>
    %1023 = vector.extract_strided_slice %961 {offsets = [16, 0], sizes = [4, 16], strides = [1, 1]} : vector<32x16xf32> to vector<4x16xf32>
    %cst_629 = arith.constant 0.733333349 : f32
    %1024 = vector.broadcast %cst_629 : f32 to vector<4x16xf32>
    %1025 = arith.mulf %1023, %1024 : vector<4x16xf32>
    %1026 = arith.addf %1022, %1025 : vector<4x16xf32>
    %c0_630 = arith.constant 0 : index
    %c128 = arith.constant 128 : index
    %1027 = vector.load %arg14[%c0_630, %c128] : memref<4x256xf32, #tpu.memory_space<vmem>>, vector<4x16xf32>
    tpu.vector_store %arg14[%c0_630, %c128], %1026 {strides = array<i32>} : memref<4x256xf32, #tpu.memory_space<vmem>>, vector<4x16xf32>,
    %1028 = vector.extract_strided_slice %961 {offsets = [16, 0], sizes = [4, 16], strides = [1, 1]} : vector<32x16xf32> to vector<4x16xf32>
    %cst_631 = arith.constant 8.000000e-01 : f32
    %1029 = vector.broadcast %cst_631 : f32 to vector<4x16xf32>
    %1030 = arith.mulf %1028, %1029 : vector<4x16xf32>
    %1031 = vector.extract_strided_slice %961 {offsets = [20, 0], sizes = [4, 16], strides = [1, 1]} : vector<32x16xf32> to vector<4x16xf32>
    %cst_632 = arith.constant 2.000000e-01 : f32
    %1032 = vector.broadcast %cst_632 : f32 to vector<4x16xf32>
    %1033 = arith.mulf %1031, %1032 : vector<4x16xf32>
    %1034 = arith.addf %1030, %1033 : vector<4x16xf32>
    %c0_633 = arith.constant 0 : index
    %c144 = arith.constant 144 : index
    %1035 = vector.load %arg14[%c0_633, %c144] : memref<4x256xf32, #tpu.memory_space<vmem>>, vector<4x16xf32>
    tpu.vector_store %arg14[%c0_633, %c144], %1034 {strides = array<i32>} : memref<4x256xf32, #tpu.memory_space<vmem>>, vector<4x16xf32>,
    %1036 = vector.extract_strided_slice %961 {offsets = [16, 0], sizes = [4, 16], strides = [1, 1]} : vector<32x16xf32> to vector<4x16xf32>
    %cst_634 = arith.constant 0.333333343 : f32
    %1037 = vector.broadcast %cst_634 : f32 to vector<4x16xf32>
    %1038 = arith.mulf %1036, %1037 : vector<4x16xf32>
    %1039 = vector.extract_strided_slice %961 {offsets = [20, 0], sizes = [4, 16], strides = [1, 1]} : vector<32x16xf32> to vector<4x16xf32>
    %cst_635 = arith.constant 0.666666686 : f32
    %1040 = vector.broadcast %cst_635 : f32 to vector<4x16xf32>
    %1041 = arith.mulf %1039, %1040 : vector<4x16xf32>
    %1042 = arith.addf %1038, %1041 : vector<4x16xf32>
    %c0_636 = arith.constant 0 : index
    %c160 = arith.constant 160 : index
    %1043 = vector.load %arg14[%c0_636, %c160] : memref<4x256xf32, #tpu.memory_space<vmem>>, vector<4x16xf32>
    tpu.vector_store %arg14[%c0_636, %c160], %1042 {strides = array<i32>} : memref<4x256xf32, #tpu.memory_space<vmem>>, vector<4x16xf32>,
    %1044 = vector.extract_strided_slice %961 {offsets = [20, 0], sizes = [4, 16], strides = [1, 1]} : vector<32x16xf32> to vector<4x16xf32>
    %cst_637 = arith.constant 0.866666674 : f32
    %1045 = vector.broadcast %cst_637 : f32 to vector<4x16xf32>
    %1046 = arith.mulf %1044, %1045 : vector<4x16xf32>
    %1047 = vector.extract_strided_slice %961 {offsets = [24, 0], sizes = [4, 16], strides = [1, 1]} : vector<32x16xf32> to vector<4x16xf32>
    %cst_638 = arith.constant 0.13333334 : f32
    %1048 = vector.broadcast %cst_638 : f32 to vector<4x16xf32>
    %1049 = arith.mulf %1047, %1048 : vector<4x16xf32>
    %1050 = arith.addf %1046, %1049 : vector<4x16xf32>
    %c0_639 = arith.constant 0 : index
    %c176 = arith.constant 176 : index
    %1051 = vector.load %arg14[%c0_639, %c176] : memref<4x256xf32, #tpu.memory_space<vmem>>, vector<4x16xf32>
    tpu.vector_store %arg14[%c0_639, %c176], %1050 {strides = array<i32>} : memref<4x256xf32, #tpu.memory_space<vmem>>, vector<4x16xf32>,
    %1052 = vector.extract_strided_slice %961 {offsets = [20, 0], sizes = [4, 16], strides = [1, 1]} : vector<32x16xf32> to vector<4x16xf32>
    %cst_640 = arith.constant 4.000000e-01 : f32
    %1053 = vector.broadcast %cst_640 : f32 to vector<4x16xf32>
    %1054 = arith.mulf %1052, %1053 : vector<4x16xf32>
    %1055 = vector.extract_strided_slice %961 {offsets = [24, 0], sizes = [4, 16], strides = [1, 1]} : vector<32x16xf32> to vector<4x16xf32>
    %cst_641 = arith.constant 6.000000e-01 : f32
    %1056 = vector.broadcast %cst_641 : f32 to vector<4x16xf32>
    %1057 = arith.mulf %1055, %1056 : vector<4x16xf32>
    %1058 = arith.addf %1054, %1057 : vector<4x16xf32>
    %c0_642 = arith.constant 0 : index
    %c192 = arith.constant 192 : index
    %1059 = vector.load %arg14[%c0_642, %c192] : memref<4x256xf32, #tpu.memory_space<vmem>>, vector<4x16xf32>
    tpu.vector_store %arg14[%c0_642, %c192], %1058 {strides = array<i32>} : memref<4x256xf32, #tpu.memory_space<vmem>>, vector<4x16xf32>,
    %1060 = vector.extract_strided_slice %961 {offsets = [24, 0], sizes = [4, 16], strides = [1, 1]} : vector<32x16xf32> to vector<4x16xf32>
    %cst_643 = arith.constant 0.933333337 : f32
    %1061 = vector.broadcast %cst_643 : f32 to vector<4x16xf32>
    %1062 = arith.mulf %1060, %1061 : vector<4x16xf32>
    %1063 = vector.extract_strided_slice %961 {offsets = [28, 0], sizes = [4, 16], strides = [1, 1]} : vector<32x16xf32> to vector<4x16xf32>
    %cst_644 = arith.constant 0.0666666701 : f32
    %1064 = vector.broadcast %cst_644 : f32 to vector<4x16xf32>
    %1065 = arith.mulf %1063, %1064 : vector<4x16xf32>
    %1066 = arith.addf %1062, %1065 : vector<4x16xf32>
    %c0_645 = arith.constant 0 : index
    %c208 = arith.constant 208 : index
    %1067 = vector.load %arg14[%c0_645, %c208] : memref<4x256xf32, #tpu.memory_space<vmem>>, vector<4x16xf32>
    tpu.vector_store %arg14[%c0_645, %c208], %1066 {strides = array<i32>} : memref<4x256xf32, #tpu.memory_space<vmem>>, vector<4x16xf32>,
    %1068 = vector.extract_strided_slice %961 {offsets = [24, 0], sizes = [4, 16], strides = [1, 1]} : vector<32x16xf32> to vector<4x16xf32>
    %cst_646 = arith.constant 0.466666669 : f32
    %1069 = vector.broadcast %cst_646 : f32 to vector<4x16xf32>
    %1070 = arith.mulf %1068, %1069 : vector<4x16xf32>
    %1071 = vector.extract_strided_slice %961 {offsets = [28, 0], sizes = [4, 16], strides = [1, 1]} : vector<32x16xf32> to vector<4x16xf32>
    %cst_647 = arith.constant 0.533333361 : f32
    %1072 = vector.broadcast %cst_647 : f32 to vector<4x16xf32>
    %1073 = arith.mulf %1071, %1072 : vector<4x16xf32>
    %1074 = arith.addf %1070, %1073 : vector<4x16xf32>
    %c0_648 = arith.constant 0 : index
    %c224 = arith.constant 224 : index
    %1075 = vector.load %arg14[%c0_648, %c224] : memref<4x256xf32, #tpu.memory_space<vmem>>, vector<4x16xf32>
    tpu.vector_store %arg14[%c0_648, %c224], %1074 {strides = array<i32>} : memref<4x256xf32, #tpu.memory_space<vmem>>, vector<4x16xf32>,
    %1076 = vector.extract_strided_slice %961 {offsets = [28, 0], sizes = [4, 16], strides = [1, 1]} : vector<32x16xf32> to vector<4x16xf32>
    %c0_649 = arith.constant 0 : index
    %c240 = arith.constant 240 : index
    %1077 = vector.load %arg14[%c0_649, %c240] : memref<4x256xf32, #tpu.memory_space<vmem>>, vector<4x16xf32>
    tpu.vector_store %arg14[%c0_649, %c240], %1076 {strides = array<i32>} : memref<4x256xf32, #tpu.memory_space<vmem>>, vector<4x16xf32>,
    %c0_650 = arith.constant 0 : index
    %c0_651 = arith.constant 0 : index
    %1078 = vector.load %arg14[%c0_650, %c0_651] : memref<4x256xf32, #tpu.memory_space<vmem>>, vector<4x256xf32>
    %cst_652 = arith.constant 0.000000e+00 : f32
    %1079 = vector.broadcast %cst_652 : f32 to vector<4x290xf32>
    %c0_653 = arith.constant 0 : index
    %c0_654 = arith.constant 0 : index
    %1080 = vector.load %arg12[%c0_653, %c0_654] : memref<4x290xf32, #tpu.memory_space<vmem>>, vector<4x290xf32>
    tpu.vector_store %arg12[%c0_653, %c0_654], %1079 {strides = array<i32>} : memref<4x290xf32, #tpu.memory_space<vmem>>, vector<4x290xf32>,
    %c0_655 = arith.constant 0 : index
    %c17_656 = arith.constant 17 : index
    %1081 = vector.load %arg12[%c0_655, %c17_656] : memref<4x290xf32, #tpu.memory_space<vmem>>, vector<4x256xf32>
    tpu.vector_store %arg12[%c0_655, %c17_656], %1078 {strides = array<i32>} : memref<4x290xf32, #tpu.memory_space<vmem>>, vector<4x256xf32>,
    %1082 = tpu.iota {dimensions = array<i32: 1>} : vector<1x256xi32>
    %c16_i32_657 = arith.constant 16 : i32
    %c0_i32_658 = arith.constant 0 : i32
    %1083 = arith.cmpi eq, %c16_i32_657, %c0_i32_658 : i32
    %c1_i32_659 = arith.constant 1 : i32
    %1084 = arith.select %1083, %c1_i32_659, %c16_i32_657 : i32
    %1085 = vector.broadcast %1084 : i32 to vector<1x256xi32>
    %1086 = arith.remsi %1082, %1085 : vector<1x256xi32>
    %c0_i32_660 = arith.constant 0 : i32
    %1087 = vector.broadcast %c0_i32_660 : i32 to vector<1x256xi32>
    %1088 = arith.cmpi ne, %1086, %1087 : vector<1x256xi32>
    %c0_i32_661 = arith.constant 0 : i32
    %1089 = vector.broadcast %c0_i32_661 : i32 to vector<1x256xi32>
    %1090 = arith.cmpi slt, %1086, %1089 : vector<1x256xi32>
    %c0_i32_662 = arith.constant 0 : i32
    %1091 = arith.cmpi slt, %1084, %c0_i32_662 : i32
    %1092 = vector.broadcast %1091 : i1 to vector<1x256xi1>
    %1093 = vector.broadcast %1092 : vector<1x256xi1> to vector<1x256xi1>
    %1094 = arith.xori %1090, %1093 : vector<1x256xi1>
    %1095 = arith.andi %1094, %1088 : vector<1x256xi1>
    %1096 = vector.broadcast %1084 : i32 to vector<1x256xi32>
    %1097 = arith.addi %1086, %1096 : vector<1x256xi32>
    %1098 = arith.select %1095, %1097, %1086 : vector<1x256xi1>, vector<1x256xi32>
    %c0_i32_663 = arith.constant 0 : i32
    %1099 = vector.broadcast %c0_i32_663 : i32 to vector<1x256xi32>
    %1100 = arith.cmpi sgt, %1098, %1099 : vector<1x256xi32>
    %c15_i32_664 = arith.constant 15 : i32
    %1101 = vector.broadcast %c15_i32_664 : i32 to vector<1x256xi32>
    %1102 = arith.cmpi slt, %1098, %1101 : vector<1x256xi32>
    %cst_665 = arith.constant 0.000000e+00 : f32
    %1103 = vector.broadcast %cst_665 : f32 to vector<4x256xf32>
    %c0_666 = arith.constant 0 : index
    %c0_667 = arith.constant 0 : index
    %1104 = vector.load %arg12[%c0_666, %c0_667] : memref<4x290xf32, #tpu.memory_space<vmem>>, vector<4x256xf32>
    %cst_668 = arith.constant 0.000000e+00 : f32
    %1105 = vector.shape_cast %1100 : vector<1x256xi1> to vector<1x256xi1>
    %1106 = vector.broadcast %1105 : vector<1x256xi1> to vector<4x256xi1>
    %1107 = vector.broadcast %cst_668 : f32 to vector<4x256xf32>
    %1108 = arith.select %1106, %1104, %1107 : vector<4x256xi1>, vector<4x256xf32>
    %c54 = arith.constant 54 : index
    %c0_669 = arith.constant 0 : index
    %c0_670 = arith.constant 0 : index
    %1109 = vector.load %arg2[%c54, %c0_669, %c0_670] : memref<63x4x4xf32, #tpu.memory_space<vmem>>, vector<1x4x4xf32>
    %1110 = vector.shape_cast %1109 : vector<1x4x4xf32> to vector<4x4xf32>
    %1111 = arith.truncf %1110 : vector<4x4xf32> to vector<4x4xbf16>
    %1112 = arith.truncf %1108 : vector<4x256xf32> to vector<4x256xbf16>
    %cst_671 = arith.constant dense<0.000000e+00> : vector<4x256xf32>
    %1113 = tpu.matmul %1111, %1112, %cst_671 {dimension_numbers = #tpu.dot_dimension_numbers<[1], [0], [0], [1], [0, 0, 1, 1], [], []>} : vector<4x4xbf16>, vector<4x256xbf16>, vector<4x256xf32> -> vector<4x256xf32>
    %1114 = arith.addf %1103, %1113 : vector<4x256xf32>
    %c0_672 = arith.constant 0 : index
    %c1_673 = arith.constant 1 : index
    %1115 = vector.load %arg12[%c0_672, %c1_673] : memref<4x290xf32, #tpu.memory_space<vmem>>, vector<4x256xf32>
    %c55 = arith.constant 55 : index
    %c0_674 = arith.constant 0 : index
    %c0_675 = arith.constant 0 : index
    %1116 = vector.load %arg2[%c55, %c0_674, %c0_675] : memref<63x4x4xf32, #tpu.memory_space<vmem>>, vector<1x4x4xf32>
    %1117 = vector.shape_cast %1116 : vector<1x4x4xf32> to vector<4x4xf32>
    %1118 = arith.truncf %1117 : vector<4x4xf32> to vector<4x4xbf16>
    %1119 = arith.truncf %1115 : vector<4x256xf32> to vector<4x256xbf16>
    %cst_676 = arith.constant dense<0.000000e+00> : vector<4x256xf32>
    %1120 = tpu.matmul %1118, %1119, %cst_676 {dimension_numbers = #tpu.dot_dimension_numbers<[1], [0], [0], [1], [0, 0, 1, 1], [], []>} : vector<4x4xbf16>, vector<4x256xbf16>, vector<4x256xf32> -> vector<4x256xf32>
    %1121 = arith.addf %1114, %1120 : vector<4x256xf32>
    %c0_677 = arith.constant 0 : index
    %c2_678 = arith.constant 2 : index
    %1122 = vector.load %arg12[%c0_677, %c2_678] : memref<4x290xf32, #tpu.memory_space<vmem>>, vector<4x256xf32>
    %cst_679 = arith.constant 0.000000e+00 : f32
    %1123 = vector.shape_cast %1102 : vector<1x256xi1> to vector<1x256xi1>
    %1124 = vector.broadcast %1123 : vector<1x256xi1> to vector<4x256xi1>
    %1125 = vector.broadcast %cst_679 : f32 to vector<4x256xf32>
    %1126 = arith.select %1124, %1122, %1125 : vector<4x256xi1>, vector<4x256xf32>
    %c56_680 = arith.constant 56 : index
    %c0_681 = arith.constant 0 : index
    %c0_682 = arith.constant 0 : index
    %1127 = vector.load %arg2[%c56_680, %c0_681, %c0_682] : memref<63x4x4xf32, #tpu.memory_space<vmem>>, vector<1x4x4xf32>
    %1128 = vector.shape_cast %1127 : vector<1x4x4xf32> to vector<4x4xf32>
    %1129 = arith.truncf %1128 : vector<4x4xf32> to vector<4x4xbf16>
    %1130 = arith.truncf %1126 : vector<4x256xf32> to vector<4x256xbf16>
    %cst_683 = arith.constant dense<0.000000e+00> : vector<4x256xf32>
    %1131 = tpu.matmul %1129, %1130, %cst_683 {dimension_numbers = #tpu.dot_dimension_numbers<[1], [0], [0], [1], [0, 0, 1, 1], [], []>} : vector<4x4xbf16>, vector<4x256xbf16>, vector<4x256xf32> -> vector<4x256xf32>
    %1132 = arith.addf %1121, %1131 : vector<4x256xf32>
    %c0_684 = arith.constant 0 : index
    %c16_685 = arith.constant 16 : index
    %1133 = vector.load %arg12[%c0_684, %c16_685] : memref<4x290xf32, #tpu.memory_space<vmem>>, vector<4x256xf32>
    %cst_686 = arith.constant 0.000000e+00 : f32
    %1134 = vector.shape_cast %1100 : vector<1x256xi1> to vector<1x256xi1>
    %1135 = vector.broadcast %1134 : vector<1x256xi1> to vector<4x256xi1>
    %1136 = vector.broadcast %cst_686 : f32 to vector<4x256xf32>
    %1137 = arith.select %1135, %1133, %1136 : vector<4x256xi1>, vector<4x256xf32>
    %c57 = arith.constant 57 : index
    %c0_687 = arith.constant 0 : index
    %c0_688 = arith.constant 0 : index
    %1138 = vector.load %arg2[%c57, %c0_687, %c0_688] : memref<63x4x4xf32, #tpu.memory_space<vmem>>, vector<1x4x4xf32>
    %1139 = vector.shape_cast %1138 : vector<1x4x4xf32> to vector<4x4xf32>
    %1140 = arith.truncf %1139 : vector<4x4xf32> to vector<4x4xbf16>
    %1141 = arith.truncf %1137 : vector<4x256xf32> to vector<4x256xbf16>
    %cst_689 = arith.constant dense<0.000000e+00> : vector<4x256xf32>
    %1142 = tpu.matmul %1140, %1141, %cst_689 {dimension_numbers = #tpu.dot_dimension_numbers<[1], [0], [0], [1], [0, 0, 1, 1], [], []>} : vector<4x4xbf16>, vector<4x256xbf16>, vector<4x256xf32> -> vector<4x256xf32>
    %1143 = arith.addf %1132, %1142 : vector<4x256xf32>
    %c0_690 = arith.constant 0 : index
    %c17_691 = arith.constant 17 : index
    %1144 = vector.load %arg12[%c0_690, %c17_691] : memref<4x290xf32, #tpu.memory_space<vmem>>, vector<4x256xf32>
    %c58 = arith.constant 58 : index
    %c0_692 = arith.constant 0 : index
    %c0_693 = arith.constant 0 : index
    %1145 = vector.load %arg2[%c58, %c0_692, %c0_693] : memref<63x4x4xf32, #tpu.memory_space<vmem>>, vector<1x4x4xf32>
    %1146 = vector.shape_cast %1145 : vector<1x4x4xf32> to vector<4x4xf32>
    %1147 = arith.truncf %1146 : vector<4x4xf32> to vector<4x4xbf16>
    %1148 = arith.truncf %1144 : vector<4x256xf32> to vector<4x256xbf16>
    %cst_694 = arith.constant dense<0.000000e+00> : vector<4x256xf32>
    %1149 = tpu.matmul %1147, %1148, %cst_694 {dimension_numbers = #tpu.dot_dimension_numbers<[1], [0], [0], [1], [0, 0, 1, 1], [], []>} : vector<4x4xbf16>, vector<4x256xbf16>, vector<4x256xf32> -> vector<4x256xf32>
    %1150 = arith.addf %1143, %1149 : vector<4x256xf32>
    %c0_695 = arith.constant 0 : index
    %c18_696 = arith.constant 18 : index
    %1151 = vector.load %arg12[%c0_695, %c18_696] : memref<4x290xf32, #tpu.memory_space<vmem>>, vector<4x256xf32>
    %cst_697 = arith.constant 0.000000e+00 : f32
    %1152 = vector.shape_cast %1102 : vector<1x256xi1> to vector<1x256xi1>
    %1153 = vector.broadcast %1152 : vector<1x256xi1> to vector<4x256xi1>
    %1154 = vector.broadcast %cst_697 : f32 to vector<4x256xf32>
    %1155 = arith.select %1153, %1151, %1154 : vector<4x256xi1>, vector<4x256xf32>
    %c59 = arith.constant 59 : index
    %c0_698 = arith.constant 0 : index
    %c0_699 = arith.constant 0 : index
    %1156 = vector.load %arg2[%c59, %c0_698, %c0_699] : memref<63x4x4xf32, #tpu.memory_space<vmem>>, vector<1x4x4xf32>
    %1157 = vector.shape_cast %1156 : vector<1x4x4xf32> to vector<4x4xf32>
    %1158 = arith.truncf %1157 : vector<4x4xf32> to vector<4x4xbf16>
    %1159 = arith.truncf %1155 : vector<4x256xf32> to vector<4x256xbf16>
    %cst_700 = arith.constant dense<0.000000e+00> : vector<4x256xf32>
    %1160 = tpu.matmul %1158, %1159, %cst_700 {dimension_numbers = #tpu.dot_dimension_numbers<[1], [0], [0], [1], [0, 0, 1, 1], [], []>} : vector<4x4xbf16>, vector<4x256xbf16>, vector<4x256xf32> -> vector<4x256xf32>
    %1161 = arith.addf %1150, %1160 : vector<4x256xf32>
    %c0_701 = arith.constant 0 : index
    %c32_702 = arith.constant 32 : index
    %1162 = vector.load %arg12[%c0_701, %c32_702] : memref<4x290xf32, #tpu.memory_space<vmem>>, vector<4x256xf32>
    %cst_703 = arith.constant 0.000000e+00 : f32
    %1163 = vector.shape_cast %1100 : vector<1x256xi1> to vector<1x256xi1>
    %1164 = vector.broadcast %1163 : vector<1x256xi1> to vector<4x256xi1>
    %1165 = vector.broadcast %cst_703 : f32 to vector<4x256xf32>
    %1166 = arith.select %1164, %1162, %1165 : vector<4x256xi1>, vector<4x256xf32>
    %c60_704 = arith.constant 60 : index
    %c0_705 = arith.constant 0 : index
    %c0_706 = arith.constant 0 : index
    %1167 = vector.load %arg2[%c60_704, %c0_705, %c0_706] : memref<63x4x4xf32, #tpu.memory_space<vmem>>, vector<1x4x4xf32>
    %1168 = vector.shape_cast %1167 : vector<1x4x4xf32> to vector<4x4xf32>
    %1169 = arith.truncf %1168 : vector<4x4xf32> to vector<4x4xbf16>
    %1170 = arith.truncf %1166 : vector<4x256xf32> to vector<4x256xbf16>
    %cst_707 = arith.constant dense<0.000000e+00> : vector<4x256xf32>
    %1171 = tpu.matmul %1169, %1170, %cst_707 {dimension_numbers = #tpu.dot_dimension_numbers<[1], [0], [0], [1], [0, 0, 1, 1], [], []>} : vector<4x4xbf16>, vector<4x256xbf16>, vector<4x256xf32> -> vector<4x256xf32>
    %1172 = arith.addf %1161, %1171 : vector<4x256xf32>
    %c0_708 = arith.constant 0 : index
    %c33_709 = arith.constant 33 : index
    %1173 = vector.load %arg12[%c0_708, %c33_709] : memref<4x290xf32, #tpu.memory_space<vmem>>, vector<4x256xf32>
    %c61 = arith.constant 61 : index
    %c0_710 = arith.constant 0 : index
    %c0_711 = arith.constant 0 : index
    %1174 = vector.load %arg2[%c61, %c0_710, %c0_711] : memref<63x4x4xf32, #tpu.memory_space<vmem>>, vector<1x4x4xf32>
    %1175 = vector.shape_cast %1174 : vector<1x4x4xf32> to vector<4x4xf32>
    %1176 = arith.truncf %1175 : vector<4x4xf32> to vector<4x4xbf16>
    %1177 = arith.truncf %1173 : vector<4x256xf32> to vector<4x256xbf16>
    %cst_712 = arith.constant dense<0.000000e+00> : vector<4x256xf32>
    %1178 = tpu.matmul %1176, %1177, %cst_712 {dimension_numbers = #tpu.dot_dimension_numbers<[1], [0], [0], [1], [0, 0, 1, 1], [], []>} : vector<4x4xbf16>, vector<4x256xbf16>, vector<4x256xf32> -> vector<4x256xf32>
    %1179 = arith.addf %1172, %1178 : vector<4x256xf32>
    %c0_713 = arith.constant 0 : index
    %c34_714 = arith.constant 34 : index
    %1180 = vector.load %arg12[%c0_713, %c34_714] : memref<4x290xf32, #tpu.memory_space<vmem>>, vector<4x256xf32>
    %cst_715 = arith.constant 0.000000e+00 : f32
    %1181 = vector.shape_cast %1102 : vector<1x256xi1> to vector<1x256xi1>
    %1182 = vector.broadcast %1181 : vector<1x256xi1> to vector<4x256xi1>
    %1183 = vector.broadcast %cst_715 : f32 to vector<4x256xf32>
    %1184 = arith.select %1182, %1180, %1183 : vector<4x256xi1>, vector<4x256xf32>
    %c62 = arith.constant 62 : index
    %c0_716 = arith.constant 0 : index
    %c0_717 = arith.constant 0 : index
    %1185 = vector.load %arg2[%c62, %c0_716, %c0_717] : memref<63x4x4xf32, #tpu.memory_space<vmem>>, vector<1x4x4xf32>
    %1186 = vector.shape_cast %1185 : vector<1x4x4xf32> to vector<4x4xf32>
    %1187 = arith.truncf %1186 : vector<4x4xf32> to vector<4x4xbf16>
    %1188 = arith.truncf %1184 : vector<4x256xf32> to vector<4x256xbf16>
    %cst_718 = arith.constant dense<0.000000e+00> : vector<4x256xf32>
    %1189 = tpu.matmul %1187, %1188, %cst_718 {dimension_numbers = #tpu.dot_dimension_numbers<[1], [0], [0], [1], [0, 0, 1, 1], [], []>} : vector<4x4xbf16>, vector<4x256xbf16>, vector<4x256xf32> -> vector<4x256xf32>
    %1190 = arith.addf %1179, %1189 : vector<4x256xf32>
    %c6_719 = arith.constant 6 : index
    %c0_720 = arith.constant 0 : index
    %c0_721 = arith.constant 0 : index
    %1191 = vector.load %arg3[%c6_719, %c0_720, %c0_721] : memref<7x4x1xf32, #tpu.memory_space<vmem>>, vector<1x4x1xf32>
    %1192 = vector.shape_cast %1191 : vector<1x4x1xf32> to vector<4x1xf32>
    %1193 = vector.broadcast %1192 : vector<4x1xf32> to vector<4x256xf32>
    %1194 = arith.mulf %1190, %1193 : vector<4x256xf32>
    %c6_722 = arith.constant 6 : index
    %c0_723 = arith.constant 0 : index
    %c0_724 = arith.constant 0 : index
    %1195 = vector.load %arg4[%c6_722, %c0_723, %c0_724] : memref<7x4x1xf32, #tpu.memory_space<vmem>>, vector<1x4x1xf32>
    %1196 = vector.shape_cast %1195 : vector<1x4x1xf32> to vector<4x1xf32>
    %1197 = vector.broadcast %1196 : vector<4x1xf32> to vector<4x256xf32>
    %1198 = arith.addf %1194, %1197 : vector<4x256xf32>
    %1199 = arith.negf %1198 : vector<4x256xf32>
    %1200 = math.exp %1199 : vector<4x256xf32>
    %cst_725 = arith.constant 1.000000e+00 : f32
    %1201 = vector.broadcast %cst_725 : f32 to vector<4x256xf32>
    %1202 = arith.addf %1201, %1200 : vector<4x256xf32>
    %1203 = arith.divf %1201, %1202 : vector<4x256xf32>
    %1204 = arith.mulf %1198, %1203 : vector<4x256xf32>
    %c6_726 = arith.constant 6 : index
    %c0_727 = arith.constant 0 : index
    %c0_728 = arith.constant 0 : index
    %1205 = vector.load %arg5[%c6_726, %c0_727, %c0_728] : memref<7x4x1xf32, #tpu.memory_space<vmem>>, vector<1x4x1xf32>
    %1206 = vector.shape_cast %1205 : vector<1x4x1xf32> to vector<4x1xf32>
    %1207 = vector.broadcast %1206 : vector<4x1xf32> to vector<4x256xf32>
    %1208 = arith.mulf %1204, %1207 : vector<4x256xf32>
    %c6_729 = arith.constant 6 : index
    %c0_730 = arith.constant 0 : index
    %c0_731 = arith.constant 0 : index
    %1209 = vector.load %arg6[%c6_729, %c0_730, %c0_731] : memref<7x4x1xf32, #tpu.memory_space<vmem>>, vector<1x4x1xf32>
    %1210 = vector.shape_cast %1209 : vector<1x4x1xf32> to vector<4x1xf32>
    %1211 = vector.broadcast %1210 : vector<4x1xf32> to vector<4x256xf32>
    %1212 = arith.addf %1208, %1211 : vector<4x256xf32>
    %cst_732 = arith.constant 0.000000e+00 : f32
    %1213 = vector.broadcast %cst_732 : f32 to vector<4x256xf32>
    %1214 = arith.maximumf %1212, %1213 : vector<4x256xf32>
    %1215 = arith.addf %1214, %469 : vector<4x256xf32>
    %c0_733 = arith.constant 0 : index
    %c0_734 = arith.constant 0 : index
    %c0_735 = arith.constant 0 : index
    %1216 = vector.load %arg11[%c0_733, %c0_734, %c0_735] : memref<1x4x256xf32, #tpu.memory_space<vmem>>, vector<1x4x256xf32>
    %1217 = vector.shape_cast %1216 : vector<1x4x256xf32> to vector<4x256xf32>
    %1218 = vector.shape_cast %1215 : vector<4x256xf32> to vector<1x4x256xf32>
    tpu.vector_store %arg11[%c0_733, %c0_734, %c0_735], %1218 {strides = array<i32>} : memref<1x4x256xf32, #tpu.memory_space<vmem>>, vector<1x4x256xf32>,
    return
  }
  func.func @transform_0(%arg0: i32) -> (i32, i32, i32) {
    %c0_i32 = arith.constant 0 : i32
    %c0_i32_0 = arith.constant 0 : i32
    %c0_i32_1 = arith.constant 0 : i32
    return %arg0, %c0_i32, %c0_i32_0 : i32, i32, i32
  }
  func.func @transform_1(%arg0: i32) -> (i32, i32, i32) {
    %c0_i32 = arith.constant 0 : i32
    %c0_i32_0 = arith.constant 0 : i32
    %c0_i32_1 = arith.constant 0 : i32
    %c0_i32_2 = arith.constant 0 : i32
    return %c0_i32, %c0_i32_0, %c0_i32_1 : i32, i32, i32
  }
  func.func @transform_2(%arg0: i32) -> (i32, i32, i32) {
    %c0_i32 = arith.constant 0 : i32
    %c0_i32_0 = arith.constant 0 : i32
    %c0_i32_1 = arith.constant 0 : i32
    %c0_i32_2 = arith.constant 0 : i32
    return %c0_i32, %c0_i32_0, %c0_i32_1 : i32, i32, i32
  }
  func.func @transform_3(%arg0: i32) -> (i32, i32, i32) {
    %c0_i32 = arith.constant 0 : i32
    %c0_i32_0 = arith.constant 0 : i32
    %c0_i32_1 = arith.constant 0 : i32
    %c0_i32_2 = arith.constant 0 : i32
    return %c0_i32, %c0_i32_0, %c0_i32_1 : i32, i32, i32
  }
  func.func @transform_4(%arg0: i32) -> (i32, i32, i32) {
    %c0_i32 = arith.constant 0 : i32
    %c0_i32_0 = arith.constant 0 : i32
    %c0_i32_1 = arith.constant 0 : i32
    %c0_i32_2 = arith.constant 0 : i32
    return %c0_i32, %c0_i32_0, %c0_i32_1 : i32, i32, i32
  }
  func.func @transform_5(%arg0: i32) -> (i32, i32, i32) {
    %c0_i32 = arith.constant 0 : i32
    %c0_i32_0 = arith.constant 0 : i32
    %c0_i32_1 = arith.constant 0 : i32
    %c0_i32_2 = arith.constant 0 : i32
    return %c0_i32, %c0_i32_0, %c0_i32_1 : i32, i32, i32
  }
  func.func @transform_6(%arg0: i32) -> (i32, i32) {
    %c0_i32 = arith.constant 0 : i32
    %c0_i32_0 = arith.constant 0 : i32
    %c0_i32_1 = arith.constant 0 : i32
    return %c0_i32, %c0_i32_0 : i32, i32
  }
  func.func @transform_7(%arg0: i32) -> (i32, i32) {
    %c0_i32 = arith.constant 0 : i32
    %c0_i32_0 = arith.constant 0 : i32
    %c0_i32_1 = arith.constant 0 : i32
    return %c0_i32, %c0_i32_0 : i32, i32
  }
  func.func @transform_8(%arg0: i32) -> (i32, i32) {
    %c0_i32 = arith.constant 0 : i32
    %c0_i32_0 = arith.constant 0 : i32
    %c0_i32_1 = arith.constant 0 : i32
    return %c0_i32, %c0_i32_0 : i32, i32
  }
  func.func @transform_9(%arg0: i32) -> (i32, i32) {
    %c0_i32 = arith.constant 0 : i32
    %c0_i32_0 = arith.constant 0 : i32
    %c0_i32_1 = arith.constant 0 : i32
    return %c0_i32, %c0_i32_0 : i32, i32
  }
  func.func @transform_10(%arg0: i32) -> (i32, i32, i32) {
    %c0_i32 = arith.constant 0 : i32
    %c0_i32_0 = arith.constant 0 : i32
    %c0_i32_1 = arith.constant 0 : i32
    return %arg0, %c0_i32, %c0_i32_0 : i32, i32, i32
  }
}

</mosaic_0001>

<bundles_post_ra>
// kernel: feature_pyramid_alignment.1
= control target key start
LH: loop header
LB: loop body
LE: loop exit
PB: predicated region body
PF: predicated region fallthrough
CT: control target
= control target key end

     0   :  { %s6707_s13 = smov 0   ;;  %s7897_s0 = inlined_call_operand.vmem [shape: f32[2,4,256], index: 0, kind: input, shape index: {}]   ;;  %s7898_s1 = inlined_call_operand.vmem [shape: f32[63,4,4], index: 1, kind: input, shape index: {}]   ;;  %s7899_s2 = inlined_call_operand.vmem [shape: f32[7,4,1], index: 2, kind: input, shape index: {}]   ;;  %s7900_s3 = inlined_call_operand.vmem [shape: f32[7,4,1], index: 3, kind: input, shape index: {}]   ;;  %s7901_s4 = inlined_call_operand.vmem [shape: f32[7,4,1], index: 4, kind: input, shape index: {}]   ;;  %s7902_s5 = inlined_call_operand.vmem [shape: f32[7,4,1], index: 5, kind: input, shape index: {}]   ;;  %s7903_s6 = inlined_call_operand.vmem [shape: f32[16,8], index: 6, kind: input, shape index: {}]   ;;  %s7904_s7 = inlined_call_operand.vmem [shape: f32[8,4], index: 7, kind: input, shape index: {}]   ;;  %s7905_s8 = inlined_call_operand.vmem [shape: f32[4,8], index: 8, kind: input, shape index: {}]   ;;  %s7906_s9 = inlined_call_operand.vmem [shape: f32[8,16], index: 9, kind: input, shape index: {}]   ;;  %s7907_s10 = inlined_call_operand.vmem [shape: f32[2,4,256], index: 10, kind: output, shape index: {}]  }
   0x1 LB: > { %s5656_s14 = sadd.s32 4294967295, %s6615_s13   ;;  %p5660_p0 = scmp.ge.s32.totalorder %s6615_s13, 1  ;;  %s6615_s13 = sphi %s6707_s13, %s20_s13  }
   0x2   : > { %p312_p1 = scmp.lt.s32.totalorder %s6615_s13, 3 }
   0x4   : > { %p313_p2 = pnand %p5660_p0, %p312_p1 }
   0x5   : > { %p350_p3 = scmp.lt.s32.totalorder (!%p313_p2), %s5656_s14, 1  ;;  %vm363_vm0 = vcmask (!%p313_p2), 273408   ;;  %v6617_v0 = vmov (!%p313_p2), 0.0   ;;  %s7919_s19 = smov (!%p313_p2), 17   ;;  %vm373_vm1 = vcmask (!%p313_p2), 1043592   ;;  %vm374_vm2 = vcmask (!%p313_p2), 1047556  }
   0x6   : > { %316 = sbr.rel (%p313_p2) target bundleno = 4871 (0x1307), region = 60  ;;  %362 = vst [vmem:[#allocation2] sm:$0xff] (!%p313_p2), %v6617_v0  ;;  %364 = vst.msk [vmem:[#allocation2 + $0x8] sm:$0xf] (!%p313_p2), %vm363_vm0, %v6617_v0  ;;  %vm7909_vm3 = vcmask (!%p313_p2), 138240   ;;  %vm7908_vm4 = vcmask (!%p313_p2), 134144   ;;  %v379_v33 = vlaneseq (!%p313_p2) }
   0x7   : > { %vm6727_vm5 = vmor (!%p313_p2), %vm374_vm2, %vm373_vm1  ;;  %s7955_s20 = smov (!%p313_p2), 111   ;;  %v6620_v18 = vmov (!%p313_p2), 0   ;;  %s7953_s21 = smov (!%p313_p2), 110   ;;  %v1074_v31 = vld [vmem:[%s7899_s2] sm:$0xf] (!%p313_p2)  ;;  %vm7916_vm6 = vcmask (!%p313_p2), 908288  }
   0x8   : > { %763 = vmatprep.mubr.bf16.mxu0 (!%p313_p2), %v6620_v18  ;;  %486 = vmatprep.mubr.bf16.mxu1 (!%p313_p2), %v6620_v18  ;;  %s6622_s22 = smov (!%p313_p2), 127   ;;  %s6623_s23 = smov (!%p313_p2), 96   ;;  %v1082_v32 = vld [vmem:[%s7900_s3] sm:$0xf] (!%p313_p2)  ;;  %v6809_v34 = vand.u32 (!%p313_p2), 127, %v379_v33  ;;  %vm7915_vm7 = vcmask (!%p313_p2), 900096  }
   0x9   : > { %6514 = vset.pattern.permute.xlu0 (!%p313_p2), %v6620_v18  ;;  %6515 = vset.pattern.permute.xlu1 (!%p313_p2), %v6620_v18  ;;  %s6624_s24 = smov (!%p313_p2), 126   ;;  %s7942_s25 = smov (!%p313_p2), 95   ;;  %v5676_v43 = vld [vmem:[%s7898_s1 + $0x10] sm:$0xf] (!%p313_p2)  ;;  %vm447_vm9 = vcmask (!%p313_p2), 1041408   ;;  %vm443_vm11 = vcmask (!%p313_p2), 31744  }
   0xa   : > { %s6626_s26 = smov (!%p313_p2), 112   ;;  %s7944_s27 = smov (!%p313_p2), 94   ;;  %v381_v37 = vadd.s32 (!%p313_p2), 128, %v6809_v34  ;;  %v386_v38 = vand.u32 (!%p313_p2), 15, %v6809_v34  ;;  %v703_v51 = vpack.c.bf16 (!%p313_p2), %v5676_v43, %v5676_v43  ;;  %vm7949_vm14 = vcmask (!%p313_p2), 1039360  }
   0xb   : > { %v5665_v63 = vld [vmem:[%s7898_s1 + $0x4] sm:$0xf] (!%p313_p2)  ;;  %vm7914_vm15 = vcmask (!%p313_p2), 785408   ;;  %vm7911_vm1 = vcmask (!%p313_p2), 777216   ;;  %vm7917_vm2 = vcmask (!%p313_p2), 916480   ;;  %s7922_s30 = smov (!%p313_p2), 64  }
   0xc   : > { %vm6817_vm8 = vcmp.lt.s32.totalorder (!%p313_p2), %v386_v38, 15  ;;  %v393_v46 = vand.u32 (!%p313_p2), 15, %v381_v37  ;;  %vm6835_vm13 = vcmp.gt.s32.totalorder (!%p313_p2), %v386_v38, 0  ;;  %s7946_s11 = smov (!%p313_p2), 80   ;;  %s7929_s12 = smov (!%p313_p2), 32  }
   0xd   : > { %s8048_s14 = smov (!%p350_p3, %s5656_s14), 1  ;;  %s7926_s16 = smov 48   ;;  %v5850_v54 = vld [vmem:[%s7898_s1 + $0xec] sm:$0xf]  ;;  %v5853_v56 = vld [vmem:[%s7898_s1 + $0xf0] sm:$0xf] }
   0xe   : > { %s7912_s15 = sshll.u32 %s8048_s14, 3  ;;  %vm6827_vm10 = vcmp.lt.s32.totalorder %v393_v46, 15  ;;  %vm6831_vm12 = vcmp.gt.s32.totalorder %v393_v46, 0  ;;  %s7931_s17 = smov 16  }
   0xf   : > { %s354_s18 = scalar_lea.vmem %s7897_s0, %s7912_s15  ;;  %s7928_s28 = smov 24  }
  0x10   : > { %v361_v1 = vld [vmem:[%s354_s18] sm:$0xff]  ;;  %s6633_s18 = smov 8   ;;  %s6635_s29 = smov 40  }
  0x11   : > { %366 = vrot.lane.b32.xlu0 %v361_v1, %s7919_s19  ;;  %s7925_s15 = smov 56   ;;  %s7924_s19 = smov 9  }
  0x83   : > { %v367_v2 = vpop.permute.xlu0 %366 }
  0x84   : > { %v368_v4 = vrot.slane %v367_v2, 4 }
  0x86   : > { %v6732_v5 = vsel %vm7909_vm3, %v368_v4, %v367_v2  ;;  %378 = vst.msk [vmem:[#allocation2 + $0x8] sm:$0xf] %vm7908_vm4, %v368_v4  ;;  %vm7913_vm3 = vcmask 125952  }
  0x87   : > { %376 = vst.msk [vmem:[#allocation2] sm:$0xff] %vm6727_vm5, %v6732_v5 }
  0x8d   : > { %v700_v6 = vld [vmem:[#allocation2 + $0x8] sm:$0xf] }
  0x8e   : > { %v775_v7 = vld [vmem:[#allocation2 + $0x8] sm:$0xf]  ;;  %v6738_v9 = vld [vmem:[#allocation2] sm:$0xff]  ;;  %v709_v20 = vpack.c.bf16 %v700_v6, %v700_v6 }
  0x8f   : > { %v424_v8 = vld [vmem:[#allocation2 + $0x8] sm:$0xf]  ;;  %v707_v12 = vpack.c.bf16 %v6738_v9, %v6738_v9  ;;  %v6744_v13 = vcombine.high %v6738_v9, %v6738_v9  ;;  %1350 = vst [vmem:[#allocation2] sm:$0xff] %v6617_v0  ;;  %v418_v1 = vsel %vm6835_vm13, %v6738_v9, 0.0 }
  0x90   : > { %v850_v10 = vld [vmem:[#allocation2 + $0x8] sm:$0xf]  ;;  %v430_v26 = vpack.c.bf16 %v424_v8, %v424_v8 }
  0x91   : > { %v546_v11 = vld [vmem:[#allocation2 + $0x8] sm:$0xf]  ;;  %713 = vrot.lane.b32.xlu0 %v707_v12, %s7955_s20  ;;  %v708_v17 = vpack.c.bf16 %v6744_v13, %v6744_v13  ;;  %v6489_v19 = vpack.i.bf16 %v6744_v13, %v6738_v9  ;;  %v419_v62 = vsel %vm6831_vm12, %v6744_v13, 0.0  ;;  %v422_v9 = vpack.c.bf16 %v418_v1, %v418_v1  ;;  %v5679_v13 = vld [vmem:[%s7898_s1 + $0x14] sm:$0xf] }
  0x92   : > { %v925_v14 = vld [vmem:[#allocation2 + $0x8] sm:$0xf] }
  0x93   : > { %v625_v15 = vld [vmem:[#allocation2 + $0x8] sm:$0xf]  ;;  %715 = vrot.lane.b32.xlu1 %v708_v17, %s7955_s20  ;;  %v934_v30 = vpack.c.bf16 %v925_v14, %v925_v14 }
  0x94   : > { %v1000_v16 = vld [vmem:[#allocation2 + $0x8] sm:$0xf] }
  0x95   : > { %1351 = vst.msk [vmem:[#allocation2 + $0x8] sm:$0xf] %vm363_vm0, %v6617_v0  ;;  %6490 = vrot.lane.b32.xlu0 %v6489_v19, %s7953_s21 }
  0x96   : > { %2051 = vst.msk [vmem:[#allocation2 + $0x8] sm:$0xf] %vm363_vm0, %v6617_v0 }
  0x97   : > { %2053 = vst.msk [vmem:[#allocation2 + $0x8] sm:$0xf] %vm7908_vm4, %v368_v4  ;;  %717 = vrot.lane.b32.xlu1 %v709_v20, %s7955_s20  ;;  %v794_v20 = vpack.c.bf16 %v5679_v13, %v5679_v13  ;;  %vm7910_vm4 = vcmask 769024  }
  0x99   : > { %434 = vrot.lane.b32.xlu0 %v707_v12, %s6622_s22 }
  0x9b   : > { %783 = vrot.lane.b32.xlu1 %v775_v7, %s7953_s21 }
  0x9d   : > { %438 = vrot.lane.b32.xlu0 %v430_v26, %s6622_s22 }
  0x9e   : > { %v6765_v21 = vld [vmem:[#allocation2 + $0x8] sm:$0xf] }
  0x9f   : > { %v6767_v22 = vld [vmem:[#allocation2 + $0x8] sm:$0xf]  ;;  %436 = vrot.lane.b32.xlu1 %v708_v17, %s6622_s22 }
  0xa0   : > { %v6769_v23 = vld [vmem:[#allocation2 + $0x8] sm:$0xf] }
  0xa1   : > { %v6771_v24 = vld [vmem:[#allocation2 + $0x8] sm:$0xf]  ;;  %858 = vrot.lane.b32.xlu0 %v850_v10, %s6623_s23 }
  0xa2   : > { %v6773_v25 = vld [vmem:[#allocation2 + $0x8] sm:$0xf] }
  0xa3   : > { %v6776_v27 = vld [vmem:[#allocation2 + $0x8] sm:$0xf]  ;;  %6495 = vrot.lane.b32.xlu1 %v6489_v19, %s6623_s23 }
  0xa4   : > { %v6778_v28 = vld [vmem:[#allocation2 + $0x8] sm:$0xf] }
  0xa5   : > { %v6780_v29 = vld [vmem:[#allocation2 + $0x8] sm:$0xf]  ;;  %558 = vrot.lane.b32.xlu0 %v546_v11, %s6624_s24  ;;  %v423_v11 = vpack.c.bf16 %v419_v62, %v419_v62 }
  0xa6   : > { %2754 = vst.msk [vmem:[#allocation2 + $0x8] sm:$0xf] %vm363_vm0, %v6617_v0 }
  0xa7   : > { %3294 = vst.msk [vmem:[#allocation2 + $0x8] sm:$0xf] %vm363_vm0, %v6617_v0  ;;  %6500 = vrot.lane.b32.xlu1 %v6489_v19, %s6624_s24 }
  0xa8   : > { %4035 = vst.msk [vmem:[#allocation2 + $0x8] sm:$0xf] %vm363_vm0, %v6617_v0 }
  0xa9   : > { %4885 = vst.msk [vmem:[#allocation2 + $0x8] sm:$0xf] %vm363_vm0, %v6617_v0  ;;  %940 = vrot.lane.b32.xlu0 %v708_v17, %s7942_s25  ;;  %vm7918_vm0 = vcmask 1031168  }
  0xab   : > { %938 = vrot.lane.b32.xlu1 %v707_v12, %s7942_s25  ;;  %v427_v12 = vpack.c.bf16 %v5665_v63, %v5665_v63 }
  0xad   : > { %6505 = vrot.lane.b32.xlu0 %v6489_v19, %s6626_s26 }
  0xaf   : > { %942 = vrot.lane.b32.xlu1 %v934_v30, %s7942_s25 }
  0xb1   : > { %6510 = vrot.lane.b32.xlu0 %v6489_v19, %s7944_s27  ;;  %v499_v19 = vsel %vm447_vm9, %v422_v9, 0 }
  0xb3   : > { %633 = vrot.lane.b32.xlu1 %v625_v15, %s6626_s26 }
  0xb5   : > { %1077 = vperm.xlu0 %6514, %v1074_v31  }
  0xb7   : > { %1008 = vrot.lane.b32.xlu1 %v1000_v16, %s7944_s27 }
  0xbb   : > { %1085 = vperm.xlu1 %6515, %v1082_v32  }
 0x103   : > { %v714_v35 = vpop.permute.xlu0 %713 }
 0x105   : > { %v716_v36 = vpop.permute.xlu1 %715 }
 0x106   : > { %v720_v42 = vsel %vm7916_vm6, %v714_v35, %v716_v36 }
 0x107   : > { %v6491_v39 = vpop.permute.xlu0 %6490  ;;  %v726_v50 = vsel %vm447_vm9, %v720_v42, 0  ;;  %v420_v42 = vld [vmem:[%s7898_s1] sm:$0xf] }
 0x108   : > { %v6493_v40 = vunpack.i.h.bf16 %v6491_v39  ;;  %v6492_v41 = vunpack.i.l.bf16 %v6491_v39 }
 0x109   : > { %v718_v45 = vpop.permute.xlu1 %717 }
 0x10a   : > { %v721_v47 = vsel %vm7916_vm6, %v716_v36, %v718_v45  ;;  %v786_v48 = vsel %vm7915_vm7, %v6492_v41, %v6493_v40  ;;  %vm7936_vm6 = vcmask 388416  }
 0x10b   : > { %5677 = vmatprep.subr.msk.bf16.mxu0 %vm447_vm9, %v721_v47  ;;  %v435_v49 = vpop.permute.xlu0 %434  ;;  %v790_v52 = vsel %vm6817_vm8, %v786_v48, 0.0 }
 0x10c   : > { %732 = vmatpush1.bf16.msra.mxu0 %v726_v50  ;;  %v795_v58 = vpack.c.bf16 %v790_v52, %v790_v52  ;;  %v421_v50 = vpack.c.bf16 %v420_v42, %v420_v42  ;;  %v5682_v52 = vld [vmem:[%s7898_s1 + $0x18] sm:$0xf] }
 0x10d   : > { %v784_v55 = vpop.permute.xlu1 %783  ;;  %v869_v62 = vpack.c.bf16 %v5682_v52, %v5682_v52 }
 0x10e   : > { %v787_v57 = vsel %vm7915_vm7, %v6493_v40, %v784_v55  ;;  %v801_v4 = vsel %vm447_vm9, %v795_v58, 0  ;;  %vm7939_vm7 = vcmask 322816  }
 0x10f   : > { %v791_v59 = vsel %vm6827_vm10, %v787_v57, 0.0  ;;  %5678 = vmatmul.mubr.msk.bf16.vlgmr.msra.gmra.mrb[0].mxu0 %vm443_vm11, %v703_v51  ;;  %v439_v60 = vpop.permute.xlu0 %438 }
 0x110   : > { %v796_v61 = vpack.c.bf16 %v791_v59, %v791_v59  ;;  %838 = vmatprep.mubr.bf16.mxu0 %v6620_v18 }
 0x111   : > { %v437_v2 = vpop.permute.xlu1 %436 }
 0x112   : > { %5680 = vmatprep.subr.msk.bf16.mxu0 %vm447_vm9, %v796_v61  ;;  %v442_v6 = vsel %vm7949_vm14, %v437_v2, %v439_v60  ;;  %v441_v7 = vsel %vm7949_vm14, %v435_v49, %v437_v2 }
 0x113   : > { %807 = vmatpush1.bf16.msra.mxu0 %v801_v4  ;;  %v859_v8 = vpop.permute.xlu0 %858  ;;  %5666 = vmatprep.subr.msk.bf16.mxu1 %vm447_vm9, %v442_v6  ;;  %v449_v10 = vsel %vm447_vm9, %v441_v7, 0 }
 0x114   : > { %455 = vmatpush1.bf16.msra.mxu1 %v449_v10 }
 0x115   : > { %v6496_v14 = vpop.permute.xlu1 %6495  ;;  %5668 = vmatprep.subr.msk.bf16.mxu1 %vm447_vm9, %v423_v11 }
 0x116   : > { %v6498_v15 = vunpack.i.h.bf16 %v6496_v14  ;;  %v6497_v16 = vunpack.i.l.bf16 %v6496_v14 }
 0x117   : > { %v559_v17 = vpop.permute.xlu0 %558  ;;  %5667 = vmatmul.mubr.msk.bf16.vlgmr.msra.gmra.mrb[0].mxu1 %vm443_vm11, %v427_v12  ;;  %v5670_v12 = vld [vmem:[%s7898_s1 + $0x8] sm:$0xf] }
 0x118   : > { %v862_v26 = vsel %vm7914_vm15, %v6498_v15, %v859_v8  ;;  %505 = vmatpush1.bf16.msra.mxu1 %v499_v19  ;;  %v861_v30 = vsel %vm7914_vm15, %v6497_v16, %v6498_v15  ;;  %536 = vmatprep.mubr.bf16.mxu1 %v6620_v18  ;;  %vm7920_vm15 = vcmask 257216  }
 0x119   : > { %v6501_v31 = vpop.permute.xlu1 %6500  ;;  %v866_v32 = vsel %vm6831_vm12, %v862_v26, 0.0  ;;  %v865_v33 = vsel %vm6835_vm13, %v861_v30, 0.0  ;;  %v5685_v26 = vld [vmem:[%s7898_s1 + $0x1c] sm:$0xf] }
 0x11a   : > { %v6503_v35 = vunpack.i.h.bf16 %v6501_v31  ;;  %v6502_v36 = vunpack.i.l.bf16 %v6501_v31  ;;  %v871_v37 = vpack.c.bf16 %v866_v32, %v866_v32  ;;  %v870_v38 = vpack.c.bf16 %v865_v33, %v865_v33 }
 0x11b   : > { %5681 = vmatmul.mubr.msk.bf16.vlgmr.msra.gmra.mrb[0].mxu0 %vm443_vm11, %v794_v20  ;;  %v941_v39 = vpop.permute.xlu0 %940  ;;  %v928_v32 = vpack.c.bf16 %v5685_v26, %v5685_v26 }
 0x11c   : > { %v562_v40 = vsel %vm7918_vm0, %v6503_v35, %v559_v17  ;;  %5683 = vmatprep.subr.msk.bf16.mxu0 %vm447_vm9, %v871_v37  ;;  %v876_v41 = vsel %vm447_vm9, %v870_v38, 0  ;;  %v561_v43 = vsel %vm7918_vm0, %v6502_v36, %v6503_v35  ;;  %913 = vmatprep.mubr.bf16.mxu0 %v6620_v18  ;;  %v569_v17 = vpack.c.bf16 %v5670_v12, %v5670_v12  ;;  %v5673_v36 = vld [vmem:[%s7898_s1 + $0xc] sm:$0xf]  ;;  %v5688_v38 = vld [vmem:[%s7898_s1 + $0x20] sm:$0xf] }
 0x11d   : > { %v939_v45 = vpop.permute.xlu1 %938  ;;  %882 = vmatpush1.bf16.msra.mxu0 %v876_v41  ;;  %v566_v46 = vsel %vm6827_vm10, %v562_v40, 0.0  ;;  %v565_v47 = vsel %vm6817_vm8, %v561_v43, 0.0  ;;  %v644_v37 = vpack.c.bf16 %v5673_v36, %v5673_v36  ;;  %vm7934_vm0 = vcmask 519616  }
 0x11e   : > { %v571_v48 = vpack.c.bf16 %v566_v46, %v566_v46  ;;  %v570_v51 = vpack.c.bf16 %v565_v47, %v565_v47  ;;  %v945_v63 = vsel %vm7911_vm1, %v939_v45, %v941_v39 }
 0x11f   : > { %v6506_v49 = vpop.permute.xlu0 %6505  ;;  %v951_v8 = vsel %vm447_vm9, %v945_v63, 0 }
 0x120   : > { %5671 = vmatprep.subr.msk.bf16.mxu1 %vm447_vm9, %v571_v48  ;;  %v6508_v55 = vunpack.i.h.bf16 %v6506_v49  ;;  %v6507_v57 = vunpack.i.l.bf16 %v6506_v49  ;;  %v576_v61 = vsel %vm447_vm9, %v570_v51, 0 }
 0x121   : > { %v943_v58 = vpop.permute.xlu1 %942 }
 0x122   : > { %v946_v59 = vsel %vm7911_vm1, %v941_v39, %v943_v58  ;;  %v636_v6 = vsel %vm7917_vm2, %v6507_v57, %v6508_v55  ;;  %v1019_v39 = vpack.c.bf16 %v5688_v38, %v5688_v38  ;;  %vm7950_vm1 = vcmask 60416  }
 0x123   : > { %v6511_v60 = vpop.permute.xlu0 %6510  ;;  %5669 = vmatmul.mubr.msk.bf16.vlgmr.msra.gmra.mrb[0].mxu1 %vm443_vm11, %v421_v50  ;;  %5686 = vmatprep.subr.msk.bf16.mxu0 %vm447_vm9, %v946_v59  ;;  %v640_v9 = vsel %vm6835_vm13, %v636_v6, 0.0  ;;  %v1174_v6 = vld [vmem:[%s7903_s6 + $0x8] sm:$0xff] }
 0x124   : > { %582 = vmatpush1.bf16.msra.mxu1 %v576_v61  ;;  %613 = vmatprep.mubr.bf16.mxu1 %v6620_v18  ;;  %v6513_v1 = vunpack.i.h.bf16 %v6511_v60  ;;  %v6512_v2 = vunpack.i.l.bf16 %v6511_v60  ;;  %v645_v19 = vpack.c.bf16 %v640_v9, %v640_v9 }
 0x125   : > { %v634_v4 = vpop.permute.xlu1 %633 }
 0x126   : > { %v637_v7 = vsel %vm7917_vm2, %v6508_v55, %v634_v4  ;;  %v1011_v14 = vsel %vm7910_vm4, %v6512_v2, %v6513_v1  ;;  %v651_v31 = vsel %vm447_vm9, %v645_v19, 0  ;;  %v1173_v4 = vld [vmem:[%s7903_s6] sm:$0xff]  ;;  %vm7935_vm2 = vcmask 454016  }
 0x127   : > { %v641_v10 = vsel %vm6831_vm12, %v637_v7, 0.0  ;;  %5684 = vmatmul.mubr.msk.bf16.vlgmr.msra.gmra.mrb[0].mxu0 %vm443_vm11, %v869_v62  ;;  %v1015_v30 = vsel %vm6817_vm8, %v1011_v14, 0.0  ;;  %v6220_v7 = vpack.c.bf16 %v1174_v6, %v1173_v4 }
 0x128   : > { %v646_v11 = vpack.c.bf16 %v641_v10, %v641_v10  ;;  %957 = vmatpush1.bf16.msra.mxu0 %v951_v8  ;;  %988 = vmatprep.mubr.bf16.mxu0 %v6620_v18  ;;  %v1020_v33 = vpack.c.bf16 %v1015_v30, %v1015_v30 }
 0x129   : > { %v1009_v13 = vpop.permute.xlu1 %1008 }
 0x12a   : > { %v1012_v15 = vsel %vm7910_vm4, %v6513_v1, %v1009_v13  ;;  %5674 = vmatprep.subr.msk.bf16.mxu1 %vm447_vm9, %v646_v11  ;;  %v1026_v35 = vsel %vm447_vm9, %v1020_v33, 0  ;;  %vm1175_vm4 = vcmask 130048  }
 0x12b   : > { %v1016_v16 = vsel %vm6827_vm10, %v1012_v15, 0.0 }
 0x12c   : > { %v1021_v20 = vpack.c.bf16 %v1016_v16, %v1016_v16 }
 0x12e   : > { %5689 = vmatprep.subr.msk.bf16.mxu0 %vm447_vm9, %v1021_v20 }
 0x12f   : > { %5672 = vmatmul.mubr.msk.bf16.vlgmr.msra.gmra.mrb[0].mxu1 %vm443_vm11, %v569_v17 }
 0x130   : > { %657 = vmatpush1.bf16.msra.mxu1 %v651_v31  ;;  %688 = vmatprep.mubr.bf16.mxu1 %v6620_v18 }
 0x131   : > { %6221 = vmatprep.subr.bf16.mxu1 %v6220_v7 }
 0x133   : > { %5687 = vmatmul.mubr.msk.bf16.vlgmr.msra.gmra.mrb[0].mxu0 %vm443_vm11, %v928_v32 }
 0x134   : > { %1032 = vmatpush1.bf16.msra.mxu0 %v1026_v35  ;;  %1063 = vmatprep.mubr.bf16.mxu0 %v6620_v18  ;;  %v1078_v46 = vpop.permute.xlu0 %1077 }
 0x13a   : > { %v1086_v51 = vpop.permute.xlu1 %1085 }
 0x13b   : > { %5675 = vmatmul.mubr.msk.bf16.vlgmr.msra.gmra.mrb[0].mxu1 %vm443_vm11, %v644_v37 }
 0x13c   : > { %6223 = vmatpush3.bf16.msra.mxu1 %v6220_v7 }
 0x13d   : > { %5983 = vmatprep.subr.bf16.mxu1 %v6617_v0 }
 0x13f   : > { %5690 = vmatmul.mubr.msk.bf16.vlgmr.msra.gmra.mrb[0].mxu0 %vm443_vm11, %v1019_v39 }
 0x20e   : > { %v690_v40 = vpop.f32.mrb[0].mxu1 }
 0x20f   : > { %v692_v41 = vpop.f32.mrb[1].mxu1 }
 0x210   : > { %v694_v42 = vpop.f32.mrb[2].mxu1 }
 0x211   : > { %v695_v43 = vpop.f32.mrb[3].mxu1 }
 0x212   : > { %v1065_v45 = vpop.f32.mrb[0].mxu0 }
 0x213   : > { %v6224_v47 = vadd.f32 %v1065_v45, %v690_v40  ;;  %v1067_v48 = vpop.f32.mrb[1].mxu0 }
 0x214   : > { %v6225_v49 = vadd.f32 %v1067_v48, %v692_v41  ;;  %v1069_v50 = vpop.f32.mrb[2].mxu0 }
 0x215   : > { %v1080_v52 = vmul.f32 %v6224_v47, %v1078_v46  ;;  %v1070_v55 = vpop.f32.mrb[3].mxu0 }
 0x216   : > { %v1081_v57 = vmul.f32 %v6225_v49, %v1078_v46 }
 0x217   : > { %v1088_v58 = vadd.f32 %v1086_v51, %v1080_v52 }
 0x218   : > { %v1089_v59 = vadd.f32 %v1086_v51, %v1081_v57 }
 0x219   : > { %v5691_v60 = vmul.f32 -1.442695, %v1088_v58 }
 0x21a   : > { %v5692_v61 = vmul.f32 -1.442695, %v1089_v59 }
 0x21b   : > { %6569 = vpow2.f32 %v5691_v60 }
 0x21c   : > { %6571 = vpow2.f32 %v5692_v61 }
 0x225   : > { %v6570_v62 = vpop.eup %6569 }
 0x226   : > { %v6572_v63 = vpop.eup %6571  ;;  %v1096_v1 = vadd.f32 1.0, %v6570_v62 }
 0x227   : > { %v1097_v2 = vadd.f32 1.0, %v6572_v63 }
 0x228   : > { %6573 = vrcp.f32 %v1096_v1 }
 0x229   : > { %6575 = vrcp.f32 %v1097_v2 }
 0x232   : > { %v6574_v8 = vpop.eup %6573 }
 0x233   : > { %v6576_v10 = vpop.eup %6575  ;;  %v1102_v11 = vmul.f32 %v6574_v8, %v1088_v58 }
 0x234   : > { %v1103_v12 = vmul.f32 %v6576_v10, %v1089_v59 }
 0x235   : > { %1105 = vst.msk [vmem:[#allocation3] sm:$0xf] %vm7913_vm3, %v1102_v11  ;;  %1111 = vrot.lane.b32.xlu0 %v1102_v11, %s6623_s23  ;;  %1107 = vrot.lane.b32.xlu1 %v1102_v11, %s6626_s26 }
 0x236   : > { %1135 = vst.msk [vmem:[#allocation3 + $0x20] sm:$0xf] %vm7913_vm3, %v1103_v12 }
 0x239   : > { %1119 = vrot.lane.b32.xlu0 %v1102_v11, %s7922_s30  ;;  %1115 = vrot.lane.b32.xlu1 %v1102_v11, %s7946_s11 }
 0x23d   : > { %1127 = vrot.lane.b32.xlu0 %v1102_v11, %s7929_s12  ;;  %1123 = vrot.lane.b32.xlu1 %v1102_v11, %s7926_s16 }
 0x241   : > { %1131 = vrot.lane.b32.xlu1 %v1102_v11, %s7931_s17  ;;  %1137 = vrot.lane.b32.xlu0 %v1103_v12, %s6626_s26 }
 0x245   : > { %1141 = vrot.lane.b32.xlu1 %v1103_v12, %s6623_s23  ;;  %1145 = vrot.lane.b32.xlu0 %v1103_v12, %s7946_s11 }
 0x249   : > { %1149 = vrot.lane.b32.xlu1 %v1103_v12, %s7922_s30  ;;  %1153 = vrot.lane.b32.xlu0 %v1103_v12, %s7926_s16  ;;  %s6639_s30 = smov 119  }
 0x24d   : > { %1157 = vrot.lane.b32.xlu1 %v1103_v12, %s7929_s12  ;;  %1161 = vrot.lane.b32.xlu0 %v1103_v12, %s7931_s17 }
 0x2a7   : > { %v1112_v9 = vpop.permute.xlu0 %1111  ;;  %v1108_v13 = vpop.permute.xlu1 %1107 }
 0x2a8   : > { %1114 = vst.msk [vmem:[#allocation3 + $0x8] sm:$0xf] %vm7913_vm3, %v1112_v9  ;;  %1110 = vst.msk [vmem:[#allocation3 + $0x4] sm:$0xf] %vm7913_vm3, %v1108_v13  ;;  %v5720_v9 = vld [vmem:[%s7900_s3 + $0x4] sm:$0xf] }
 0x2a9   : > { %v5719_v13 = vld [vmem:[%s7899_s2 + $0x4] sm:$0xf] }
 0x2ab   : > { %v1120_v14 = vpop.permute.xlu0 %1119  ;;  %v1116_v15 = vpop.permute.xlu1 %1115 }
 0x2ac   : > { %1122 = vst.msk [vmem:[#allocation3 + $0x10] sm:$0xf] %vm7913_vm3, %v1120_v14  ;;  %1118 = vst.msk [vmem:[#allocation3 + $0xc] sm:$0xf] %vm7913_vm3, %v1116_v15 }
 0x2af   : > { %v1128_v16 = vpop.permute.xlu0 %1127  ;;  %v1124_v17 = vpop.permute.xlu1 %1123  ;;  %v1165_v19 = vld [vmem:[#allocation3] sm:$0xff] }
 0x2b0   : > { %1130 = vst.msk [vmem:[#allocation3 + $0x18] sm:$0xf] %vm7913_vm3, %v1128_v16  ;;  %1126 = vst.msk [vmem:[#allocation3 + $0x14] sm:$0xf] %vm7913_vm3, %v1124_v17  ;;  %5971 = vmatprep.mubr.msk.f32.mxu1 %vm1175_vm4, %v1165_v19 }
 0x2b3   : > { %v1132_v20 = vpop.permute.xlu1 %1131  ;;  %v1138_v26 = vpop.permute.xlu0 %1137  ;;  %v1166_v30 = vld [vmem:[#allocation3 + $0x8] sm:$0xff] }
 0x2b4   : > { %1134 = vst.msk [vmem:[#allocation3 + $0x1c] sm:$0xf] %vm7913_vm3, %v1132_v20  ;;  %1140 = vst.msk [vmem:[#allocation3 + $0x24] sm:$0xf] %vm7913_vm3, %v1138_v26  ;;  %5972 = vmatmul.mubr.msk.f32.vlgmr.msra.gmra.mrb[4].mxu1 %vm1175_vm4, %v1166_v30  ;;  %v1362_v20 = vand.u32 7, %v6809_v34 }
 0x2b5   : > { %v5702_v30 = vld [vmem:[%s7898_s1 + $0x28] sm:$0xf]  ;;  %v5820_v26 = vld [vmem:[%s7898_s1 + $0xcc] sm:$0xf] }
 0x2b7   : > { %v1142_v31 = vpop.permute.xlu1 %1141  ;;  %v1146_v32 = vpop.permute.xlu0 %1145  ;;  %v1167_v33 = vld [vmem:[#allocation3 + $0x10] sm:$0xff] }
 0x2b8   : > { %1144 = vst.msk [vmem:[#allocation3 + $0x28] sm:$0xf] %vm7913_vm3, %v1142_v31  ;;  %1148 = vst.msk [vmem:[#allocation3 + $0x2c] sm:$0xf] %vm7913_vm3, %v1146_v32  ;;  %5974 = vmatprep.mubr.msk.f32.mxu1 %vm1175_vm4, %v1167_v33 }
 0x2bb   : > { %v1150_v35 = vpop.permute.xlu1 %1149  ;;  %v1154_v36 = vpop.permute.xlu0 %1153  ;;  %v1168_v37 = vld [vmem:[#allocation3 + $0x18] sm:$0xff]  ;;  %v1169_v38 = vld [vmem:[#allocation3 + $0x20] sm:$0xff] }
 0x2bc   : > { %1152 = vst.msk [vmem:[#allocation3 + $0x30] sm:$0xf] %vm7913_vm3, %v1150_v35  ;;  %1156 = vst.msk [vmem:[#allocation3 + $0x34] sm:$0xf] %vm7913_vm3, %v1154_v36  ;;  %5975 = vmatmul.mubr.msk.f32.gmra.mrb[6].mxu1 %vm1175_vm4, %v1168_v37  ;;  %v1382_v35 = vpack.c.bf16 %v5702_v30, %v5702_v30 }
 0x2bd   : > { %5977 = vmatprep.mubr.msk.f32.mxu1 %vm1175_vm4, %v1169_v38 }
 0x2bf   : > { %v1158_v39 = vpop.permute.xlu1 %1157  ;;  %v1162_v40 = vpop.permute.xlu0 %1161  ;;  %v1170_v41 = vld [vmem:[#allocation3 + $0x28] sm:$0xff] }
 0x2c0   : > { %1160 = vst.msk [vmem:[#allocation3 + $0x38] sm:$0xf] %vm7913_vm3, %v1158_v39  ;;  %1164 = vst.msk [vmem:[#allocation3 + $0x3c] sm:$0xf] %vm7913_vm3, %v1162_v40  ;;  %5978 = vmatmul.mubr.msk.f32.gmra.mrb[8].mxu1 %vm1175_vm4, %v1170_v41  ;;  %vm7921_vm3 = vcmask 191616  }
 0x2c1   : > { %v5701_v41 = vld [vmem:[%s7898_s1 + $0x24] sm:$0xf] }
 0x2c3   : > { %v1171_v42 = vld [vmem:[#allocation3 + $0x30] sm:$0xff] }
 0x2c4   : > { %5980 = vmatprep.mubr.msk.f32.mxu1 %vm1175_vm4, %v1171_v42 }
 0x2c7   : > { %v1172_v43 = vld [vmem:[#allocation3 + $0x38] sm:$0xff] }
 0x2c8   : > { %5981 = vmatmul.mubr.msk.f32.gmra.mrb[10].mxu1 %vm1175_vm4, %v1172_v43  ;;  %vm7940_vm4 = vcmask 126016   ;;  %v1378_v43 = vpack.c.bf16 %v5701_v41, %v5701_v41 }
 0x387   : > { %v5973_v45 = vpop.f32.mrb[4].mxu1 }
 0x388   : > { %1308 = vrot.lane.b32.xlu1 %v5973_v45, %s6633_s18  ;;  %v1266_v46 = vpop.f32.mrb[5].mxu1 }
 0x389   : > { %1306 = vst.msk [vmem:[#allocation4] sm:$0xf] %vm7950_vm1, %v1266_v46 }
 0x38f   : > { %v5976_v47 = vpop.f32.mrb[6].mxu1 }
 0x390   : > { %1320 = vrot.lane.b32.xlu1 %v5976_v47, %s7928_s28  ;;  %v1276_v48 = vpop.f32.mrb[7].mxu1  ;;  %s6645_s28 = smov 4  }
 0x391   : > { %1314 = vrot.lane.b32.xlu0 %v1276_v48, %s7931_s17  ;;  %v5705_v48 = vld [vmem:[%s7898_s1 + $0x2c] sm:$0xf]  ;;  %s7937_s17 = smov 72  }
 0x393   : > { %v5979_v49 = vpop.f32.mrb[8].mxu1 }
 0x394   : > { %1332 = vrot.lane.b32.xlu1 %v5979_v49, %s6635_s29  ;;  %v1286_v50 = vpop.f32.mrb[9].mxu1 }
 0x395   : > { %1326 = vrot.lane.b32.xlu0 %v1286_v50, %s7929_s12  ;;  %v1488_v50 = vpack.c.bf16 %v5705_v48, %v5705_v48  ;;  %s7948_s12 = smov 104  }
 0x39b   : > { %v5982_v51 = vpop.f32.mrb[10].mxu1 }
 0x39c   : > { %1344 = vrot.lane.b32.xlu1 %v5982_v51, %s7925_s15  ;;  %v1296_v52 = vpop.f32.mrb[11].mxu1  ;;  %s6641_s15 = smov 118  }
 0x39d   : > { %1338 = vrot.lane.b32.xlu0 %v1296_v52, %s7926_s16  ;;  %v5707_v52 = vld [vmem:[%s7898_s1 + $0x30] sm:$0xf]  ;;  %s7941_s16 = smov 88  }
 0x3fa   : > { %v1309_v55 = vpop.permute.xlu1 %1308 }
 0x3fb   : > { %1312 = vst.msk [vmem:[#allocation4] sm:$0xf] %vm7940_vm4, %v1309_v55  ;;  %v1545_v55 = vpack.c.bf16 %v5707_v52, %v5707_v52  ;;  %vm2047_vm4 = vcmask 126048  }
 0x402   : > { %v1321_v57 = vpop.permute.xlu1 %1320 }
 0x403   : > { %v1315_v58 = vpop.permute.xlu0 %1314 }
 0x404   : > { %1318 = vst.msk [vmem:[#allocation4] sm:$0xf] %vm7921_vm3, %v1315_v58  ;;  %vm7951_vm3 = vmmov 0  }
 0x405   : > { %1324 = vst.msk [vmem:[#allocation4] sm:$0xf] %vm7920_vm15, %v1321_v57  ;;  %vm7933_vm15 = vcmask 592968   ;;  %5985 = vmatprep.mubr.msk.bf16.mxu1 %vm7951_vm3, %v6617_v0 }
 0x406   : > { %v1333_v60 = vpop.permute.xlu1 %1332 }
 0x407   : > { %v1327_v59 = vpop.permute.xlu0 %1326 }
 0x408   : > { %1330 = vst.msk [vmem:[#allocation4] sm:$0xf] %vm7939_vm7, %v1327_v59  ;;  %vm2041_vm7 = vcmask 93248  }
 0x409   : > { %1336 = vst.msk [vmem:[#allocation4] sm:$0xf] %vm7936_vm6, %v1333_v60  ;;  %vm2029_vm6 = vcmask 27648  }
 0x40e   : > { %v1345_v62 = vpop.permute.xlu1 %1344 }
 0x40f   : > { %v1339_v61 = vpop.permute.xlu0 %1338 }
 0x410   : > { %1342 = vst.msk [vmem:[#allocation4] sm:$0xf] %vm7935_vm2, %v1339_v61  ;;  %v5709_v61 = vld [vmem:[%s7898_s1 + $0x34] sm:$0xf]  ;;  %vm7938_vm2 = vcmask 64512  }
 0x411   : > { %1348 = vst.msk [vmem:[#allocation4] sm:$0xf] %vm7934_vm0, %v1345_v62  ;;  %vm7045_vm0 = vcmp.lt.s32.totalorder %v1362_v20, 7 }
 0x418   : > { %v1349_v63 = vld [vmem:[#allocation4] sm:$0xf] }
 0x419   : > { %1353 = vrot.lane.b32.xlu0 %v1349_v63, %s7924_s19  ;;  %s6640_s19 = smov 120   ;;  %v1597_v63 = vpack.c.bf16 %v5709_v61, %v5709_v61 }
 0x48b   : > { %v1354_v1 = vpop.permute.xlu0 %1353 }
 0x48c   : > { %1357 = vst.msk [vmem:[#allocation2] sm:$0xf] %vm7933_vm15, %v1354_v1 }
 0x493   : > { %v1372_v2 = vld [vmem:[#allocation2] sm:$0xf] }
 0x494   : > { %v1594_v4 = vld [vmem:[#allocation2] sm:$0xf]  ;;  %1482 = vrot.lane.b32.xlu0 %v1372_v2, %s6624_s24  ;;  %v1383_v7 = vpack.c.bf16 %v1372_v2, %v1372_v2 }
 0x495   : > { %v1537_v6 = vld [vmem:[#allocation2] sm:$0xf]  ;;  %v1598_v11 = vpack.c.bf16 %v1594_v4, %v1594_v4 }
 0x496   : > { %v1705_v8 = vld [vmem:[#allocation2] sm:$0xf]  ;;  %1385 = vrot.lane.b32.xlu1 %v1383_v7, %s6622_s22 }
 0x497   : > { %v1762_v10 = vld [vmem:[#allocation2] sm:$0xf] }
 0x498   : > { %2050 = vst [vmem:[#allocation2] sm:$0xff] %v6617_v0  ;;  %1600 = vrot.lane.b32.xlu0 %v1598_v11, %s6639_s30  ;;  %v5713_v11 = vld [vmem:[%s7898_s1 + $0x3c] sm:$0xf] }
 0x499   : > { %2052 = vst.msk [vmem:[#allocation2] sm:$0xff] %vm6727_vm5, %v6732_v5  ;;  %v1766_v5 = vpack.c.bf16 %v1762_v10, %v1762_v10 }
 0x49a   : > { %1539 = vrot.lane.b32.xlu1 %v1537_v6, %s6640_s19  ;;  %v5711_v6 = vld [vmem:[%s7898_s1 + $0x38] sm:$0xf] }
 0x49c   : > { %1707 = vrot.lane.b32.xlu0 %v1705_v8, %s6626_s26  ;;  %v1656_v8 = vpack.c.bf16 %v5711_v6, %v5711_v6 }
 0x49e   : > { %1650 = vrot.lane.b32.xlu1 %v1594_v4, %s6641_s15 }
 0x4a0   : > { %v7005_v12 = vld [vmem:[#allocation2] sm:$0xff]  ;;  %1818 = vrot.lane.b32.xlu0 %v1762_v10, %s7953_s21 }
 0x4a1   : > { %2753 = vst [vmem:[#allocation2] sm:$0xff] %v6617_v0 }
 0x4a2   : > { %2755 = vst.msk [vmem:[#allocation2] sm:$0xf] %vm7933_vm15, %v1354_v1  ;;  %1768 = vrot.lane.b32.xlu1 %v1766_v5, %s7955_s20  ;;  %vm7030_vm15 = vcmp.gt.s32.totalorder %v1362_v20, 0  ;;  %v1713_v5 = vpack.c.bf16 %v5713_v11, %v5713_v11 }
 0x4a3   : > { %v1375_v31 = vsel %vm7030_vm15, %v1372_v2, 0.0 }
 0x4a4   : > { %1885 = vperm.xlu0 %6514, %v5720_v9   ;;  %v1379_v36 = vpack.c.bf16 %v1375_v31, %v1375_v31  ;;  %v5715_v31 = vld [vmem:[%s7898_s1 + $0x40] sm:$0xf] }
 0x4a6   : > { %1877 = vperm.xlu1 %6515, %v5719_v13   ;;  %v1437_v37 = vsel %vm447_vm9, %v1379_v36, 0  ;;  %v5717_v36 = vld [vmem:[%s7898_s1 + $0x44] sm:$0xf] }
 0x4a9   : > { %v7018_v14 = vld [vmem:[#allocation2] sm:$0xf] }
 0x4aa   : > { %v7020_v15 = vld [vmem:[#allocation2] sm:$0xf] }
 0x4ab   : > { %v7022_v16 = vld [vmem:[#allocation2] sm:$0xf] }
 0x4ac   : > { %v7024_v17 = vld [vmem:[#allocation2] sm:$0xf] }
 0x4ad   : > { %v7026_v19 = vld [vmem:[#allocation2] sm:$0xf] }
 0x4ae   : > { %3293 = vst [vmem:[#allocation2] sm:$0xff] %v6617_v0 }
 0x506   : > { %v1483_v39 = vpop.permute.xlu0 %1482 }
 0x507   : > { %v1485_v40 = vsel %vm7045_vm0, %v1483_v39, 0.0 }
 0x508   : > { %v1386_v32 = vpop.permute.xlu1 %1385  ;;  %v1489_v42 = vpack.c.bf16 %v1485_v40, %v1485_v40 }
 0x509   : > { %v1391_v33 = vsel %vm447_vm9, %v1386_v32, 0 }
 0x50a   : > { %5984 = vmatpush3.bf16.msra.mxu1 %v1391_v33  ;;  %v1494_v45 = vsel %vm447_vm9, %v1489_v42, 0  ;;  %v1601_v57 = vpop.permute.xlu0 %1600  ;;  %v1765_v33 = vpack.c.bf16 %v5715_v31, %v5715_v31 }
 0x50b   : > { %5989 = vmatprep.subr.bf16.mxu1 %v6617_v0  ;;  %v1606_v58 = vsel %vm447_vm9, %v1601_v57, 0 }
 0x50c   : > { %v1540_v46 = vpop.permute.xlu1 %1539 }
 0x50d   : > { %5986 = vmatmul.mubr.msk.bf16.vlgmr.msra.gmra.mrb[12].mxu1 %vm443_vm11, %v1382_v35  ;;  %v1542_v47 = vsel %vm7030_vm15, %v1540_v46, 0.0 }
 0x50e   : > { %5990 = vmatpush3.bf16.msra.mxu1 %v1437_v37  ;;  %5991 = vmatprep.mubr.msk.bf16.mxu1 %vm7951_vm3, %v6617_v0  ;;  %v1546_v49 = vpack.c.bf16 %v1542_v47, %v1542_v47  ;;  %v1708_v2 = vpop.permute.xlu0 %1707  ;;  %v1824_v37 = vpack.c.bf16 %v5717_v36, %v5717_v36 }
 0x50f   : > { %5995 = vmatprep.subr.bf16.mxu1 %v6617_v0  ;;  %v1710_v4 = vsel %vm7030_vm15, %v1708_v2, 0.0 }
 0x510   : > { %v1551_v51 = vsel %vm447_vm9, %v1546_v49, 0  ;;  %v1651_v59 = vpop.permute.xlu1 %1650  ;;  %v1714_v7 = vpack.c.bf16 %v1710_v4, %v1710_v4 }
 0x511   : > { %v1653_v60 = vsel %vm7045_vm0, %v1651_v59, 0.0 }
 0x512   : > { %v1657_v62 = vpack.c.bf16 %v1653_v60, %v1653_v60  ;;  %v1719_v10 = vsel %vm447_vm9, %v1714_v7, 0  ;;  %v1819_v20 = vpop.permute.xlu0 %1818 }
 0x513   : > { %v1821_v30 = vsel %vm7045_vm0, %v1819_v20, 0.0 }
 0x514   : > { %v1662_v1 = vsel %vm447_vm9, %v1657_v62, 0  ;;  %v1769_v9 = vpop.permute.xlu1 %1768  ;;  %v1825_v32 = vpack.c.bf16 %v1821_v30, %v1821_v30  ;;  %v2071_v30 = vpack.c.bf16 %v6765_v21, %v6765_v21  ;;  %v2341_v21 = vpack.c.bf16 %v6771_v24, %v6771_v24 }
 0x515   : > { %v1774_v13 = vsel %vm447_vm9, %v1769_v9, 0 }
 0x516   : > { %v1830_v35 = vsel %vm447_vm9, %v1825_v32, 0 }
 0x519   : > { %5992 = vmatmul.mubr.msk.bf16.vlgmr.msra.gmra.mrb[12].mxu1 %vm443_vm11, %v1378_v43 }
 0x51a   : > { %5996 = vmatpush3.bf16.msra.mxu1 %v1494_v45  ;;  %5997 = vmatprep.mubr.msk.bf16.mxu1 %vm7951_vm3, %v6617_v0 }
 0x51b   : > { %6001 = vmatprep.subr.bf16.mxu1 %v6617_v0 }
 0x523   : > { %v1886_v43 = vpop.permute.xlu0 %1885 }
 0x525   : > { %5998 = vmatmul.mubr.msk.bf16.vlgmr.msra.gmra.mrb[12].mxu1 %vm443_vm11, %v1488_v50  ;;  %v1878_v39 = vpop.permute.xlu1 %1877 }
 0x526   : > { %6002 = vmatpush3.bf16.msra.mxu1 %v1551_v51  ;;  %6003 = vmatprep.mubr.msk.bf16.mxu1 %vm7951_vm3, %v6617_v0  ;;  %v1930_v51 = vld [vmem:[%s7904_s7] sm:$0xff] }
 0x527   : > { %6007 = vmatprep.subr.bf16.mxu1 %v6617_v0  ;;  %6037 = vmatprep.subr.mxu0 %v1930_v51 }
 0x528   : > { %6038 = vmatpush3.msra.mxu0 %v1930_v51 }
 0x531   : > { %6004 = vmatmul.mubr.msk.bf16.vlgmr.msra.gmra.mrb[12].mxu1 %vm443_vm11, %v1545_v55 }
 0x532   : > { %6008 = vmatpush3.bf16.msra.mxu1 %v1606_v58  ;;  %6009 = vmatprep.mubr.msk.bf16.mxu1 %vm7951_vm3, %v6617_v0 }
 0x533   : > { %6013 = vmatprep.subr.bf16.mxu1 %v6617_v0 }
 0x53d   : > { %6010 = vmatmul.mubr.msk.bf16.vlgmr.msra.gmra.mrb[12].mxu1 %vm443_vm11, %v1597_v63 }
 0x53e   : > { %6014 = vmatpush3.bf16.msra.mxu1 %v1662_v1  ;;  %6015 = vmatprep.mubr.msk.bf16.mxu1 %vm7951_vm3, %v6617_v0 }
 0x53f   : > { %6019 = vmatprep.subr.bf16.mxu1 %v6617_v0 }
 0x549   : > { %6016 = vmatmul.mubr.msk.bf16.vlgmr.msra.gmra.mrb[12].mxu1 %vm443_vm11, %v1656_v8 }
 0x54a   : > { %6020 = vmatpush3.bf16.msra.mxu1 %v1719_v10  ;;  %6021 = vmatprep.mubr.msk.bf16.mxu1 %vm7951_vm3, %v6617_v0  ;;  %v2056_v10 = vcombine.high %v7005_v12, %v7005_v12 }
 0x54b   : > { %6025 = vmatprep.subr.bf16.mxu1 %v6617_v0 }
 0x54c   : > { %v2070_v9 = vpack.c.bf16 %v2056_v10, %v2056_v10  ;;  %v7157_v20 = vpack.i.bf16 %v2056_v10, %v7005_v12 }
 0x555   : > { %6022 = vmatmul.mubr.msk.bf16.vlgmr.msra.gmra.mrb[12].mxu1 %vm443_vm11, %v1713_v5 }
 0x556   : > { %6026 = vmatpush3.bf16.msra.mxu1 %v1774_v13  ;;  %6027 = vmatprep.mubr.msk.bf16.mxu1 %vm7951_vm3, %v6617_v0  ;;  %v7151_v13 = vpack.c.bf16 %v7005_v12, %v7005_v12 }
 0x557   : > { %6031 = vmatprep.subr.bf16.mxu1 %v6617_v0 }
 0x561   : > { %6028 = vmatmul.mubr.msk.bf16.vlgmr.msra.gmra.mrb[12].mxu1 %vm443_vm11, %v1765_v33  ;;  %v5727_v33 = vld [vmem:[%s7898_s1 + $0x4c] sm:$0xf] }
 0x562   : > { %6032 = vmatpush3.bf16.msra.mxu1 %v1830_v35  ;;  %6033 = vmatprep.mubr.msk.bf16.mxu1 %vm7951_vm3, %v6617_v0  ;;  %v2058_v35 = vsel %vm6835_vm13, %v7005_v12, 0.0 }
 0x563   : > { %6045 = vmatprep.subr.bf16.mxu1 %v6617_v0 }
 0x56d   : > { %6034 = vmatmul.mubr.msk.bf16.vlgmr.msra.gmra.mrb[12].mxu1 %vm443_vm11, %v1824_v37 }
 0x56e   : > { %6047 = vmatprep.mubr.msk.bf16.mxu1 %vm7951_vm3, %v6617_v0 }
 0x640   : > { %v1866_v40 = vpop.f32.mrb[12].mxu1 }
 0x641   : > { %v1880_v41 = vmul.f32 %v1878_v39, %v1866_v40  ;;  %v6035_v42 = vpop.f32.mrb[13].mxu1 }
 0x642   : > { %v1869_v45 = vpop.f32.mrb[14].mxu1 }
 0x643   : > { %v1888_v46 = vadd.f32 %v1886_v43, %v1880_v41  ;;  %v6036_v47 = vpop.f32.mrb[15].mxu1  ;;  %v2068_v43 = vpack.c.bf16 %v5727_v33, %v5727_v33  ;;  %v2063_v45 = vpack.c.bf16 %v2058_v35, %v2058_v35 }
 0x645   : > { %v5721_v48 = vmul.f32 -1.442695, %v1888_v46 }
 0x647   : > { %6577 = vpow2.f32 %v5721_v48 }
 0x651   : > { %v6578_v49 = vpop.eup %6577 }
 0x652   : > { %v1892_v50 = vadd.f32 1.0, %v6578_v49 }
 0x654   : > { %6579 = vrcp.f32 %v1892_v50  ;;  %v2137_v50 = vsel %vm447_vm9, %v2063_v45, 0 }
 0x65e   : > { %v6580_v52 = vpop.eup %6579 }
 0x65f   : > { %v1895_v55 = vmul.f32 %v6580_v52, %v1888_v46 }
 0x661   : > { %1896 = vst.msk [vmem:[#allocation3] sm:$0xf] %vm7950_vm1, %v1895_v55  ;;  %1902 = vrot.lane.b32.xlu0 %v1895_v55, %s6626_s26  ;;  %1898 = vrot.lane.b32.xlu1 %v1895_v55, %s6640_s19 }
 0x665   : > { %1910 = vrot.lane.b32.xlu0 %v1895_v55, %s6623_s23  ;;  %1906 = vrot.lane.b32.xlu1 %v1895_v55, %s7948_s12 }
 0x669   : > { %1918 = vrot.lane.b32.xlu0 %v1895_v55, %s7946_s11  ;;  %1914 = vrot.lane.b32.xlu1 %v1895_v55, %s7941_s16  ;;  %s6647_s16 = smov 5  }
 0x66d   : > { %1922 = vrot.lane.b32.xlu1 %v1895_v55, %s7937_s17  ;;  %s6646_s17 = smov 12  }
 0x6d3   : > { %v1903_v57 = vpop.permute.xlu0 %1902  ;;  %v1899_v58 = vpop.permute.xlu1 %1898 }
 0x6d4   : > { %1905 = vst.msk [vmem:[#allocation3 + $0x8] sm:$0xf] %vm7950_vm1, %v1903_v57  ;;  %1901 = vst.msk [vmem:[#allocation3 + $0x4] sm:$0xf] %vm7950_vm1, %v1899_v58 }
 0x6d7   : > { %v1911_v59 = vpop.permute.xlu0 %1910  ;;  %v1907_v60 = vpop.permute.xlu1 %1906 }
 0x6d8   : > { %1913 = vst.msk [vmem:[#allocation3 + $0x10] sm:$0xf] %vm7950_vm1, %v1911_v59  ;;  %1909 = vst.msk [vmem:[#allocation3 + $0xc] sm:$0xf] %vm7950_vm1, %v1907_v60  ;;  %v5726_v59 = vld [vmem:[%s7898_s1 + $0x48] sm:$0xf] }
 0x6db   : > { %v1919_v61 = vpop.permute.xlu0 %1918  ;;  %v1915_v62 = vpop.permute.xlu1 %1914  ;;  %v1926_v63 = vld [vmem:[#allocation3] sm:$0xff] }
 0x6dc   : > { %1921 = vst.msk [vmem:[#allocation3 + $0x18] sm:$0xf] %vm7950_vm1, %v1919_v61  ;;  %1917 = vst.msk [vmem:[#allocation3 + $0x14] sm:$0xf] %vm7950_vm1, %v1915_v62  ;;  %6039 = vmatprep.mubr.msk.f32.mxu0 %vm7938_vm2, %v1926_v63  ;;  %v2062_v62 = vpack.c.bf16 %v5726_v59, %v5726_v59 }
 0x6df   : > { %v1923_v1 = vpop.permute.xlu1 %1922  ;;  %v1927_v2 = vld [vmem:[#allocation3 + $0x8] sm:$0xff] }
 0x6e0   : > { %1925 = vst.msk [vmem:[#allocation3 + $0x1c] sm:$0xf] %vm7950_vm1, %v1923_v1  ;;  %6040 = vmatmul.mubr.msk.f32.vlgmr.msra.gmra.mrb[4].mxu0 %vm7938_vm2, %v1927_v2 }
 0x6e3   : > { %v1928_v4 = vld [vmem:[#allocation3 + $0x10] sm:$0xff] }
 0x6e4   : > { %6042 = vmatprep.mubr.msk.f32.mxu0 %vm7938_vm2, %v1928_v4 }
 0x6e7   : > { %v1929_v6 = vld [vmem:[#allocation3 + $0x18] sm:$0xff] }
 0x6e8   : > { %6043 = vmatmul.mubr.msk.f32.gmra.mrb[6].mxu0 %vm7938_vm2, %v1929_v6  ;;  %vm2035_vm2 = vcmask 60448  }
 0x6e9   : > { %2124 = vmatprep.mubr.bf16.mxu0 %v6620_v18 }
 0x7b3   : > { %v6041_v7 = vpop.f32.mrb[4].mxu0 }
 0x7b4   : > { %2032 = vrot.lane.b32.xlu0 %v6041_v7, %s6645_s28  ;;  %v2010_v8 = vpop.f32.mrb[5].mxu0  ;;  %v2563_v7 = vpack.c.bf16 %v6778_v28, %v6778_v28  ;;  %s7992_s28 = smov 48  }
 0x7b5   : > { %2030 = vst.msk [vmem:[#allocation4] sm:$0xf] %vm2029_vm6, %v2010_v8 }
 0x7bb   : > { %v6044_v11 = vpop.f32.mrb[6].mxu0 }
 0x7bc   : > { %2044 = vrot.lane.b32.xlu0 %v6044_v11, %s6646_s17  ;;  %v2020_v5 = vpop.f32.mrb[7].mxu0  ;;  %s6649_s17 = smov 124  }
 0x7bd   : > { %2038 = vrot.lane.b32.xlu1 %v2020_v5, %s6633_s18 }
 0x7c0   : > { %2077 = vrot.lane.b32.xlu0 %v2070_v9, %s6622_s22 }
 0x7c1   : > { %2075 = vrot.lane.b32.xlu1 %v7151_v13, %s6622_s22 }
 0x7c4   : > { %6517 = vrot.lane.b32.xlu0 %v7157_v20, %s6624_s24 }
 0x7c5   : > { %2079 = vrot.lane.b32.xlu1 %v2071_v30, %s6622_s22 }
 0x7c8   : > { %6522 = vrot.lane.b32.xlu0 %v7157_v20, %s6626_s26 }
 0x7c9   : > { %2192 = vrot.lane.b32.xlu1 %v6767_v22, %s6624_s24 }
 0x7cd   : > { %2266 = vrot.lane.b32.xlu1 %v6769_v23, %s6626_s26 }
 0x7d1   : > { %2345 = vrot.lane.b32.xlu1 %v7151_v13, %s7955_s20 }
 0x7d5   : > { %2349 = vrot.lane.b32.xlu1 %v2341_v21, %s7955_s20 }
 0x7d9   : > { %2414 = vrot.lane.b32.xlu1 %v6773_v25, %s7953_s21 }
 0x7dd   : > { %2488 = vrot.lane.b32.xlu1 %v6776_v27, %s6623_s23  ;;  %v2059_v27 = vsel %vm6831_vm12, %v2056_v10, 0.0  ;;  %v5732_v10 = vld [vmem:[%s7898_s1 + $0x50] sm:$0xf] }
 0x7de   : > { %v2064_v42 = vpack.c.bf16 %v2059_v27, %v2059_v27  ;;  %v2202_v5 = vpack.c.bf16 %v5732_v10, %v5732_v10 }
 0x7e1   : > { %2569 = vrot.lane.b32.xlu1 %v2070_v9, %s7942_s25 }
 0x7e5   : > { %6537 = vrot.lane.b32.xlu1 %v7157_v20, %s7944_s27 }
 0x826   : > { %v2033_v22 = vpop.permute.xlu0 %2032 }
 0x827   : > { %2036 = vst.msk [vmem:[#allocation4] sm:$0xf] %vm2035_vm2, %v2033_v22  ;;  %v5738_v22 = vld [vmem:[%s7898_s1 + $0x58] sm:$0xf] }
 0x828   : > { %v2335_v27 = vpack.c.bf16 %v5738_v22, %v5738_v22  ;;  %v2765_v22 = vpack.c.bf16 %v7018_v14, %v7018_v14 }
 0x82e   : > { %v2045_v23 = vpop.permute.xlu0 %2044 }
 0x82f   : > { %v2039_v24 = vpop.permute.xlu1 %2038 }
 0x830   : > { %2042 = vst.msk [vmem:[#allocation4] sm:$0xf] %vm2041_vm7, %v2039_v24  ;;  %vm7971_vm7 = vcmask 1031168  }
 0x831   : > { %2048 = vst.msk [vmem:[#allocation4] sm:$0xf] %vm2047_vm4, %v2045_v23  ;;  %vm7972_vm2 = vmmov %vm7971_vm7  ;;  %vm7973_vm4 = vcmask 916480  }
 0x832   : > { %v2078_v31 = vpop.permute.xlu0 %2077 }
 0x833   : > { %v2076_v32 = vpop.permute.xlu1 %2075 }
 0x834   : > { %v2081_v25 = vsel %vm7949_vm14, %v2076_v32, %v2078_v31 }
 0x835   : > { %v2087_v41 = vsel %vm447_vm9, %v2081_v25, 0 }
 0x836   : > { %v6518_v36 = vpop.permute.xlu0 %6517 }
 0x837   : > { %v2080_v37 = vpop.permute.xlu1 %2079  ;;  %v6520_v46 = vunpack.i.h.bf16 %v6518_v36  ;;  %v6519_v47 = vunpack.i.l.bf16 %v6518_v36 }
 0x838   : > { %v2049_v39 = vld [vmem:[#allocation4] sm:$0xf]  ;;  %v2082_v40 = vsel %vm7949_vm14, %v2078_v31, %v2080_v37  ;;  %vm7998_vm14 = vcmask 388416  }
 0x839   : > { %3296 = vrot.lane.b32.xlu0 %v2049_v39, %s6647_s16  ;;  %5728 = vmatprep.subr.msk.bf16.mxu0 %vm447_vm9, %v2082_v40  ;;  %v2194_v55 = vsel %vm7972_vm2, %v6519_v47, %v6520_v46  ;;  %vm3299_vm2 = vcmask 166952   ;;  %s6651_s16 = smov 116  }
 0x83a   : > { %2093 = vmatpush1.bf16.msra.mxu0 %v2087_v41  ;;  %v6523_v51 = vpop.permute.xlu0 %6522  ;;  %v2198_v60 = vsel %vm6817_vm8, %v2194_v55, 0.0 }
 0x83b   : > { %5730 = vmatprep.subr.msk.bf16.mxu0 %vm447_vm9, %v2064_v42  ;;  %v2193_v12 = vpop.permute.xlu1 %2192  ;;  %v6525_v58 = vunpack.i.h.bf16 %v6523_v51  ;;  %v2203_v63 = vpack.c.bf16 %v2198_v60, %v2198_v60  ;;  %v6524_v2 = vunpack.i.l.bf16 %v6523_v51  ;;  %v5741_v60 = vld [vmem:[%s7898_s1 + $0x5c] sm:$0xf] }
 0x83c   : > { %v2195_v48 = vsel %vm7971_vm7, %v6520_v46, %v2193_v12  ;;  %vm7974_vm7 = vmmov %vm7973_vm4 }
 0x83d   : > { %v2199_v49 = vsel %vm6827_vm10, %v2195_v48, 0.0  ;;  %2347 = vrot.lane.b32.xlu0 %v2070_v9, %s7955_s20  ;;  %5729 = vmatmul.mubr.msk.bf16.vlgmr.msra.gmra.mrb[8].mxu0 %vm443_vm11, %v2068_v43  ;;  %v2209_v6 = vsel %vm447_vm9, %v2203_v63, 0  ;;  %v2268_v8 = vsel %vm7974_vm7, %v6524_v2, %v6525_v58 }
 0x83e   : > { %v2204_v52 = vpack.c.bf16 %v2199_v49, %v2199_v49  ;;  %2143 = vmatpush1.bf16.msra.mxu0 %v2137_v50  ;;  %2174 = vmatprep.mubr.bf16.mxu0 %v6620_v18  ;;  %v2272_v11 = vsel %vm6835_vm13, %v2268_v8, 0.0 }
 0x83f   : > { %v2267_v57 = vpop.permute.xlu1 %2266  ;;  %v2277_v9 = vpack.c.bf16 %v2272_v11, %v2272_v11 }
 0x840   : > { %5733 = vmatprep.subr.msk.bf16.mxu0 %vm447_vm9, %v2204_v52  ;;  %v2269_v61 = vsel %vm7973_vm4, %v6525_v58, %v2267_v57  ;;  %vm7975_vm4 = vcmask 908288  }
 0x841   : > { %6527 = vrot.lane.b32.xlu0 %v7157_v20, %s7953_s21  ;;  %v2273_v1 = vsel %vm6831_vm12, %v2269_v61, 0.0  ;;  %v2283_v28 = vsel %vm447_vm9, %v2277_v9, 0  ;;  %vm7976_vm7 = vmmov %vm7975_vm4  ;;  %v5801_v9 = vld [vmem:[%s7900_s3 + $0x10] sm:$0xf] }
 0x842   : > { %v2278_v4 = vpack.c.bf16 %v2273_v1, %v2273_v1 }
 0x843   : > { %v2346_v30 = vpop.permute.xlu1 %2345 }
 0x845   : > { %6532 = vrot.lane.b32.xlu0 %v7157_v20, %s6623_s23 }
 0x849   : > { %2567 = vrot.lane.b32.xlu0 %v7151_v13, %s7942_s25  ;;  %5731 = vmatmul.mubr.msk.bf16.vlgmr.msra.gmra.mrb[8].mxu0 %vm443_vm11, %v2062_v62  ;;  %v5735_v13 = vld [vmem:[%s7898_s1 + $0x54] sm:$0xf] }
 0x84a   : > { %2215 = vmatpush1.bf16.msra.mxu0 %v2209_v6  ;;  %2246 = vmatprep.mubr.bf16.mxu0 %v6620_v18  ;;  %v2276_v20 = vpack.c.bf16 %v5735_v13, %v5735_v13  ;;  %v2424_v6 = vpack.c.bf16 %v5741_v60, %v5741_v60  ;;  %v5800_v13 = vld [vmem:[%s7899_s2 + $0x10] sm:$0xf] }
 0x84b   : > { %5736 = vmatprep.subr.msk.bf16.mxu0 %vm447_vm9, %v2278_v4 }
 0x84d   : > { %2571 = vrot.lane.b32.xlu0 %v2563_v7, %s7942_s25  ;;  %s6648_s25 = smov 123  }
 0x851   : > { %2636 = vrot.lane.b32.xlu0 %v6780_v29, %s7944_s27  ;;  %v2350_v29 = vpop.permute.xlu1 %2349  ;;  %s7991_s27 = smov 24  }
 0x855   : > { %5734 = vmatmul.mubr.msk.bf16.vlgmr.msra.gmra.mrb[8].mxu0 %vm443_vm11, %v2202_v5  ;;  %v2415_v24 = vpop.permute.xlu1 %2414 }
 0x856   : > { %2289 = vmatpush1.bf16.msra.mxu0 %v2283_v28  ;;  %2320 = vmatprep.mubr.bf16.mxu0 %v6620_v18 }
 0x859   : > { %v2489_v45 = vpop.permute.xlu1 %2488 }
 0x85d   : > { %v2570_v2 = vpop.permute.xlu1 %2569 }
 0x861   : > { %5737 = vmatmul.mubr.msk.bf16.vlgmr.msra.gmra.mrb[8].mxu0 %vm443_vm11, %v2276_v20  ;;  %v6538_v28 = vpop.permute.xlu1 %6537 }
 0x862   : > { %2394 = vmatprep.mubr.bf16.mxu0 %v6620_v18 }
 0x8ab   : > { %v3297_v21 = vpop.permute.xlu0 %3296 }
 0x8ac   : > { %3300 = vst.msk [vmem:[#allocation2] sm:$0xf] %vm3299_vm2, %v3297_v21  ;;  %vm7977_vm2 = vcmask 900096  }
 0x8af   : > { %v2348_v23 = vpop.permute.xlu0 %2347 }
 0x8b0   : > { %v2351_v31 = vsel %vm7975_vm4, %v2346_v30, %v2348_v23  ;;  %v2352_v32 = vsel %vm7976_vm7, %v2348_v23, %v2350_v29  ;;  %vm7978_vm4 = vmmov %vm7977_vm2  ;;  %vm7979_vm7 = vcmask 785408   ;;  %v6540_v30 = vunpack.i.h.bf16 %v6538_v28  ;;  %v5744_v29 = vld [vmem:[%s7898_s1 + $0x60] sm:$0xf]  ;;  %v5804_v23 = vld [vmem:[%s7902_s5 + $0x10] sm:$0xf] }
 0x8b1   : > { %5739 = vmatprep.subr.msk.bf16.mxu0 %vm447_vm9, %v2352_v32  ;;  %v2357_v25 = vsel %vm447_vm9, %v2351_v31, 0 }
 0x8b2   : > { %2363 = vmatpush1.bf16.msra.mxu0 %v2357_v25  ;;  %v6539_v25 = vunpack.i.l.bf16 %v6538_v28  ;;  %v2757_v28 = vsel %vm7030_vm15, %v7018_v14, 0.0 }
 0x8b3   : > { %v6528_v33 = vpop.permute.xlu0 %6527  ;;  %v7248_v35 = vld [vmem:[#allocation2] sm:$0xf] }
 0x8b4   : > { %v3537_v36 = vld [vmem:[#allocation2] sm:$0xf]  ;;  %v6530_v37 = vunpack.i.h.bf16 %v6528_v33  ;;  %v6529_v39 = vunpack.i.l.bf16 %v6528_v33  ;;  %3425 = vrot.lane.b32.xlu0 %v7248_v35, %s6624_s24  ;;  %v3326_v40 = vpack.c.bf16 %v7248_v35, %v7248_v35 }
 0x8b5   : > { %v3480_v41 = vld [vmem:[#allocation2] sm:$0xf]  ;;  %5740 = vmatmul.mubr.msk.bf16.vlgmr.msra.gmra.mrb[8].mxu0 %vm443_vm11, %v2335_v27  ;;  %v3541_v47 = vpack.c.bf16 %v3537_v36, %v3537_v36  ;;  %v5803_v27 = vld [vmem:[%s7901_s4 + $0x10] sm:$0xf] }
 0x8b6   : > { %v3648_v42 = vld [vmem:[#allocation2] sm:$0xf]  ;;  %v2417_v46 = vsel %vm7977_vm2, %v6530_v37, %v2415_v24  ;;  %3328 = vrot.lane.b32.xlu1 %v3326_v40, %s6622_s22  ;;  %v2416_v12 = vsel %vm7978_vm4, %v6529_v39, %v6530_v37  ;;  %2468 = vmatprep.mubr.bf16.mxu0 %v6620_v18  ;;  %vm7980_vm2 = vmmov %vm7979_vm7  ;;  %vm7981_vm4 = vcmask 777216   ;;  %v2498_v24 = vpack.c.bf16 %v5744_v29, %v5744_v29  ;;  %v5747_v40 = vld [vmem:[%s7898_s1 + $0x64] sm:$0xf] }
 0x8b7   : > { %v3705_v43 = vld [vmem:[#allocation2] sm:$0xf]  ;;  %v6533_v48 = vpop.permute.xlu0 %6532  ;;  %v2421_v49 = vsel %vm6827_vm10, %v2417_v46, 0.0  ;;  %v2420_v50 = vsel %vm6817_vm8, %v2416_v12, 0.0  ;;  %v2978_v37 = vpack.c.bf16 %v7022_v16, %v7022_v16  ;;  %v5783_v12 = vld [vmem:[%s7898_s1 + $0x94] sm:$0xf] }
 0x8b8   : > { %4034 = vst [vmem:[#allocation2] sm:$0xff] %v6617_v0  ;;  %v6535_v51 = vunpack.i.h.bf16 %v6533_v48  ;;  %v6534_v52 = vunpack.i.l.bf16 %v6533_v48  ;;  %3543 = vrot.lane.b32.xlu0 %v3541_v47, %s6648_s25  ;;  %v2426_v55 = vpack.c.bf16 %v2421_v49, %v2421_v49  ;;  %v2425_v57 = vpack.c.bf16 %v2420_v50, %v2420_v50  ;;  %s6650_s25 = smov 122  }
 0x8b9   : > { %v3709_v11 = vpack.c.bf16 %v3705_v43, %v3705_v43 }
 0x8ba   : > { %v2491_v58 = vsel %vm7979_vm7, %v6535_v51, %v2489_v45  ;;  %3482 = vrot.lane.b32.xlu1 %v3480_v41, %s6649_s17  ;;  %5742 = vmatprep.subr.msk.bf16.mxu0 %vm447_vm9, %v2426_v55  ;;  %v2431_v59 = vsel %vm447_vm9, %v2425_v57, 0  ;;  %v2490_v61 = vsel %vm7980_vm2, %v6534_v52, %v6535_v51  ;;  %vm7982_vm7 = vcmask 769024   ;;  %vm7983_vm2 = vmmov %vm7981_vm4  ;;  %v5782_v57 = vld [vmem:[%s7898_s1 + $0x90] sm:$0xf] }
 0x8bb   : > { %v2568_v62 = vpop.permute.xlu0 %2567  ;;  %2437 = vmatpush1.bf16.msra.mxu0 %v2431_v59  ;;  %v2495_v63 = vsel %vm6831_vm12, %v2491_v58, 0.0  ;;  %v2494_v1 = vsel %vm6835_vm13, %v2490_v61, 0.0  ;;  %v3325_v51 = vpack.c.bf16 %v5783_v12, %v5783_v12  ;;  %v3321_v60 = vpack.c.bf16 %v5782_v57, %v5782_v57  ;;  %v5792_v12 = vld [vmem:[%s7898_s1 + $0xa4] sm:$0xf] }
 0x8bc   : > { %3650 = vrot.lane.b32.xlu0 %v3648_v42, %s6640_s19  ;;  %v2500_v4 = vpack.c.bf16 %v2495_v63, %v2495_v63  ;;  %v2499_v7 = vpack.c.bf16 %v2494_v1, %v2494_v1  ;;  %v2573_v31 = vsel %vm7983_vm2, %v2568_v62, %v2570_v2  ;;  %v2557_v42 = vpack.c.bf16 %v5747_v40, %v5747_v40 }
 0x8bd   : > { %v2579_v33 = vsel %vm447_vm9, %v2573_v31, 0 }
 0x8be   : > { %3593 = vrot.lane.b32.xlu1 %v3537_v36, %s6650_s25  ;;  %5745 = vmatprep.subr.msk.bf16.mxu0 %vm447_vm9, %v2500_v4  ;;  %v2505_v5 = vsel %vm447_vm9, %v2499_v7, 0  ;;  %s7990_s25 = smov 32  }
 0x8bf   : > { %v2572_v8 = vpop.permute.xlu0 %2571 }
 0x8c0   : > { %v2574_v10 = vsel %vm7981_vm4, %v2570_v2, %v2572_v8  ;;  %3761 = vrot.lane.b32.xlu0 %v3705_v43, %s6641_s15  ;;  %vm7984_vm4 = vmmov %vm7982_vm7  ;;  %v5786_v2 = vld [vmem:[%s7898_s1 + $0x98] sm:$0xf] }
 0x8c1   : > { %5743 = vmatmul.mubr.msk.bf16.vlgmr.msra.gmra.mrb[8].mxu0 %vm443_vm11, %v2424_v6  ;;  %v2638_v39 = vsel %vm7984_vm4, %v6539_v25, %v6540_v30  ;;  %v3431_v8 = vpack.c.bf16 %v5786_v2, %v5786_v2  ;;  %v5759_v25 = vld [vmem:[%s7898_s1 + $0x6c] sm:$0xf]  ;;  %vm3879_vm4 = vcmask 1043456  }
 0x8c2   : > { %2511 = vmatpush1.bf16.msra.mxu0 %v2505_v5  ;;  %3711 = vrot.lane.b32.xlu1 %v3709_v11, %s6639_s30  ;;  %v2642_v41 = vsel %vm6817_vm8, %v2638_v39, 0.0  ;;  %v5790_v39 = vld [vmem:[%s7898_s1 + $0xa0] sm:$0xf] }
 0x8c3   : > { %5748 = vmatprep.subr.msk.bf16.mxu0 %vm447_vm9, %v2574_v10  ;;  %2542 = vmatprep.mubr.bf16.mxu0 %v6620_v18  ;;  %v2637_v20 = vpop.permute.xlu0 %2636  ;;  %v2647_v43 = vpack.c.bf16 %v2642_v41, %v2642_v41  ;;  %v3540_v41 = vpack.c.bf16 %v5790_v39, %v5790_v39 }
 0x8c4   : > { %3828 = vperm.xlu0 %6514, %v5801_v9   ;;  %v2639_v21 = vsel %vm7982_vm7, %v6540_v30, %v2637_v20  ;;  %v5760_v9 = vld [vmem:[%s7898_s1 + $0x70] sm:$0xf] }
 0x8c5   : > { %v2643_v32 = vsel %vm6827_vm10, %v2639_v21, 0.0  ;;  %v2653_v45 = vsel %vm447_vm9, %v2647_v43, 0  ;;  %v2764_v29 = vpack.c.bf16 %v5760_v9, %v5760_v9  ;;  %v2761_v21 = vpack.c.bf16 %v2757_v28, %v2757_v28  ;;  %v5769_v28 = vld [vmem:[%s7898_s1 + $0x80] sm:$0xf] }
 0x8c6   : > { %3820 = vperm.xlu1 %6515, %v5800_v13   ;;  %v2648_v36 = vpack.c.bf16 %v2643_v32, %v2643_v32 }
 0x8c8   : > { %2862 = vrot.lane.b32.xlu0 %v7018_v14, %s6624_s24  ;;  %v2819_v14 = vsel %vm447_vm9, %v2761_v21, 0 }
 0x8ca   : > { %2767 = vrot.lane.b32.xlu1 %v2765_v22, %s6622_s22  ;;  %v5788_v22 = vld [vmem:[%s7898_s1 + $0x9c] sm:$0xf] }
 0x8cc   : > { %3851 = vperm.xlu0 %6514, %v5804_v23   ;;  %v3488_v23 = vpack.c.bf16 %v5788_v22, %v5788_v22 }
 0x8cd   : > { %5746 = vmatmul.mubr.msk.bf16.vlgmr.msra.gmra.mrb[8].mxu0 %vm443_vm11, %v2498_v24 }
 0x8ce   : > { %2585 = vmatpush1.bf16.msra.mxu0 %v2579_v33  ;;  %3843 = vperm.xlu1 %6515, %v5803_v27  }
 0x8cf   : > { %5751 = vmatprep.subr.msk.bf16.mxu0 %vm447_vm9, %v2648_v36  ;;  %2616 = vmatprep.mubr.bf16.mxu0 %v6620_v18 }
 0x8d0   : > { %2980 = vrot.lane.b32.xlu0 %v2978_v37, %s6639_s30  ;;  %v2760_v37 = vpack.c.bf16 %v5759_v25, %v5759_v25 }
 0x8d2   : > { %2919 = vrot.lane.b32.xlu1 %v7020_v15, %s6640_s19  ;;  %v3146_v15 = vpack.c.bf16 %v7026_v19, %v7026_v19 }
 0x8d4   : > { %3087 = vrot.lane.b32.xlu0 %v7024_v17, %s6626_s26 }
 0x8d6   : > { %3030 = vrot.lane.b32.xlu1 %v7022_v16, %s6641_s15  ;;  %v5750_v16 = vld [vmem:[%s7898_s1 + $0x68] sm:$0xf] }
 0x8d7   : > { %v2646_v17 = vpack.c.bf16 %v5750_v16, %v5750_v16  ;;  %v5763_v16 = vld [vmem:[%s7898_s1 + $0x74] sm:$0xf] }
 0x8d8   : > { %3198 = vrot.lane.b32.xlu0 %v7026_v19, %s7953_s21  ;;  %v3305_v19 = vand.u32 3, %v6809_v34 }
 0x8d9   : > { %5749 = vmatmul.mubr.msk.bf16.vlgmr.msra.gmra.mrb[8].mxu0 %vm443_vm11, %v2557_v42 }
 0x8da   : > { %2659 = vmatpush1.bf16.msra.mxu0 %v2653_v45  ;;  %3148 = vrot.lane.b32.xlu1 %v3146_v15, %s7955_s20  ;;  %vm7344_vm7 = vcmp.gt.s32.totalorder %v3305_v19, 0  ;;  %vm7360_vm2 = vcmp.lt.s32.totalorder %v3305_v19, 3 }
 0x8db   : > { %2690 = vmatprep.mubr.bf16.mxu0 %v6620_v18  ;;  %6099 = vmatprep.subr.bf16.mxu0 %v6617_v0  ;;  %v3318_v47 = vsel %vm7344_vm7, %v7248_v35, 0.0 }
 0x8dc   : > { %v3322_v50 = vpack.c.bf16 %v3318_v47, %v3318_v47  ;;  %v2868_v47 = vpack.c.bf16 %v5763_v16, %v5763_v16 }
 0x8de   : > { %v3380_v34 = vsel %vm447_vm9, %v3322_v50, 0 }
 0x8e5   : > { %5752 = vmatmul.mubr.msk.bf16.vlgmr.msra.gmra.mrb[8].mxu0 %vm443_vm11, %v2646_v17 }
 0x8e6   : > { %6101 = vmatprep.mubr.msk.bf16.mxu0 %vm7951_vm3, %v6617_v0 }
 0x926   : > { %v3426_v52 = vpop.permute.xlu0 %3425 }
 0x927   : > { %v3428_v55 = vsel %vm7360_vm2, %v3426_v52, 0.0 }
 0x928   : > { %v3329_v48 = vpop.permute.xlu1 %3328  ;;  %v3432_v58 = vpack.c.bf16 %v3428_v55, %v3428_v55  ;;  %v5794_v55 = vld [vmem:[%s7898_s1 + $0xa8] sm:$0xf] }
 0x929   : > { %v3334_v49 = vsel %vm447_vm9, %v3329_v48, 0 }
 0x92a   : > { %6100 = vmatpush3.bf16.msra.mxu0 %v3334_v49  ;;  %v3437_v61 = vsel %vm447_vm9, %v3432_v58, 0  ;;  %v3544_v62 = vpop.permute.xlu0 %3543  ;;  %v3599_v49 = vpack.c.bf16 %v5792_v12, %v5792_v12  ;;  %v3656_v58 = vpack.c.bf16 %v5794_v55, %v5794_v55 }
 0x92b   : > { %6105 = vmatprep.subr.bf16.mxu0 %v6617_v0  ;;  %v3549_v31 = vsel %vm447_vm9, %v3544_v62, 0 }
 0x92c   : > { %v3483_v59 = vpop.permute.xlu1 %3482 }
 0x92d   : > { %6102 = vmatmul.mubr.msk.bf16.vlgmr.msra.gmra.mrb[12].mxu0 %vm443_vm11, %v3325_v51  ;;  %v3485_v1 = vsel %vm7344_vm7, %v3483_v59, 0.0 }
 0x92e   : > { %6106 = vmatpush3.bf16.msra.mxu0 %v3380_v34  ;;  %6107 = vmatprep.mubr.msk.bf16.mxu0 %vm7951_vm3, %v6617_v0  ;;  %v3651_v4 = vpop.permute.xlu0 %3650  ;;  %v3489_v6 = vpack.c.bf16 %v3485_v1, %v3485_v1  ;;  %v5765_v34 = vld [vmem:[%s7898_s1 + $0x78] sm:$0xf] }
 0x92f   : > { %6111 = vmatprep.subr.bf16.mxu0 %v6617_v0  ;;  %v3653_v17 = vsel %vm7344_vm7, %v3651_v4, 0.0  ;;  %v2925_v52 = vpack.c.bf16 %v5765_v34, %v5765_v34  ;;  %vm7995_vm7 = vcmask 191616  }
 0x930   : > { %v3594_v63 = vpop.permute.xlu1 %3593  ;;  %v3494_v10 = vsel %vm447_vm9, %v3489_v6, 0  ;;  %v3657_v48 = vpack.c.bf16 %v3653_v17, %v3653_v17  ;;  %v5796_v6 = vld [vmem:[%s7898_s1 + $0xac] sm:$0xf] }
 0x931   : > { %v3596_v27 = vsel %vm7360_vm2, %v3594_v63, 0.0  ;;  %v5767_v63 = vld [vmem:[%s7898_s1 + $0x7c] sm:$0xf] }
 0x932   : > { %v7386_v5 = vpop.permute.xlu0 %3761  ;;  %v3600_v40 = vpack.c.bf16 %v3596_v27, %v3596_v27  ;;  %v3662_v46 = vsel %vm447_vm9, %v3657_v48, 0  ;;  %v2977_v4 = vpack.c.bf16 %v5767_v63, %v5767_v63  ;;  %v5773_v27 = vld [vmem:[%s7898_s1 + $0x88] sm:$0xf] }
 0x933   : > { %v3764_v1 = vsel %vm7360_vm2, %v7386_v5, 0.0  ;;  %vm7996_vm2 = vcmask 257216  }
 0x934   : > { %v7380_v7 = vpop.permute.xlu1 %3711  ;;  %v3605_v15 = vsel %vm447_vm9, %v3600_v40, 0 }
 0x939   : > { %6108 = vmatmul.mubr.msk.bf16.vlgmr.msra.gmra.mrb[12].mxu0 %vm443_vm11, %v3321_v60 }
 0x93a   : > { %6112 = vmatpush3.bf16.msra.mxu0 %v3437_v61  ;;  %6113 = vmatprep.mubr.msk.bf16.mxu0 %vm7951_vm3, %v6617_v0  ;;  %v3717_v61 = vsel %vm447_vm9, %v7380_v7, 0  ;;  %v3768_v7 = vpack.c.bf16 %v3764_v1, %v3764_v1 }
 0x93b   : > { %6117 = vmatprep.subr.bf16.mxu0 %v6617_v0 }
 0x93c   : > { %v3773_v35 = vsel %vm447_vm9, %v3768_v7, 0 }
 0x943   : > { %v7397_v20 = vpop.permute.xlu0 %3828 }
 0x945   : > { %v7383_v11 = vpop.permute.xlu1 %3820  ;;  %6114 = vmatmul.mubr.msk.bf16.vlgmr.msra.gmra.mrb[12].mxu0 %vm443_vm11, %v3431_v8  ;;  %v3708_v8 = vpack.c.bf16 %v5796_v6, %v5796_v6 }
 0x946   : > { %6118 = vmatpush3.bf16.msra.mxu0 %v3494_v10  ;;  %6119 = vmatprep.mubr.msk.bf16.mxu0 %vm7951_vm3, %v6617_v0 }
 0x947   : > { %6123 = vmatprep.subr.bf16.mxu0 %v6617_v0  ;;  %v2863_v24 = vpop.permute.xlu0 %2862 }
 0x948   : > { %v2865_v32 = vsel %vm7045_vm0, %v2863_v24, 0.0 }
 0x949   : > { %v2768_v13 = vpop.permute.xlu1 %2767  ;;  %v2869_v33 = vpack.c.bf16 %v2865_v32, %v2865_v32 }
 0x94a   : > { %v2773_v30 = vsel %vm447_vm9, %v2768_v13, 0 }
 0x94b   : > { %6046 = vmatpush3.bf16.msra.mxu1 %v2773_v30  ;;  %v2874_v42 = vsel %vm447_vm9, %v2869_v33, 0  ;;  %v7452_v51 = vpop.permute.xlu0 %3851  ;;  %v3036_v30 = vpack.c.bf16 %v5769_v28, %v5769_v28 }
 0x94c   : > { %6051 = vmatprep.subr.bf16.mxu1 %v6617_v0 }
 0x94d   : > { %v7421_v36 = vpop.permute.xlu1 %3843 }
 0x94e   : > { %6048 = vmatmul.mubr.msk.bf16.vlgmr.msra.gmra.mrb[16].mxu1 %vm443_vm11, %v2764_v29  ;;  %v5798_v29 = vld [vmem:[%s7898_s1 + $0xb0] sm:$0xf] }
 0x94f   : > { %6052 = vmatpush3.bf16.msra.mxu1 %v2819_v14  ;;  %6053 = vmatprep.mubr.msk.bf16.mxu1 %vm7951_vm3, %v6617_v0  ;;  %v2981_v57 = vpop.permute.xlu0 %2980  ;;  %v3767_v21 = vpack.c.bf16 %v5798_v29, %v5798_v29 }
 0x950   : > { %6057 = vmatprep.subr.bf16.mxu1 %v6617_v0  ;;  %v2986_v59 = vsel %vm447_vm9, %v2981_v57, 0  ;;  %v3872_v57 = vld [vmem:[%s7905_s8] sm:$0xf] }
 0x951   : > { %6120 = vmatmul.mubr.msk.bf16.vlgmr.msra.gmra.mrb[12].mxu0 %vm443_vm11, %v3488_v23  ;;  %v2920_v43 = vpop.permute.xlu1 %2919  ;;  %v5771_v23 = vld [vmem:[%s7898_s1 + $0x84] sm:$0xf] }
 0x952   : > { %6124 = vmatpush3.bf16.msra.mxu0 %v3549_v31  ;;  %6125 = vmatprep.mubr.msk.bf16.mxu0 %vm7951_vm3, %v6617_v0  ;;  %v2922_v45 = vsel %vm7030_vm15, %v2920_v43, 0.0  ;;  %v3093_v14 = vpack.c.bf16 %v5771_v23, %v5771_v23 }
 0x953   : > { %6129 = vmatprep.subr.bf16.mxu0 %v6617_v0  ;;  %v2926_v19 = vpack.c.bf16 %v2922_v45, %v2922_v45  ;;  %v3088_v9 = vpop.permute.xlu0 %3087 }
 0x954   : > { %v3090_v5 = vsel %vm7030_vm15, %v3088_v9, 0.0 }
 0x955   : > { %v2931_v50 = vsel %vm447_vm9, %v2926_v19, 0  ;;  %v3031_v60 = vpop.permute.xlu1 %3030  ;;  %v3094_v13 = vpack.c.bf16 %v3090_v5, %v3090_v5 }
 0x956   : > { %v3033_v62 = vsel %vm7045_vm0, %v3031_v60, 0.0 }
 0x957   : > { %v3037_v2 = vpack.c.bf16 %v3033_v62, %v3033_v62  ;;  %v3099_v22 = vsel %vm447_vm9, %v3094_v13, 0  ;;  %v3199_v32 = vpop.permute.xlu0 %3198 }
 0x958   : > { %v3201_v25 = vsel %vm7045_vm0, %v3199_v32, 0.0 }
 0x959   : > { %v3042_v10 = vsel %vm447_vm9, %v3037_v2, 0  ;;  %v3149_v24 = vpop.permute.xlu1 %3148  ;;  %v3205_v33 = vpack.c.bf16 %v3201_v25, %v3201_v25 }
 0x95a   : > { %6054 = vmatmul.mubr.msk.bf16.vlgmr.msra.gmra.mrb[16].mxu1 %vm443_vm11, %v2760_v37  ;;  %v3154_v31 = vsel %vm447_vm9, %v3149_v24, 0  ;;  %v3145_v37 = vpack.c.bf16 %v5773_v27, %v5773_v27 }
 0x95b   : > { %6058 = vmatpush3.bf16.msra.mxu1 %v2874_v42  ;;  %6059 = vmatprep.mubr.msk.bf16.mxu1 %vm7951_vm3, %v6617_v0  ;;  %v3210_v39 = vsel %vm447_vm9, %v3205_v33, 0 }
 0x95c   : > { %6063 = vmatprep.subr.bf16.mxu1 %v6617_v0 }
 0x95d   : > { %6126 = vmatmul.mubr.msk.bf16.vlgmr.msra.gmra.mrb[12].mxu0 %vm443_vm11, %v3540_v41 }
 0x95e   : > { %6130 = vmatpush3.bf16.msra.mxu0 %v3605_v15  ;;  %6131 = vmatprep.mubr.msk.bf16.mxu0 %vm7951_vm3, %v6617_v0  ;;  %v5775_v15 = vld [vmem:[%s7898_s1 + $0x8c] sm:$0xf] }
 0x95f   : > { %6135 = vmatprep.subr.bf16.mxu0 %v6617_v0  ;;  %v3204_v45 = vpack.c.bf16 %v5775_v15, %v5775_v15 }
 0x966   : > { %6060 = vmatmul.mubr.msk.bf16.vlgmr.msra.gmra.mrb[16].mxu1 %vm443_vm11, %v2868_v47 }
 0x967   : > { %6064 = vmatpush3.bf16.msra.mxu1 %v2931_v50  ;;  %6065 = vmatprep.mubr.msk.bf16.mxu1 %vm7951_vm3, %v6617_v0 }
 0x968   : > { %6069 = vmatprep.subr.bf16.mxu1 %v6617_v0 }
 0x969   : > { %6132 = vmatmul.mubr.msk.bf16.vlgmr.msra.gmra.mrb[12].mxu0 %vm443_vm11, %v3599_v49 }
 0x96a   : > { %6136 = vmatpush3.bf16.msra.mxu0 %v3662_v46  ;;  %6137 = vmatprep.mubr.msk.bf16.mxu0 %vm7951_vm3, %v6617_v0 }
 0x96b   : > { %6141 = vmatprep.subr.bf16.mxu0 %v6617_v0 }
 0x972   : > { %6066 = vmatmul.mubr.msk.bf16.vlgmr.msra.gmra.mrb[16].mxu1 %vm443_vm11, %v2925_v52 }
 0x973   : > { %6070 = vmatpush3.bf16.msra.mxu1 %v2986_v59  ;;  %6071 = vmatprep.mubr.msk.bf16.mxu1 %vm7951_vm3, %v6617_v0 }
 0x974   : > { %6075 = vmatprep.subr.bf16.mxu1 %v6617_v0 }
 0x975   : > { %6138 = vmatmul.mubr.msk.bf16.vlgmr.msra.gmra.mrb[12].mxu0 %vm443_vm11, %v3656_v58 }
 0x976   : > { %6142 = vmatpush3.bf16.msra.mxu0 %v3717_v61  ;;  %6143 = vmatprep.mubr.msk.bf16.mxu0 %vm7951_vm3, %v6617_v0 }
 0x977   : > { %6147 = vmatprep.subr.bf16.mxu0 %v6617_v0 }
 0x97e   : > { %6072 = vmatmul.mubr.msk.bf16.vlgmr.msra.gmra.mrb[16].mxu1 %vm443_vm11, %v2977_v4 }
 0x97f   : > { %6076 = vmatpush3.bf16.msra.mxu1 %v3042_v10  ;;  %6077 = vmatprep.mubr.msk.bf16.mxu1 %vm7951_vm3, %v6617_v0 }
 0x980   : > { %6081 = vmatprep.subr.bf16.mxu1 %v6617_v0 }
 0x981   : > { %6144 = vmatmul.mubr.msk.bf16.vlgmr.msra.gmra.mrb[12].mxu0 %vm443_vm11, %v3708_v8 }
 0x982   : > { %6148 = vmatpush3.bf16.msra.mxu0 %v3773_v35  ;;  %6149 = vmatprep.mubr.msk.bf16.mxu0 %vm7951_vm3, %v6617_v0 }
 0x98a   : > { %6078 = vmatmul.mubr.msk.bf16.vlgmr.msra.gmra.mrb[16].mxu1 %vm443_vm11, %v3036_v30 }
 0x98b   : > { %6082 = vmatpush3.bf16.msra.mxu1 %v3099_v22  ;;  %6083 = vmatprep.mubr.msk.bf16.mxu1 %vm7951_vm3, %v6617_v0 }
 0x98c   : > { %6087 = vmatprep.subr.bf16.mxu1 %v6617_v0 }
 0x98d   : > { %6150 = vmatmul.mubr.msk.bf16.vlgmr.msra.gmra.mrb[12].mxu0 %vm443_vm11, %v3767_v21 }
 0x996   : > { %6084 = vmatmul.mubr.msk.bf16.vlgmr.msra.gmra.mrb[16].mxu1 %vm443_vm11, %v3093_v14 }
 0x997   : > { %6088 = vmatpush3.bf16.msra.mxu1 %v3154_v31  ;;  %6089 = vmatprep.mubr.msk.bf16.mxu1 %vm7951_vm3, %v6617_v0 }
 0x998   : > { %6093 = vmatprep.subr.bf16.mxu1 %v6617_v0 }
 0x9a2   : > { %6090 = vmatmul.mubr.msk.bf16.vlgmr.msra.gmra.mrb[16].mxu1 %vm443_vm11, %v3145_v37 }
 0x9a3   : > { %6094 = vmatpush3.bf16.msra.mxu1 %v3210_v39  ;;  %6095 = vmatprep.mubr.msk.bf16.mxu1 %vm7951_vm3, %v6617_v0 }
 0x9a4   : > { %6153 = vmatprep.subr.msk.mxu1 %vm3879_vm4, %v3872_v57 }
 0x9ae   : > { %6096 = vmatmul.mubr.msk.bf16.vlgmr.msra.gmra.mrb[16].mxu1 %vm443_vm11, %v3204_v45 }
 0x9af   : > { %6154 = vmatpush3.msk.msra.mxu1 %vm3879_vm4, %v3872_v57  ;;  %vm7997_vm4 = vcmask 322816  }
 0x9b0   : > { %6158 = vmatprep.subr.bf16.mxu1 %v6617_v0 }
 0x9b8   : > { %v7526_v40 = vpop.f32.mrb[8].mxu0 }
 0x9b9   : > { %v7528_v41 = vpop.f32.mrb[9].mxu0 }
 0x9ba   : > { %v2696_v42 = vpop.f32.mrb[10].mxu0 }
 0x9bb   : > { %v2697_v43 = vpop.f32.mrb[11].mxu0 }
 0xa60   : > { %v3809_v16 = vpop.f32.mrb[12].mxu0 }
 0xa61   : > { %v3823_v17 = vmul.f32 %v7383_v11, %v3809_v16  ;;  %v6151_v19 = vpop.f32.mrb[13].mxu0 }
 0xa62   : > { %v3812_v47 = vpop.f32.mrb[14].mxu0 }
 0xa63   : > { %v3831_v12 = vadd.f32 %v7397_v20, %v3823_v17  ;;  %v6152_v48 = vpop.f32.mrb[15].mxu0 }
 0xa65   : > { %v5802_v49 = vmul.f32 -1.442695, %v3831_v12 }
 0xa67   : > { %6581 = vpow2.f32 %v5802_v49 }
 0xa71   : > { %v6582_v50 = vpop.eup %6581 }
 0xa72   : > { %v3835_v46 = vadd.f32 1.0, %v6582_v50 }
 0xa74   : > { %6583 = vrcp.f32 %v3835_v46 }
 0xa7e   : > { %v6584_v34 = vpop.eup %6583 }
 0xa7f   : > { %v3838_v52 = vmul.f32 %v6584_v34, %v3831_v12 }
 0xa81   : > { %v3846_v55 = vmul.f32 %v7421_v36, %v3838_v52  ;;  %v7545_v36 = vpop.f32.mrb[16].mxu1 }
 0xa82   : > { %v6097_v58 = vpop.f32.mrb[17].mxu1 }
 0xa83   : > { %v3854_v11 = vadd.f32 %v7452_v51, %v3846_v55  ;;  %v3249_v59 = vpop.f32.mrb[18].mxu1 }
 0xa84   : > { %v6098_v60 = vpop.f32.mrb[19].mxu1 }
 0xa85   : > { %v3855_v20 = vmax.f32 %v3854_v11, 0.0  ;;  %v5826_v60 = vld [vmem:[%s7899_s2 + $0x14] sm:$0xf] }
 0xa87   : > { %3862 = vrot.lane.b32.xlu0 %v3855_v20, %s6640_s19  ;;  %3856 = vst.msk [vmem:[#allocation3] sm:$0xf] %vm2029_vm6, %v3855_v20  ;;  %3858 = vrot.lane.b32.xlu1 %v3855_v20, %s6649_s17  ;;  %s7989_s17 = smov 16  }
 0xa8b   : > { %3866 = vrot.lane.b32.xlu1 %v3855_v20, %s6651_s16 }
 0xaf9   : > { %v3863_v61 = vpop.permute.xlu0 %3862  ;;  %v3859_v51 = vpop.permute.xlu1 %3858 }
 0xafa   : > { %3865 = vst.msk [vmem:[#allocation3 + $0x8] sm:$0xf] %vm2029_vm6, %v3863_v61  ;;  %3861 = vst.msk [vmem:[#allocation3 + $0x4] sm:$0xf] %vm2029_vm6, %v3859_v51  ;;  %v5777_v61 = vld [vmem:[%s7899_s2 + $0xc] sm:$0xf] }
 0xafb   : > { %v5827_v51 = vld [vmem:[%s7900_s3 + $0x14] sm:$0xf] }
 0xafd   : > { %v3867_v62 = vpop.permute.xlu1 %3866 }
 0xafe   : > { %3869 = vst.msk [vmem:[#allocation3 + $0xc] sm:$0xf] %vm2029_vm6, %v3867_v62  ;;  %vm7994_vm6 = vcmask 126016   ;;  %v5778_v62 = vld [vmem:[%s7900_s3 + $0xc] sm:$0xf] }
 0xb01   : > { %v3870_v63 = vld [vmem:[#allocation3] sm:$0xff] }
 0xb02   : > { %6155 = vmatprep.mubr.msk.f32.mxu1 %vm443_vm11, %v3870_v63  ;;  %v5829_v63 = vld [vmem:[%s7901_s4 + $0x14] sm:$0xf] }
 0xb05   : > { %v3871_v1 = vld [vmem:[#allocation3 + $0x8] sm:$0xff] }
 0xb06   : > { %6156 = vmatmul.mubr.msk.f32.vlgmr.msra.gmra.mrb[20].mxu1 %vm443_vm11, %v3871_v1  ;;  %v5780_v1 = vld [vmem:[%s7901_s4 + $0xc] sm:$0xf] }
 0xb07   : > { %6160 = vmatprep.mubr.msk.bf16.mxu1 %vm7951_vm3, %v6617_v0  ;;  %vm8000_vm3 = vcmask 519616  }
 0xbd9   : > { %v6157_v2 = vpop.f32.mrb[20].mxu1 }
 0xbda   : > { %v3949_v4 = vpop.f32.mrb[21].mxu1  ;;  %v4006_v6 = vmul.f32 0.14285715, %v6157_v2  ;;  %v4005_v7 = vmul.f32 0.85714287, %v6157_v2  ;;  %v4028_v45 = vcombine.high %v6157_v2, %v6157_v2 }
 0xbdb   : > { %3958 = vst.msk [vmem:[#allocation4] sm:$0xf] %vm7950_vm1, %v3949_v4  ;;  %v3971_v8 = vmul.f32 0.85714287, %v3949_v4  ;;  %v3970_v9 = vmul.f32 0.14285715, %v3949_v4 }
 0xbdc   : > { %v4008_v10 = vrot.slane %v4006_v6, 4  ;;  %v3960_v35 = vmul.f32 0.42857143, %v3949_v4  ;;  %v3993_v28 = vmul.f32 0.2857143, %v3949_v4  ;;  %vm7999_vm1 = vcmask 454016  }
 0xbdd   : > { %v3973_v5 = vrot.slane %v3971_v8, 4  ;;  %v3994_v13 = vmul.f32 0.71428573, %v6157_v2  ;;  %v3981_v21 = vmul.f32 0.71428573, %v3949_v4 }
 0xbde   : > { %v4010_v30 = vadd.f32 %v4008_v10, %v4005_v7  ;;  %v3962_v29 = vrot.slane %v3960_v35, 4  ;;  %v3982_v22 = vmul.f32 0.2857143, %v6157_v2  ;;  %v4017_v24 = vmul.f32 0.5714286, %v6157_v2 }
 0xbdf   : > { %v3975_v23 = vadd.f32 %v3973_v5, %v3970_v9  ;;  %v3996_v14 = vrot.slane %v3994_v13, 4  ;;  %v3959_v31 = vmul.f32 0.5714286, %v3949_v4  ;;  %v4016_v42 = vmul.f32 0.42857143, %v6157_v2 }
 0xbe0   : > { %4012 = vrot.lane.b32.xlu0 %v4010_v30, %s6635_s29  ;;  %v3984_v32 = vrot.slane %v3982_v22, 4  ;;  %v4019_v39 = vrot.slane %v4017_v24, 4  ;;  %s7993_s29 = smov 56   ;;  %v5830_v2 = vld [vmem:[%s7902_s5 + $0x14] sm:$0xf] }
 0xbe1   : > { %3977 = vrot.lane.b32.xlu1 %v3975_v23, %s7989_s17  ;;  %v3998_v25 = vadd.f32 %v3996_v14, %v3993_v28  ;;  %v3964_v27 = vadd.f32 %v3962_v29, %v3959_v31  ;;  %v5781_v4 = vld [vmem:[%s7902_s5 + $0xc] sm:$0xf]  ;;  %v5809_v6 = vld [vmem:[%s7898_s1 + $0xb8] sm:$0xf]  ;;  %v5808_v30 = vld [vmem:[%s7898_s1 + $0xb4] sm:$0xf] }
 0xbe2   : > { %v3986_v33 = vadd.f32 %v3984_v32, %v3981_v21  ;;  %v4021_v15 = vadd.f32 %v4019_v39, %v4016_v42  ;;  %v4049_v9 = vpack.c.bf16 %v5809_v6, %v5809_v6  ;;  %v4045_v21 = vpack.c.bf16 %v5808_v30, %v5808_v30  ;;  %v5812_v24 = vld [vmem:[%s7898_s1 + $0xbc] sm:$0xf] }
 0xbe3   : > { %v4000_v37 = vcombine.high %v3998_v25, %v3998_v25  ;;  %v4153_v32 = vpack.c.bf16 %v5812_v24, %v5812_v24 }
 0xbe4   : > { %3966 = vrot.lane.b32.xlu0 %v3964_v27, %s6633_s18  ;;  %v3988_v43 = vcombine.high %v3986_v33, %v3986_v33  ;;  %s8001_s18 = smov 9   ;;  %v5814_v27 = vld [vmem:[%s7898_s1 + $0xc0] sm:$0xf] }
 0xbe5   : > { %4001 = vrot.lane.b32.xlu1 %v4000_v37, %s7990_s25  ;;  %v4210_v33 = vpack.c.bf16 %v5814_v27, %v5814_v27 }
 0xbe8   : > { %3989 = vrot.lane.b32.xlu0 %v3988_v43, %s7991_s27 }
 0xbe9   : > { %4023 = vrot.lane.b32.xlu1 %v4021_v15, %s7992_s28  ;;  %v5816_v15 = vld [vmem:[%s7898_s1 + $0xc4] sm:$0xf] }
 0xbec   : > { %4029 = vrot.lane.b32.xlu0 %v4028_v45, %s7993_s29 }
 0xc52   : > { %v4013_v16 = vpop.permute.xlu0 %4012 }
 0xc53   : > { %v3978_v17 = vpop.permute.xlu1 %3977 }
 0xc56   : > { %v3967_v19 = vpop.permute.xlu0 %3966 }
 0xc57   : > { %3969 = vst.msk [vmem:[#allocation4] sm:$0xf] %vm7994_vm6, %v3967_v19  ;;  %v4002_v47 = vpop.permute.xlu1 %4001  ;;  %vm8002_vm6 = vcmask 592968  }
 0xc58   : > { %3980 = vst.msk [vmem:[#allocation4] sm:$0xf] %vm7995_vm7, %v3978_v17 }
 0xc5a   : > { %v3990_v12 = vpop.permute.xlu0 %3989 }
 0xc5b   : > { %3992 = vst.msk [vmem:[#allocation4] sm:$0xf] %vm7996_vm2, %v3990_v12  ;;  %v4024_v48 = vpop.permute.xlu1 %4023  ;;  %v5818_v12 = vld [vmem:[%s7898_s1 + $0xc8] sm:$0xf] }
 0xc5c   : > { %4004 = vst.msk [vmem:[#allocation4] sm:$0xf] %vm7997_vm4, %v4002_v47 }
 0xc5d   : > { %4015 = vst.msk [vmem:[#allocation4] sm:$0xf] %vm7998_vm14, %v4013_v16  ;;  %v4262_v16 = vpack.c.bf16 %v5816_v15, %v5816_v15  ;;  %vm8004_vm14 = vcmask 60416  }
 0xc5e   : > { %4026 = vst.msk [vmem:[#allocation4] sm:$0xf] %vm7999_vm1, %v4024_v48  ;;  %v4030_v49 = vpop.permute.xlu0 %4029 }
 0xc5f   : > { %4032 = vst.msk [vmem:[#allocation4] sm:$0xf] %vm8000_vm3, %v4030_v49  ;;  %vm8003_vm3 = vmmov 0   ;;  %v4321_v49 = vpack.c.bf16 %v5818_v12, %v5818_v12 }
 0xc66   : > { %v4033_v50 = vld [vmem:[#allocation4] sm:$0xf] }
 0xc67   : > { %4037 = vrot.lane.b32.xlu1 %v4033_v50, %s8001_s18  ;;  %s8008_s18 = smov 72  }
 0xcd9   : > { %v4038_v46 = vpop.permute.xlu1 %4037 }
 0xcda   : > { %4040 = vst.msk [vmem:[#allocation2] sm:$0xf] %vm8002_vm6, %v4038_v46  ;;  %v4378_v46 = vpack.c.bf16 %v5820_v26, %v5820_v26  ;;  %vm8015_vm6 = vcmask 64512  }
 0xce1   : > { %v4041_v34 = vld [vmem:[#allocation2] sm:$0xf] }
 0xce2   : > { %v4259_v52 = vld [vmem:[#allocation2] sm:$0xf]  ;;  %4147 = vrot.lane.b32.xlu1 %v4041_v34, %s6624_s24  ;;  %v4050_v55 = vpack.c.bf16 %v4041_v34, %v4041_v34  ;;  %v4042_v7 = vsel %vm7030_vm15, %v4041_v34, 0.0 }
 0xce3   : > { %v4202_v57 = vld [vmem:[#allocation2] sm:$0xf]  ;;  %v4263_v58 = vpack.c.bf16 %v4259_v52, %v4259_v52  ;;  %v4046_v35 = vpack.c.bf16 %v4042_v7, %v4042_v7 }
 0xce4   : > { %v4370_v11 = vld [vmem:[#allocation2] sm:$0xf]  ;;  %4052 = vrot.lane.b32.xlu0 %v4050_v55, %s6622_s22 }
 0xce5   : > { %v4427_v20 = vld [vmem:[#allocation2] sm:$0xf]  ;;  %v4104_v5 = vsel %vm447_vm9, %v4046_v35, 0 }
 0xce6   : > { %4884 = vst [vmem:[#allocation2] sm:$0xff] %v6617_v0  ;;  %4265 = vrot.lane.b32.xlu1 %v4263_v58, %s6639_s30  ;;  %v4431_v59 = vpack.c.bf16 %v4427_v20, %v4427_v20 }
 0xce8   : > { %4204 = vrot.lane.b32.xlu0 %v4202_v57, %s6640_s19 }
 0xcea   : > { %4372 = vrot.lane.b32.xlu1 %v4370_v11, %s6626_s26  ;;  %v5822_v11 = vld [vmem:[%s7898_s1 + $0xd0] sm:$0xf] }
 0xceb   : > { %v4430_v58 = vpack.c.bf16 %v5822_v11, %v5822_v11 }
 0xcec   : > { %4315 = vrot.lane.b32.xlu0 %v4259_v52, %s6641_s15  ;;  %s8005_s15 = smov 104  }
 0xcee   : > { %4483 = vrot.lane.b32.xlu1 %v4427_v20, %s7953_s21  ;;  %s8006_s21 = smov 80  }
 0xcf0   : > { %4433 = vrot.lane.b32.xlu0 %v4431_v59, %s7955_s20  ;;  %s8007_s20 = smov 88  }
 0xcf2   : > { %4542 = vperm.xlu1 %6515, %v5826_v60   ;;  %v5824_v60 = vld [vmem:[%s7898_s1 + $0xd4] sm:$0xf] }
 0xcf3   : > { %v4489_v38 = vpack.c.bf16 %v5824_v60, %v5824_v60 }
 0xcf4   : > { %3257 = vperm.xlu0 %6514, %v5777_v61  }
 0xcf6   : > { %4550 = vperm.xlu1 %6515, %v5827_v51  }
 0xcf8   : > { %3265 = vperm.xlu0 %6514, %v5778_v62  }
 0xcfa   : > { %4565 = vperm.xlu1 %6515, %v5829_v63  }
 0xcfc   : > { %3280 = vperm.xlu0 %6514, %v5780_v1  }
 0xcfe   : > { %4573 = vperm.xlu1 %6515, %v5830_v2  }
 0xd00   : > { %3288 = vperm.xlu0 %6514, %v5781_v4  }
 0xd54   : > { %v4148_v28 = vpop.permute.xlu1 %4147 }
 0xd55   : > { %v4150_v13 = vsel %vm7045_vm0, %v4148_v28, 0.0 }
 0xd56   : > { %v4053_v8 = vpop.permute.xlu0 %4052  ;;  %v4154_v29 = vpack.c.bf16 %v4150_v13, %v4150_v13 }
 0xd57   : > { %v4058_v10 = vsel %vm447_vm9, %v4053_v8, 0 }
 0xd58   : > { %6159 = vmatpush3.bf16.msra.mxu1 %v4058_v10  ;;  %v4159_v22 = vsel %vm447_vm9, %v4154_v29, 0  ;;  %v4266_v37 = vpop.permute.xlu1 %4265 }
 0xd59   : > { %6164 = vmatprep.subr.bf16.mxu1 %v6617_v0  ;;  %v4271_v39 = vsel %vm447_vm9, %v4266_v37, 0  ;;  %v4613_v37 = vld [vmem:[%s7906_s9] sm:$0xff] }
 0xd5a   : > { %v4205_v23 = vpop.permute.xlu0 %4204  ;;  %6212 = vmatprep.subr.mxu0 %v4613_v37 }
 0xd5b   : > { %6161 = vmatmul.mubr.msk.bf16.vlgmr.msra.gmra.mrb[24].mxu1 %vm443_vm11, %v4049_v9  ;;  %v4207_v14 = vsel %vm7030_vm15, %v4205_v23, 0.0  ;;  %6213 = vmatpush3.msra.mxu0 %v4613_v37 }
 0xd5c   : > { %6165 = vmatpush3.bf16.msra.mxu1 %v4104_v5  ;;  %6166 = vmatprep.mubr.msk.bf16.mxu1 %vm8003_vm3, %v6617_v0  ;;  %v4211_v31 = vpack.c.bf16 %v4207_v14, %v4207_v14  ;;  %v4373_v19 = vpop.permute.xlu1 %4372 }
 0xd5d   : > { %6170 = vmatprep.subr.bf16.mxu1 %v6617_v0  ;;  %v4375_v47 = vsel %vm7030_vm15, %v4373_v19, 0.0  ;;  %vm8009_vm15 = vmmov %vm8004_vm14 }
 0xd5e   : > { %v4216_v25 = vsel %vm447_vm9, %v4211_v31, 0  ;;  %v4316_v42 = vpop.permute.xlu0 %4315  ;;  %v4379_v48 = vpack.c.bf16 %v4375_v47, %v4375_v47 }
 0xd5f   : > { %v4318_v43 = vsel %vm7045_vm0, %v4316_v42, 0.0 }
 0xd60   : > { %v4322_v45 = vpack.c.bf16 %v4318_v43, %v4318_v43  ;;  %v4384_v50 = vsel %vm447_vm9, %v4379_v48, 0  ;;  %v4484_v55 = vpop.permute.xlu1 %4483 }
 0xd61   : > { %v4486_v57 = vsel %vm7045_vm0, %v4484_v55, 0.0  ;;  %vm8010_vm0 = vmmov %vm8004_vm14 }
 0xd62   : > { %v4327_v17 = vsel %vm447_vm9, %v4322_v45, 0  ;;  %v4434_v34 = vpop.permute.xlu0 %4433  ;;  %v4490_v20 = vpack.c.bf16 %v4486_v57, %v4486_v57  ;;  %vm8011_vm1 = vmmov %vm8010_vm0 }
 0xd63   : > { %v4439_v52 = vsel %vm447_vm9, %v4434_v34, 0  ;;  %vm8012_vm7 = vmmov %vm8010_vm0 }
 0xd64   : > { %v4495_v59 = vsel %vm447_vm9, %v4490_v20, 0  ;;  %vm8013_vm2 = vmmov %vm8010_vm0 }
 0xd65   : > { %vm8014_vm4 = vmmov %vm8010_vm0 }
 0xd67   : > { %6167 = vmatmul.mubr.msk.bf16.vlgmr.msra.gmra.mrb[24].mxu1 %vm443_vm11, %v4045_v21 }
 0xd68   : > { %6171 = vmatpush3.bf16.msra.mxu1 %v4159_v22  ;;  %6172 = vmatprep.mubr.msk.bf16.mxu1 %vm8003_vm3, %v6617_v0 }
 0xd69   : > { %6176 = vmatprep.subr.bf16.mxu1 %v6617_v0 }
 0xd71   : > { %v4543_v2 = vpop.permute.xlu1 %4542 }
 0xd73   : > { %6173 = vmatmul.mubr.msk.bf16.vlgmr.msra.gmra.mrb[24].mxu1 %vm443_vm11, %v4153_v32  ;;  %v3258_v61 = vpop.permute.xlu0 %3257 }
 0xd74   : > { %6177 = vmatpush3.bf16.msra.mxu1 %v4216_v25  ;;  %6178 = vmatprep.mubr.msk.bf16.mxu1 %vm8003_vm3, %v6617_v0  ;;  %v3260_v62 = vmul.f32 %v3258_v61, %v7545_v36 }
 0xd75   : > { %6182 = vmatprep.subr.bf16.mxu1 %v6617_v0  ;;  %v4551_v8 = vpop.permute.xlu1 %4550 }
 0xd77   : > { %v3266_v51 = vpop.permute.xlu0 %3265 }
 0xd78   : > { %v3268_v63 = vadd.f32 %v3266_v51, %v3260_v62 }
 0xd79   : > { %v4566_v22 = vpop.permute.xlu1 %4565 }
 0xd7a   : > { %v5779_v1 = vmul.f32 -1.442695, %v3268_v63 }
 0xd7b   : > { %v3281_v21 = vpop.permute.xlu0 %3280 }
 0xd7c   : > { %6585 = vpow2.f32 %v5779_v1 }
 0xd7d   : > { %v4574_v27 = vpop.permute.xlu1 %4573 }
 0xd7f   : > { %6179 = vmatmul.mubr.msk.bf16.vlgmr.msra.gmra.mrb[24].mxu1 %vm443_vm11, %v4210_v33  ;;  %v3289_v31 = vpop.permute.xlu0 %3288 }
 0xd80   : > { %6183 = vmatpush3.bf16.msra.mxu1 %v4271_v39  ;;  %6184 = vmatprep.mubr.msk.bf16.mxu1 %vm8003_vm3, %v6617_v0 }
 0xd81   : > { %6188 = vmatprep.subr.bf16.mxu1 %v6617_v0 }
 0xd86   : > { %v6586_v35 = vpop.eup %6585 }
 0xd87   : > { %v3272_v28 = vadd.f32 1.0, %v6586_v35 }
 0xd8b   : > { %6185 = vmatmul.mubr.msk.bf16.vlgmr.msra.gmra.mrb[24].mxu1 %vm443_vm11, %v4262_v16 }
 0xd8c   : > { %6189 = vmatpush3.bf16.msra.mxu1 %v4327_v17  ;;  %6190 = vmatprep.mubr.msk.bf16.mxu1 %vm8003_vm3, %v6617_v0 }
 0xd8d   : > { %6194 = vmatprep.subr.bf16.mxu1 %v6617_v0 }
 0xd97   : > { %6191 = vmatmul.mubr.msk.bf16.vlgmr.msra.gmra.mrb[24].mxu1 %vm443_vm11, %v4321_v49 }
 0xd98   : > { %6195 = vmatpush3.bf16.msra.mxu1 %v4384_v50  ;;  %6196 = vmatprep.mubr.msk.bf16.mxu1 %vm8003_vm3, %v6617_v0 }
 0xd99   : > { %6200 = vmatprep.subr.bf16.mxu1 %v6617_v0 }
 0xda3   : > { %6197 = vmatmul.mubr.msk.bf16.vlgmr.msra.gmra.mrb[24].mxu1 %vm443_vm11, %v4378_v46 }
 0xda4   : > { %6201 = vmatpush3.bf16.msra.mxu1 %v4439_v52  ;;  %6202 = vmatprep.mubr.msk.bf16.mxu1 %vm8003_vm3, %v6617_v0 }
 0xda5   : > { %6206 = vmatprep.subr.bf16.mxu1 %v6617_v0 }
 0xdaf   : > { %6203 = vmatmul.mubr.msk.bf16.vlgmr.msra.gmra.mrb[24].mxu1 %vm443_vm11, %v4430_v58 }
 0xdb0   : > { %6207 = vmatpush3.bf16.msra.mxu1 %v4495_v59  ;;  %6208 = vmatprep.mubr.msk.bf16.mxu1 %vm8003_vm3, %v6617_v0  ;;  %vm8016_vm3 = vmmov %vm8010_vm0 }
 0xdbb   : > { %6209 = vmatmul.mubr.msk.bf16.vlgmr.msra.gmra.mrb[24].mxu1 %vm443_vm11, %v4489_v38 }
 0xe8e   : > { %v4531_v4 = vpop.f32.mrb[24].mxu1 }
 0xe8f   : > { %v4545_v6 = vmul.f32 %v4543_v2, %v4531_v4  ;;  %v6210_v7 = vpop.f32.mrb[25].mxu1 }
 0xe90   : > { %v4534_v0 = vpop.f32.mrb[26].mxu1 }
 0xe91   : > { %v4553_v10 = vadd.f32 %v4551_v8, %v4545_v6  ;;  %v6211_v9 = vpop.f32.mrb[27].mxu1 }
 0xe93   : > { %v5828_v5 = vmul.f32 -1.442695, %v4553_v10 }
 0xe95   : > { %6587 = vpow2.f32 %v5828_v5 }
 0xe96   : > { %6589 = vrcp.f32 %v3272_v28 }
 0xe9f   : > { %v6588_v13 = vpop.eup %6587 }
 0xea0   : > { %v4557_v30 = vadd.f32 1.0, %v6588_v13  ;;  %v6590_v36 = vpop.eup %6589 }
 0xea1   : > { %v3275_v29 = vmul.f32 %v6590_v36, %v3268_v63 }
 0xea2   : > { %6591 = vrcp.f32 %v4557_v30 }
 0xea3   : > { %v3283_v23 = vmul.f32 %v3281_v21, %v3275_v29 }
 0xea5   : > { %v3291_v32 = vadd.f32 %v3289_v31, %v3283_v23 }
 0xea7   : > { %v3292_v39 = vmax.f32 %v3291_v32, 0.0 }
 0xeac   : > { %v6592_v14 = vpop.eup %6591 }
 0xead   : > { %v4560_v24 = vmul.f32 %v6592_v14, %v4553_v10 }
 0xeaf   : > { %v4568_v25 = vmul.f32 %v4566_v22, %v4560_v24 }
 0xeb1   : > { %v4576_v33 = vadd.f32 %v4574_v27, %v4568_v25 }
 0xeb3   : > { %v4577_v42 = vmax.f32 %v4576_v33, 0.0 }
 0xeb5   : > { %v4578_v43 = vadd.f32 %v4577_v42, %v3292_v39 }
 0xeb7   : > { %4579 = vst.msk [vmem:[#allocation3] sm:$0xf] %vm8004_vm14, %v4578_v43  ;;  %4585 = vrot.lane.b32.xlu1 %v4578_v43, %s6626_s26  ;;  %4581 = vrot.lane.b32.xlu0 %v4578_v43, %s6640_s19  ;;  %vm8017_vm14 = vmmov %vm8015_vm6  ;;  %s8022_s19 = smov 64  }
 0xebb   : > { %4593 = vrot.lane.b32.xlu1 %v4578_v43, %s6623_s23  ;;  %4589 = vrot.lane.b32.xlu0 %v4578_v43, %s8005_s15 }
 0xebf   : > { %4601 = vrot.lane.b32.xlu1 %v4578_v43, %s8006_s21  ;;  %4597 = vrot.lane.b32.xlu0 %v4578_v43, %s8007_s20 }
 0xec3   : > { %4605 = vrot.lane.b32.xlu0 %v4578_v43, %s8008_s18 }
 0xf29   : > { %v4586_v15 = vpop.permute.xlu1 %4585  ;;  %v4582_v45 = vpop.permute.xlu0 %4581 }
 0xf2a   : > { %4588 = vst.msk [vmem:[#allocation3 + $0x8] sm:$0xf] %vm8009_vm15, %v4586_v15  ;;  %vm8018_vm15 = vmmov %vm8015_vm6 }
 0xf2b   : > { %4584 = vst.msk [vmem:[#allocation3 + $0x4] sm:$0xf] %vm8010_vm0, %v4582_v45  ;;  %vm8019_vm0 = vmmov %vm8015_vm6 }
 0xf2d   : > { %v4594_v16 = vpop.permute.xlu1 %4593  ;;  %v4590_v17 = vpop.permute.xlu0 %4589 }
 0xf2e   : > { %4596 = vst.msk [vmem:[#allocation3 + $0x10] sm:$0xf] %vm8011_vm1, %v4594_v16  ;;  %vm8020_vm1 = vcmask 125952  }
 0xf2f   : > { %4592 = vst.msk [vmem:[#allocation3 + $0xc] sm:$0xf] %vm8012_vm7, %v4590_v17  ;;  %vm8021_vm7 = vmmov %vm8020_vm1 }
 0xf31   : > { %v4602_v19 = vpop.permute.xlu1 %4601  ;;  %v4598_v47 = vpop.permute.xlu0 %4597 }
 0xf32   : > { %v4609_v12 = vld [vmem:[#allocation3] sm:$0xff]  ;;  %4604 = vst.msk [vmem:[#allocation3 + $0x18] sm:$0xf] %vm8013_vm2, %v4602_v19  ;;  %vm4722_vm2 = vcmask 257152  }
 0xf33   : > { %4600 = vst.msk [vmem:[#allocation3 + $0x14] sm:$0xf] %vm8014_vm4, %v4598_v47  ;;  %6214 = vmatprep.mubr.msk.f32.mxu0 %vm8015_vm6, %v4609_v12  ;;  %vm4734_vm4 = vcmask 388352   ;;  %vm4747_vm6 = vcmask 519552  }
 0xf35   : > { %v4606_v48 = vpop.permute.xlu0 %4605 }
 0xf36   : > { %v4610_v49 = vld [vmem:[#allocation3 + $0x8] sm:$0xff]  ;;  %4608 = vst.msk [vmem:[#allocation3 + $0x1c] sm:$0xf] %vm8016_vm3, %v4606_v48  ;;  %vm4760_vm3 = vcmask 650752  }
 0xf37   : > { %6215 = vmatmul.mubr.msk.f32.vlgmr.msra.gmra.mrb[16].mxu0 %vm8017_vm14, %v4610_v49  ;;  %vm4772_vm14 = vcmask 781952  }
 0xf3a   : > { %v4611_v50 = vld [vmem:[#allocation3 + $0x10] sm:$0xff] }
 0xf3b   : > { %6217 = vmatprep.mubr.msk.f32.mxu0 %vm8018_vm15, %v4611_v50  ;;  %vm4784_vm15 = vcmask 913152  }
 0xf3d   : > { %v4612_v26 = vld [vmem:[#allocation3 + $0x18] sm:$0xff] }
 0xf3e   : > { %6218 = vmatmul.mubr.msk.f32.gmra.mrb[18].mxu0 %vm8019_vm0, %v4612_v26  ;;  %vm4797_vm0 = vcmask 1044352  }
 0xf3f   : > { %4965 = vmatprep.mubr.bf16.mxu0 %v6620_v18 }
0x100a   : > { %v6216_v46 = vpop.f32.mrb[16].mxu0 }
0x100b   : > { %v4692_v34 = vpop.f32.mrb[17].mxu0  ;;  %v4763_v52 = vmul.f32 0.33333334, %v6216_v46  ;;  %v4775_v55 = vmul.f32 0.8, %v6216_v46 }
0x100c   : > { %4711 = vst.msk [vmem:[#allocation4] sm:$0xf] %vm8020_vm1, %v4692_v34  ;;  %v4762_v57 = vmul.f32 0.6666667, %v6216_v46  ;;  %v4713_v20 = vmul.f32 0.46666667, %v4692_v34 }
0x100d   : > { %v4765_v11 = vrot.slane %v4763_v52, 4  ;;  %v4777_v59 = vrot.slane %v4775_v55, 4  ;;  %v4736_v60 = vmul.f32 0.6, %v4692_v34  ;;  %v4737_v38 = vmul.f32 0.4, %v6216_v46 }
0x100e   : > { %v4749_v61 = vmul.f32 0.13333334, %v4692_v34  ;;  %v4750_v51 = vmul.f32 0.8666667, %v6216_v46  ;;  %v4774_v62 = vmul.f32 0.2, %v6216_v46 }
0x100f   : > { %v4767_v58 = vadd.f32 %v4765_v11, %v4762_v57  ;;  %v4725_v63 = vmul.f32 0.93333334, %v4692_v34  ;;  %v4739_v1 = vrot.slane %v4737_v38, 4  ;;  %v4715_v4 = vrot.slane %v4713_v20, 4 }
0x1010   : > { %v4752_v6 = vrot.slane %v4750_v51, 4  ;;  %v4779_v8 = vadd.f32 %v4777_v59, %v4774_v62  ;;  %v4712_v9 = vmul.f32 0.53333336, %v4692_v34  ;;  %v4724_v30 = vmul.f32 0.06666667, %v4692_v34 }
0x1011   : > { %4769 = vrot.lane.b32.xlu1 %v4767_v58, %s8006_s21  ;;  %v7711_v2 = vpop.f32.mrb[18].mxu0  ;;  %v4741_v10 = vadd.f32 %v4739_v1, %v4736_v60  ;;  %v4727_v36 = vrot.slane %v4725_v63, 4  ;;  %v4786_v23 = vmul.f32 0.73333335, %v6216_v46  ;;  %v4799_v33 = vmul.f32 0.26666668, %v6216_v46 }
0x1012   : > { %v4702_v7 = vpop.f32.mrb[19].mxu0  ;;  %v4856_v0 = vmul.f32 0.06666667, %v7711_v2  ;;  %v4867_v35 = vmul.f32 0.53333336, %v7711_v2  ;;  %v4754_v5 = vadd.f32 %v4752_v6, %v4749_v61  ;;  %v4717_v29 = vadd.f32 %v4715_v4, %v4712_v9 }
0x1013   : > { %v4855_v28 = vmul.f32 0.93333334, %v7711_v2  ;;  %v4810_v22 = vmul.f32 0.2, %v4702_v7  ;;  %v4831_v24 = vmul.f32 0.8666667, %v4702_v7  ;;  %v4729_v15 = vadd.f32 %v4727_v36, %v4724_v30 }
0x1014   : > { %v4858_v13 = vrot.slane %v4856_v0, 4  ;;  %v4869_v21 = vrot.slane %v4867_v35, 4  ;;  %v4832_v31 = vmul.f32 0.13333334, %v7711_v2  ;;  %v4787_v32 = vmul.f32 0.26666668, %v4702_v7 }
0x1015   : > { %4781 = vrot.lane.b32.xlu1 %v4779_v8, %s6623_s23  ;;  %v4843_v25 = vmul.f32 0.4, %v4702_v7  ;;  %v4844_v27 = vmul.f32 0.6, %v7711_v2  ;;  %v4866_v37 = vmul.f32 0.46666667, %v7711_v2  ;;  %v4743_v46 = vcombine.high %v4741_v10, %v4741_v10 }
0x1016   : > { %v4860_v14 = vadd.f32 %v4858_v13, %v4855_v28  ;;  %v4834_v39 = vrot.slane %v4832_v31, 4  ;;  %v4789_v42 = vrot.slane %v4787_v32, 4  ;;  %v4800_v43 = vmul.f32 0.73333335, %v4702_v7 }
0x1017   : > { %v4812_v45 = vrot.slane %v4810_v22, 4  ;;  %v4821_v16 = vmul.f32 0.6666667, %v4702_v7  ;;  %v4846_v17 = vrot.slane %v4844_v27, 4  ;;  %v4871_v19 = vadd.f32 %v4869_v21, %v4866_v37 }
0x1018   : > { %4862 = vrot.lane.b32.xlu0 %v4860_v14, %s8006_s21  ;;  %v4836_v47 = vadd.f32 %v4834_v39, %v4831_v24  ;;  %v4791_v12 = vadd.f32 %v4789_v42, %v4786_v23  ;;  %v4802_v48 = vrot.slane %v4800_v43, 4  ;;  %v4809_v50 = vmul.f32 0.8, %v4702_v7  ;;  %v5753_v43 = vld [vmem:[%s7899_s2 + $0x8] sm:$0xf] }
0x1019   : > { %4719 = vrot.lane.b32.xlu1 %v4717_v29, %s7989_s17  ;;  %v4848_v49 = vadd.f32 %v4846_v17, %v4843_v25  ;;  %v4823_v52 = vrot.slane %v4821_v16, 4  ;;  %v4820_v57 = vmul.f32 0.33333334, %v4702_v7  ;;  %v4756_v11 = vcombine.high %v4754_v5, %v4754_v5  ;;  %v5863_v16 = vld [vmem:[%s7900_s3 + $0x18] sm:$0xf] }
0x101a   : > { %v4804_v26 = vadd.f32 %v4802_v48, %v4799_v33  ;;  %v4814_v34 = vadd.f32 %v4812_v45, %v4809_v50  ;;  %v4838_v58 = vcombine.high %v4836_v47, %v4836_v47  ;;  %v4793_v59 = vcombine.high %v4791_v12, %v4791_v12  ;;  %v5754_v45 = vld [vmem:[%s7900_s3 + $0x8] sm:$0xf]  ;;  %v5867_v12 = vld [vmem:[%s7902_s5 + $0x18] sm:$0xf] }
0x101b   : > { %v4825_v20 = vadd.f32 %v4823_v52, %v4820_v57  ;;  %v4850_v60 = vcombine.high %v4848_v49, %v4848_v49  ;;  %v4878_v38 = vcombine.high %v7711_v2, %v7711_v2  ;;  %vm8024_vm1 = vcmask 138240   ;;  %v5757_v17 = vld [vmem:[%s7901_s4 + $0x8] sm:$0xf] }
0x101c   : > { %4873 = vrot.lane.b32.xlu0 %v4871_v19, %s6623_s23  ;;  %v4806_v55 = vcombine.high %v4804_v26, %v4804_v26  ;;  %v5866_v19 = vld [vmem:[%s7901_s4 + $0x18] sm:$0xf]  ;;  %v5758_v47 = vld [vmem:[%s7902_s5 + $0x8] sm:$0xf] }
0x101d   : > { %4731 = vrot.lane.b32.xlu1 %v4729_v15, %s7990_s25  ;;  %v5862_v15 = vld [vmem:[%s7899_s2 + $0x18] sm:$0xf] }
0x101e   : > { %4808 = vst.msk [vmem:[#allocation4 + $0x4] sm:$0xf] %vm8021_vm7, %v4806_v55  ;;  %vm8025_vm7 = vcmask 134144  }
0x1020   : > { %4816 = vrot.lane.b32.xlu0 %v4814_v34, %s7989_s17  ;;  %s8023_s17 = smov 17  }
0x1021   : > { %4744 = vrot.lane.b32.xlu1 %v4743_v46, %s7992_s28  ;;  %v5836_v46 = vld [vmem:[%s7898_s1 + $0xdc] sm:$0xf] }
0x1024   : > { %4827 = vrot.lane.b32.xlu0 %v4825_v20, %s7990_s25  ;;  %s8026_s25 = smov 111  }
0x1025   : > { %4757 = vrot.lane.b32.xlu1 %v4756_v11, %s8022_s19 }
0x1028   : > { %4839 = vrot.lane.b32.xlu0 %v4838_v58, %s7992_s28  ;;  %v4909_v58 = vpack.c.bf16 %v5836_v46, %v5836_v46 }
0x1029   : > { %4794 = vrot.lane.b32.xlu1 %v4793_v59, %s6626_s26 }
0x102c   : > { %4851 = vrot.lane.b32.xlu0 %v4850_v60, %s8022_s19 }
0x1030   : > { %4879 = vrot.lane.b32.xlu0 %v4878_v38, %s6626_s26 }
0x1083   : > { %v4770_v61 = vpop.permute.xlu1 %4769 }
0x1087   : > { %v4782_v51 = vpop.permute.xlu1 %4781 }
0x108a   : > { %v4863_v63 = vpop.permute.xlu0 %4862 }
0x108b   : > { %v4720_v62 = vpop.permute.xlu1 %4719 }
0x108c   : > { %4723 = vst.msk [vmem:[#allocation4] sm:$0xf] %vm4722_vm2, %v4720_v62 }
0x108e   : > { %v4874_v4 = vpop.permute.xlu0 %4873 }
0x108f   : > { %v4732_v1 = vpop.permute.xlu1 %4731 }
0x1090   : > { %4735 = vst.msk [vmem:[#allocation4] sm:$0xf] %vm4734_vm4, %v4732_v1 }
0x1092   : > { %v4817_v7 = vpop.permute.xlu0 %4816 }
0x1093   : > { %v4745_v6 = vpop.permute.xlu1 %4744  ;;  %4819 = vst.msk [vmem:[#allocation4 + $0x4] sm:$0xf] %vm4722_vm2, %v4817_v7 }
0x1094   : > { %4748 = vst.msk [vmem:[#allocation4] sm:$0xf] %vm4747_vm6, %v4745_v6 }
0x1096   : > { %v4828_v8 = vpop.permute.xlu0 %4827 }
0x1097   : > { %v4758_v2 = vpop.permute.xlu1 %4757  ;;  %4830 = vst.msk [vmem:[#allocation4 + $0x4] sm:$0xf] %vm4734_vm4, %v4828_v8  ;;  %vm8032_vm4 = vcmask 1031168   ;;  %v5835_v8 = vld [vmem:[%s7898_s1 + $0xd8] sm:$0xf] }
0x1098   : > { %4761 = vst.msk [vmem:[#allocation4] sm:$0xf] %vm4760_vm3, %v4758_v2 }
0x1099   : > { %4773 = vst.msk [vmem:[#allocation4] sm:$0xf] %vm4772_vm14, %v4770_v61 }
0x109a   : > { %4785 = vst.msk [vmem:[#allocation4] sm:$0xf] %vm4784_vm15, %v4782_v51  ;;  %v4840_v0 = vpop.permute.xlu0 %4839 }
0x109b   : > { %v4795_v10 = vpop.permute.xlu1 %4794  ;;  %4842 = vst.msk [vmem:[#allocation4 + $0x4] sm:$0xf] %vm4747_vm6, %v4840_v0  ;;  %vm8033_vm6 = vmmov %vm8032_vm4 }
0x109c   : > { %4798 = vst.msk [vmem:[#allocation4] sm:$0xf] %vm4797_vm0, %v4795_v10 }
0x109e   : > { %v4852_v9 = vpop.permute.xlu0 %4851 }
0x109f   : > { %4854 = vst.msk [vmem:[#allocation4 + $0x4] sm:$0xf] %vm4760_vm3, %v4852_v9  ;;  %vm8034_vm3 = vcmask 916480   ;;  %v4903_v9 = vpack.c.bf16 %v5835_v8, %v5835_v8 }
0x10a0   : > { %4865 = vst.msk [vmem:[#allocation4 + $0x4] sm:$0xf] %vm4772_vm14, %v4863_v63  ;;  %vm8035_vm14 = vmmov %vm8034_vm3 }
0x10a1   : > { %4876 = vst.msk [vmem:[#allocation4 + $0x4] sm:$0xf] %vm4784_vm15, %v4874_v4  ;;  %vm8036_vm15 = vcmask 908288  }
0x10a2   : > { %v4880_v35 = vpop.permute.xlu0 %4879 }
0x10a3   : > { %4882 = vst.msk [vmem:[#allocation4 + $0x4] sm:$0xf] %vm4797_vm0, %v4880_v35  ;;  %vm8037_vm0 = vcmask 900096  }
0x10aa   : > { %v4883_v5 = vld [vmem:[#allocation4] sm:$0xff] }
0x10ab   : > { %4887 = vrot.lane.b32.xlu1 %v4883_v5, %s8023_s17 }
0x111d   : > { %v4888_v28 = vpop.permute.xlu1 %4887 }
0x111e   : > { %v4889_v13 = vrot.slane %v4888_v28, 4 }
0x1120   : > { %v4890_v30 = vsel %vm8024_vm1, %v4889_v13, %v4888_v28  ;;  %4894 = vst.msk [vmem:[#allocation2 + $0x8] sm:$0xf] %vm8025_vm7, %v4889_v13  ;;  %vm8038_vm1 = vmmov %vm8036_vm15 }
0x1121   : > { %4893 = vst.msk [vmem:[#allocation2] sm:$0xff] %vm6727_vm5, %v4890_v30  ;;  %vm8030_vm5 = vcmask 1039360   ;;  %vm8039_vm7 = vmmov %vm8037_vm0 }
0x1122   : > { %vm8031_vm2 = vmmov %vm8030_vm5 }
0x1127   : > { %v4906_v22 = vld [vmem:[#allocation2 + $0x8] sm:$0xf] }
0x1128   : > { %v4895_v36 = vld [vmem:[#allocation2] sm:$0xff]  ;;  %v4912_v14 = vpack.c.bf16 %v4906_v22, %v4906_v22  ;;  %v5025_v31 = vld [vmem:[#allocation2 + $0x8] sm:$0xf] }
0x1129   : > { %v4910_v29 = vpack.c.bf16 %v4895_v36, %v4895_v36  ;;  %v4897_v21 = vcombine.high %v4895_v36, %v4895_v36  ;;  %v5099_v3 = vld [vmem:[#allocation2 + $0x8] sm:$0xf]  ;;  %v4899_v34 = vsel %vm6835_vm13, %v4895_v36, 0.0  ;;  %v5841_v22 = vld [vmem:[%s7898_s1 + $0xe0] sm:$0xf] }
0x112a   : > { %v5173_v32 = vld [vmem:[#allocation2 + $0x8] sm:$0xf]  ;;  %v4904_v59 = vpack.c.bf16 %v4899_v34, %v4899_v34 }
0x112b   : > { %4916 = vrot.lane.b32.xlu0 %v4910_v29, %s6622_s22  ;;  %v4911_v23 = vpack.c.bf16 %v4897_v21, %v4897_v21  ;;  %v6541_v24 = vpack.i.bf16 %v4897_v21, %v4895_v36  ;;  %v5182_v25 = vpack.c.bf16 %v5173_v32, %v5173_v32  ;;  %v5247_v27 = vld [vmem:[#allocation2 + $0x8] sm:$0xf]  ;;  %v4900_v26 = vsel %vm6831_vm12, %v4897_v21, 0.0 }
0x112c   : > { %v5321_v33 = vld [vmem:[#allocation2 + $0x8] sm:$0xf]  ;;  %v4905_v20 = vpack.c.bf16 %v4900_v26, %v4900_v26  ;;  %v4978_v1 = vsel %vm447_vm9, %v4904_v59, 0 }
0x112d   : > { %4918 = vrot.lane.b32.xlu1 %v4911_v23, %s6622_s22  ;;  %v5395_v37 = vld [vmem:[#allocation2 + $0x8] sm:$0xf] }
0x112e   : > { %v5404_v39 = vpack.c.bf16 %v5395_v37, %v5395_v37  ;;  %v5469_v42 = vld [vmem:[#allocation2 + $0x8] sm:$0xf]  ;;  %v5844_v37 = vld [vmem:[%s7898_s1 + $0xe4] sm:$0xf] }
0x112f   : > { %4920 = vrot.lane.b32.xlu0 %v4912_v14, %s6622_s22  ;;  %s8027_s22 = smov 110   ;;  %v5043_v14 = vpack.c.bf16 %v5841_v22, %v5841_v22 }
0x1131   : > { %6542 = vrot.lane.b32.xlu1 %v6541_v24, %s6624_s24 }
0x1133   : > { %5033 = vrot.lane.b32.xlu0 %v5025_v31, %s6624_s24  ;;  %s8028_s24 = smov 95  }
0x1135   : > { %6547 = vrot.lane.b32.xlu1 %v6541_v24, %s6626_s26 }
0x1137   : > { %5107 = vrot.lane.b32.xlu0 %v5099_v3, %s6626_s26  ;;  %s8029_s26 = smov 94  }
0x1139   : > { %5186 = vrot.lane.b32.xlu1 %v4910_v29, %s8026_s25 }
0x113b   : > { %5188 = vrot.lane.b32.xlu0 %v4911_v23, %s8026_s25 }
0x113d   : > { %5190 = vrot.lane.b32.xlu1 %v5182_v25, %s8026_s25 }
0x113f   : > { %6552 = vrot.lane.b32.xlu0 %v6541_v24, %s8027_s22 }
0x1141   : > { %5255 = vrot.lane.b32.xlu1 %v5247_v27, %s8027_s22 }
0x1143   : > { %6557 = vrot.lane.b32.xlu0 %v6541_v24, %s6623_s23 }
0x1145   : > { %5329 = vrot.lane.b32.xlu1 %v5321_v33, %s6623_s23 }
0x1147   : > { %5408 = vrot.lane.b32.xlu0 %v4910_v29, %s8028_s24 }
0x1149   : > { %5410 = vrot.lane.b32.xlu1 %v4911_v23, %s8028_s24 }
0x114b   : > { %5412 = vrot.lane.b32.xlu0 %v5404_v39, %s8028_s24  ;;  %s8046_s24 = sshll.u32 %s8048_s14, 3 }
0x114c   : > { %s359_s11 = scalar_lea.vmem %s7907_s10, %s8046_s24 }
0x114d   : > { %6562 = vrot.lane.b32.xlu1 %v6541_v24, %s8029_s26 }
0x114f   : > { %5477 = vrot.lane.b32.xlu0 %v5469_v42, %s8029_s26  ;;  %v5117_v42 = vpack.c.bf16 %v5844_v37, %v5844_v37 }
0x1151   : > { %2705 = vperm.xlu1 %6515, %v5753_v43  }
0x1153   : > { %5546 = vperm.xlu0 %6514, %v5862_v15  }
0x1155   : > { %2714 = vperm.xlu1 %6515, %v5754_v45  }
0x1157   : > { %5555 = vperm.xlu0 %6514, %v5863_v16  }
0x1159   : > { %2737 = vperm.xlu1 %6515, %v5757_v17  }
0x115b   : > { %5578 = vperm.xlu0 %6514, %v5866_v19  }
0x115d   : > { %2746 = vperm.xlu1 %6515, %v5758_v47  }
0x115f   : > { %5587 = vperm.xlu0 %6514, %v5867_v12  }
0x119d   : > { %v4917_v48 = vpop.permute.xlu0 %4916 }
0x119f   : > { %v4919_v49 = vpop.permute.xlu1 %4918 }
0x11a0   : > { %v4922_v50 = vsel %vm8030_vm5, %v4917_v48, %v4919_v49  ;;  %vm8040_vm5 = vcmask 785408  }
0x11a1   : > { %v4921_v52 = vpop.permute.xlu0 %4920  ;;  %v4928_v57 = vsel %vm447_vm9, %v4922_v50, 0 }
0x11a2   : > { %v4923_v55 = vsel %vm8031_vm2, %v4919_v49, %v4921_v52  ;;  %v5847_v49 = vld [vmem:[%s7898_s1 + $0xe8] sm:$0xf]  ;;  %vm8041_vm2 = vmmov %vm8040_vm5 }
0x11a3   : > { %5837 = vmatprep.subr.msk.bf16.mxu0 %vm447_vm9, %v4923_v55  ;;  %v6543_v11 = vpop.permute.xlu1 %6542  ;;  %v5176_v46 = vpack.c.bf16 %v5847_v49, %v5847_v49 }
0x11a4   : > { %v6545_v60 = vunpack.i.h.bf16 %v6543_v11  ;;  %4934 = vmatpush1.bf16.msra.mxu0 %v4928_v57  ;;  %v6544_v38 = vunpack.i.l.bf16 %v6543_v11 }
0x11a5   : > { %v5034_v61 = vpop.permute.xlu0 %5033  ;;  %5839 = vmatprep.subr.msk.bf16.mxu0 %vm447_vm9, %v4905_v20 }
0x11a6   : > { %v5036_v51 = vsel %vm8032_vm4, %v6545_v60, %v5034_v61  ;;  %v5035_v6 = vsel %vm8033_vm6, %v6544_v38, %v6545_v60  ;;  %v5265_v38 = vpack.c.bf16 %v5850_v54, %v5850_v54 }
0x11a7   : > { %v5040_v62 = vsel %vm6827_vm10, %v5036_v51, 0.0  ;;  %5838 = vmatmul.mubr.msk.bf16.vlgmr.msra.gmra.mrb[20].mxu0 %vm443_vm11, %v4909_v58  ;;  %v6548_v63 = vpop.permute.xlu1 %6547  ;;  %v5039_v0 = vsel %vm6817_vm8, %v5035_v6, 0.0 }
0x11a8   : > { %v5045_v4 = vpack.c.bf16 %v5040_v62, %v5040_v62  ;;  %4984 = vmatpush1.bf16.msra.mxu0 %v4978_v1  ;;  %5015 = vmatprep.mubr.bf16.mxu0 %v6620_v18  ;;  %v6550_v7 = vunpack.i.h.bf16 %v6548_v63  ;;  %v5044_v35 = vpack.c.bf16 %v5039_v0, %v5039_v0  ;;  %v6549_v28 = vunpack.i.l.bf16 %v6548_v63 }
0x11a9   : > { %v5108_v2 = vpop.permute.xlu0 %5107 }
0x11aa   : > { %5842 = vmatprep.subr.msk.bf16.mxu0 %vm447_vm9, %v5045_v4  ;;  %v5110_v10 = vsel %vm8034_vm3, %v6550_v7, %v5108_v2  ;;  %v5050_v30 = vsel %vm447_vm9, %v5044_v35, 0  ;;  %v5109_v36 = vsel %vm8035_vm14, %v6549_v28, %v6550_v7  ;;  %v5339_v2 = vpack.c.bf16 %v5853_v56, %v5853_v56  ;;  %v5856_v28 = vld [vmem:[%s7898_s1 + $0xf4] sm:$0xf] }
0x11ab   : > { %v5114_v5 = vsel %vm6831_vm12, %v5110_v10, 0.0  ;;  %v5187_v29 = vpop.permute.xlu1 %5186  ;;  %v5113_v23 = vsel %vm6835_vm13, %v5109_v36, 0.0 }
0x11ac   : > { %v5119_v13 = vpack.c.bf16 %v5114_v5, %v5114_v5  ;;  %v5118_v24 = vpack.c.bf16 %v5113_v23, %v5113_v23 }
0x11ad   : > { %v5189_v21 = vpop.permute.xlu0 %5188 }
0x11ae   : > { %v5124_v32 = vsel %vm447_vm9, %v5118_v24, 0  ;;  %v5192_v43 = vsel %vm8038_vm1, %v5187_v29, %v5189_v21  ;;  %v5859_v29 = vld [vmem:[%s7898_s1 + $0xf8] sm:$0xf] }
0x11af   : > { %v5191_v31 = vpop.permute.xlu1 %5190  ;;  %v5198_v17 = vsel %vm447_vm9, %v5192_v43, 0 }
0x11b0   : > { %v5193_v25 = vsel %vm8036_vm15, %v5189_v21, %v5191_v31  ;;  %v5487_v21 = vpack.c.bf16 %v5859_v29, %v5859_v29 }
0x11b1   : > { %v6553_v3 = vpop.permute.xlu0 %6552 }
0x11b2   : > { %v6555_v27 = vunpack.i.h.bf16 %v6553_v3  ;;  %v6554_v45 = vunpack.i.l.bf16 %v6553_v3 }
0x11b3   : > { %5840 = vmatmul.mubr.msk.bf16.vlgmr.msra.gmra.mrb[20].mxu0 %vm443_vm11, %v4903_v9  ;;  %v5256_v33 = vpop.permute.xlu1 %5255 }
0x11b4   : > { %5056 = vmatpush1.bf16.msra.mxu0 %v5050_v30  ;;  %5087 = vmatprep.mubr.bf16.mxu0 %v6620_v18  ;;  %v5258_v39 = vsel %vm8037_vm0, %v6555_v27, %v5256_v33  ;;  %v5257_v47 = vsel %vm8039_vm7, %v6554_v45, %v6555_v27 }
0x11b5   : > { %5845 = vmatprep.subr.msk.bf16.mxu0 %vm447_vm9, %v5119_v13  ;;  %v5262_v15 = vsel %vm6827_vm10, %v5258_v39, 0.0  ;;  %v6558_v16 = vpop.permute.xlu0 %6557  ;;  %v5261_v50 = vsel %vm6817_vm8, %v5257_v47, 0.0  ;;  %v5398_v13 = vpack.c.bf16 %v5856_v28, %v5856_v28 }
0x11b6   : > { %v5267_v19 = vpack.c.bf16 %v5262_v15, %v5262_v15  ;;  %v6560_v12 = vunpack.i.h.bf16 %v6558_v16  ;;  %v5266_v34 = vpack.c.bf16 %v5261_v50, %v5261_v50  ;;  %v6559_v55 = vunpack.i.l.bf16 %v6558_v16 }
0x11b7   : > { %v5330_v48 = vpop.permute.xlu1 %5329 }
0x11b8   : > { %v5332_v26 = vsel %vm8040_vm5, %v6560_v12, %v5330_v48  ;;  %v5272_v11 = vsel %vm447_vm9, %v5266_v34, 0  ;;  %v5331_v20 = vsel %vm8041_vm2, %v6559_v55, %v6560_v12 }
0x11b9   : > { %v5336_v52 = vsel %vm6831_vm12, %v5332_v26, 0.0  ;;  %v5409_v58 = vpop.permute.xlu0 %5408  ;;  %v5335_v60 = vsel %vm6835_vm13, %v5331_v20, 0.0  ;;  %vm8042_vm12 = vcmask 777216   ;;  %vm8043_vm13 = vcmask 769024  }
0x11ba   : > { %v5341_v57 = vpack.c.bf16 %v5336_v52, %v5336_v52  ;;  %v5340_v61 = vpack.c.bf16 %v5335_v60, %v5335_v60  ;;  %vm8044_vm4 = vmmov %vm8042_vm12 }
0x11bb   : > { %v5411_v59 = vpop.permute.xlu1 %5410  ;;  %vm8045_vm6 = vmmov %vm8043_vm13 }
0x11bc   : > { %v5346_v63 = vsel %vm447_vm9, %v5340_v61, 0  ;;  %v5414_v8 = vsel %vm8044_vm4, %v5409_v58, %v5411_v59 }
0x11bd   : > { %v5413_v51 = vpop.permute.xlu0 %5412  ;;  %v5420_v9 = vsel %vm447_vm9, %v5414_v8, 0 }
0x11be   : > { %v5415_v1 = vsel %vm8042_vm12, %v5411_v59, %v5413_v51 }
0x11bf   : > { %5843 = vmatmul.mubr.msk.bf16.vlgmr.msra.gmra.mrb[20].mxu0 %vm443_vm11, %v5043_v14  ;;  %v6563_v62 = vpop.permute.xlu1 %6562 }
0x11c0   : > { %5130 = vmatpush1.bf16.msra.mxu0 %v5124_v32  ;;  %5161 = vmatprep.mubr.bf16.mxu0 %v6620_v18  ;;  %v6565_v4 = vunpack.i.h.bf16 %v6563_v62  ;;  %v6564_v10 = vunpack.i.l.bf16 %v6563_v62 }
0x11c1   : > { %5848 = vmatprep.subr.msk.bf16.mxu0 %vm447_vm9, %v5193_v25  ;;  %v5478_v6 = vpop.permute.xlu0 %5477 }
0x11c2   : > { %v5480_v7 = vsel %vm8043_vm13, %v6565_v4, %v5478_v6  ;;  %v5479_v5 = vsel %vm8045_vm6, %v6564_v10, %v6565_v4 }
0x11c3   : > { %v5484_v0 = vsel %vm6827_vm10, %v5480_v7, 0.0  ;;  %v5483_v53 = vsel %vm6817_vm8, %v5479_v5, 0.0 }
0x11c4   : > { %v5489_v35 = vpack.c.bf16 %v5484_v0, %v5484_v0  ;;  %v5488_v30 = vpack.c.bf16 %v5483_v53, %v5483_v53 }
0x11c6   : > { %v5494_v36 = vsel %vm447_vm9, %v5488_v30, 0 }
0x11cb   : > { %5846 = vmatmul.mubr.msk.bf16.vlgmr.msra.gmra.mrb[20].mxu0 %vm443_vm11, %v5117_v42 }
0x11cc   : > { %5204 = vmatpush1.bf16.msra.mxu0 %v5198_v17  ;;  %5235 = vmatprep.mubr.bf16.mxu0 %v6620_v18 }
0x11cd   : > { %5851 = vmatprep.subr.msk.bf16.mxu0 %vm447_vm9, %v5267_v19 }
0x11d0   : > { %v2706_v22 = vpop.permute.xlu1 %2705 }
0x11d1   : > { %v2708_v44 = vmul.f32 %v2706_v22, %v7526_v40  ;;  %v2709_v14 = vmul.f32 %v2706_v22, %v7528_v41 }
0x11d2   : > { %v5547_v25 = vpop.permute.xlu0 %5546 }
0x11d4   : > { %v2715_v23 = vpop.permute.xlu1 %2714 }
0x11d5   : > { %v2717_v24 = vadd.f32 %v2715_v23, %v2708_v44  ;;  %v2718_v31 = vadd.f32 %v2715_v23, %v2709_v14 }
0x11d6   : > { %v5556_v37 = vpop.permute.xlu0 %5555 }
0x11d7   : > { %5849 = vmatmul.mubr.msk.bf16.vlgmr.msra.gmra.mrb[20].mxu0 %vm443_vm11, %v5176_v46  ;;  %v5755_v3 = vmul.f32 -1.442695, %v2717_v24  ;;  %v5756_v32 = vmul.f32 -1.442695, %v2718_v31 }
0x11d8   : > { %5278 = vmatpush1.bf16.msra.mxu0 %v5272_v11  ;;  %5309 = vmatprep.mubr.bf16.mxu0 %v6620_v18  ;;  %v2738_v55 = vpop.permute.xlu1 %2737 }
0x11d9   : > { %5854 = vmatprep.subr.msk.bf16.mxu0 %vm447_vm9, %v5341_v57  ;;  %6593 = vpow2.f32 %v5755_v3 }
0x11da   : > { %6595 = vpow2.f32 %v5756_v32  ;;  %v5579_v57 = vpop.permute.xlu0 %5578 }
0x11dc   : > { %v2747_v60 = vpop.permute.xlu1 %2746 }
0x11e3   : > { %5852 = vmatmul.mubr.msk.bf16.vlgmr.msra.gmra.mrb[20].mxu0 %vm443_vm11, %v5265_v38  ;;  %v6594_v16 = vpop.eup %6593 }
0x11e4   : > { %5352 = vmatpush1.bf16.msra.mxu0 %v5346_v63  ;;  %5383 = vmatprep.mubr.bf16.mxu0 %v6620_v18  ;;  %v6596_v17 = vpop.eup %6595  ;;  %v2725_v19 = vadd.f32 1.0, %v6594_v16  ;;  %v5588_v63 = vpop.permute.xlu0 %5587 }
0x11e5   : > { %5857 = vmatprep.subr.msk.bf16.mxu0 %vm447_vm9, %v5415_v1  ;;  %v2726_v47 = vadd.f32 1.0, %v6596_v17 }
0x11ef   : > { %5855 = vmatmul.mubr.msk.bf16.vlgmr.msra.gmra.mrb[20].mxu0 %vm443_vm11, %v5339_v2 }
0x11f0   : > { %5426 = vmatpush1.bf16.msra.mxu0 %v5420_v9  ;;  %5457 = vmatprep.mubr.bf16.mxu0 %v6620_v18 }
0x11f1   : > { %5860 = vmatprep.subr.msk.bf16.mxu0 %vm447_vm9, %v5489_v35 }
0x11fb   : > { %5858 = vmatmul.mubr.msk.bf16.vlgmr.msra.gmra.mrb[20].mxu0 %vm443_vm11, %v5398_v13 }
0x11fc   : > { %5500 = vmatpush1.bf16.msra.mxu0 %v5494_v36  ;;  %5531 = vmatprep.mubr.bf16.mxu0 %v6620_v18 }
0x1207   : > { %5861 = vmatmul.mubr.msk.bf16.vlgmr.msra.gmra.mrb[20].mxu0 %vm443_vm11, %v5487_v21 }
0x12da   : > { %v5533_v18 = vpop.f32.mrb[20].mxu0 }
0x12db   : > { %v5549_v27 = vmul.f32 %v5547_v25, %v5533_v18  ;;  %v5535_v33 = vpop.f32.mrb[21].mxu0 }
0x12dc   : > { %v5550_v39 = vmul.f32 %v5547_v25, %v5535_v33  ;;  %v5537_v42 = vpop.f32.mrb[22].mxu0 }
0x12dd   : > { %v5558_v43 = vadd.f32 %v5556_v37, %v5549_v27  ;;  %v5538_v15 = vpop.f32.mrb[23].mxu0 }
0x12de   : > { %v5559_v45 = vadd.f32 %v5556_v37, %v5550_v39 }
0x12df   : > { %v5864_v40 = vmul.f32 -1.442695, %v5558_v43 }
0x12e0   : > { %v5865_v41 = vmul.f32 -1.442695, %v5559_v45 }
0x12e1   : > { %6597 = vpow2.f32 %v5864_v40 }
0x12e2   : > { %6599 = vpow2.f32 %v5865_v41 }
0x12e3   : > { %6601 = vrcp.f32 %v2725_v19 }
0x12e4   : > { %6603 = vrcp.f32 %v2726_v47 }
0x12eb   : > { %v6598_v12 = vpop.eup %6597 }
0x12ec   : > { %v6600_v48 = vpop.eup %6599  ;;  %v5566_v49 = vadd.f32 1.0, %v6598_v12 }
0x12ed   : > { %v5567_v50 = vadd.f32 1.0, %v6600_v48  ;;  %v6602_v26 = vpop.eup %6601 }
0x12ee   : > { %6605 = vrcp.f32 %v5566_v49  ;;  %v6604_v46 = vpop.eup %6603  ;;  %v2731_v34 = vmul.f32 %v6602_v26, %v2717_v24 }
0x12ef   : > { %6607 = vrcp.f32 %v5567_v50  ;;  %v2732_v52 = vmul.f32 %v6604_v46, %v2718_v31 }
0x12f0   : > { %v2740_v11 = vmul.f32 %v2738_v55, %v2731_v34 }
0x12f1   : > { %v2741_v58 = vmul.f32 %v2738_v55, %v2732_v52 }
0x12f2   : > { %v2749_v61 = vadd.f32 %v2747_v60, %v2740_v11 }
0x12f3   : > { %v2750_v62 = vadd.f32 %v2747_v60, %v2741_v58 }
0x12f4   : > { %v2751_v56 = vmax.f32 %v2749_v61, 0.0 }
0x12f5   : > { %v2752_v2 = vmax.f32 %v2750_v62, 0.0 }
0x12f8   : > { %v6606_v20 = vpop.eup %6605 }
0x12f9   : > { %v6608_v59 = vpop.eup %6607  ;;  %v5572_v54 = vmul.f32 %v6606_v20, %v5558_v43 }
0x12fa   : > { %v5573_v38 = vmul.f32 %v6608_v59, %v5559_v45 }
0x12fb   : > { %v5581_v51 = vmul.f32 %v5579_v57, %v5572_v54 }
0x12fc   : > { %v5582_v1 = vmul.f32 %v5579_v57, %v5573_v38 }
0x12fd   : > { %v5590_v4 = vadd.f32 %v5588_v63, %v5581_v51 }
0x12fe   : > { %v5591_v6 = vadd.f32 %v5588_v63, %v5582_v1 }
0x12ff   : > { %v5592_v7 = vmax.f32 %v5590_v4, 0.0 }
0x1300   : > { %v5593_v8 = vmax.f32 %v5591_v6, 0.0 }
0x1301   : > { %v5594_v0 = vadd.f32 %v5592_v7, %v2751_v56 }
0x1302   : > { %v5595_v10 = vadd.f32 %v5593_v8, %v2752_v2 }
0x1304   : > { %v5598_v9 = vcombine.low %v5594_v0, %v5595_v10 }
0x1306   : > { %5600 = vst [vmem:[%s359_s11] sm:$0xff] %v5598_v9 }
0x1307 PF: > { %s20_s13 = sadd.s32 1, %s6615_s13  }
0x1308   : > { %p17_p4 = scmp.ge.s32.totalorder %s20_s13, 4  }
0x130a   :  { %19 = sbr.rel (!%p17_p4) target bundleno = 1 (0x1), region = 174 }

</bundles_post_ra>
